<compile_context>
chip_gen: v7x
topology: tpu7x:2x2x1
jax: 0.10.0
libtpu: 0.0.40
codegen_flags: <defaults>
</compile_context>

<pallas_src>
import jax
import jax.numpy as jnp
from jax import lax
from jax.experimental import pallas as pl
from jax.experimental.pallas import tpu as pltpu

# ------------------------- small configuration -------------------------
B = 2
INPUT_FDIM = 36            # frequency bins  (128 in the paper model)
INPUT_TDIM = 56            # time frames     (1024 in the paper model)
PATCH = 16
FSTRIDE = 10
TSTRIDE = 10
F_DIM = (INPUT_FDIM - PATCH) // FSTRIDE + 1     # 3
T_DIM = (INPUT_TDIM - PATCH) // TSTRIDE + 1     # 5
N_PATCH = F_DIM * T_DIM                         # 15
SEQ = N_PATCH + 2                               # + cls + dist tokens = 17
EMBED = 128                # 768 in base384
HEADS = 4                  # 12 in base384
HEAD_DIM = EMBED // HEADS
MLP_DIM = 4 * EMBED
DEPTH = 2                  # 12 in base384
AST_FEATURE_LAYER = DEPTH  # ast_feature_layer picks block output `layer{k}_out`
NUM_CLASSES = 10           # AST_AT classifier
CLS_PAD = 128              # lane-dense classifier width (sliced back to NUM_CLASSES)
SED_FRAMES = 1000
LN_EPS_BLOCK = 1e-6        # timm ViT blocks use eps=1e-6
LN_EPS_OUT = 1e-5          # nn.LayerNorm default for AST_AT.out_norm


# ------------------------- in-kernel helpers -------------------------
def _layer_norm(x, w, b, eps):
    mu = jnp.mean(x, axis=-1, keepdims=True)
    var = jnp.mean((x - mu) ** 2, axis=-1, keepdims=True)
    return (x - mu) * lax.rsqrt(var + eps) * w + b


def _erf(z):
    # erf via Abramowitz-Stegun 7.1.26 (|err| < 1.5e-7): exact-GELU semantics within
    # f32 tolerance using only exp / mul / add / divide (guaranteed Mosaic lowerings).
    a1, a2, a3, a4, a5 = 0.254829592, -0.284496736, 1.421413741, -1.453152027, 1.061405429
    p = 0.3275911
    s = jnp.where(z >= 0.0, 1.0, -1.0)
    za = jnp.abs(z)
    t = 1.0 / (1.0 + p * za)
    poly = ((((a5 * t + a4) * t + a3) * t + a2) * t + a1) * t
    return s * (1.0 - poly * jnp.exp(-za * za))


def _gelu(x):
    # nn.GELU (exact, erf-based)
    return 0.5 * x * (1.0 + _erf(x * 0.7071067811865476))


# ------------------------- the single fused kernel -------------------------
def _fused_forward_kernel(
        patches_ref, pos_ref, pw_ref,
        ln1w_ref, ln1b_ref, qkvw_ref, qkvb_ref, projw_ref, projb_ref,
        ln2w_ref, ln2b_ref, fc1w_ref, fc1b_ref, fc2w_ref, fc2b_ref,
        onw_ref, onb_ref, cw_ref, cb_ref,
        logit_ref):
    # ---- patch embedding: Conv2d(1, D, (16,16), stride=(10,10)) as im2col matmul ----
    # patches rows 0-1 are zero; pos_ref rows 0-1 carry cls+pos0 / dist+pos1 and rows
    # 2.. carry patch positional embeddings + conv bias -> no in-kernel concatenate.
    x = jnp.dot(patches_ref[0], pw_ref[...],
                preferred_element_type=jnp.float32) + pos_ref[...]            # (S, D) f32

    for l in range(DEPTH):                               # static unroll over blocks
        # ---- multi-head attention: per-head 2-D matmuls, no layout shuffles ----
        h = _layer_norm(x, ln1w_ref[l], ln1b_ref[l], LN_EPS_BLOCK)
        qkv = jnp.dot(h.astype(jnp.bfloat16), qkvw_ref[l],
                      preferred_element_type=jnp.float32) + qkvb_ref[l]        # (S, 3D)
        projw_l = projw_ref[l]                                                 # (D, D) bf16

        attn = jnp.zeros((SEQ, EMBED), jnp.float32)
        for hd in range(HEADS):
            q_h = qkv[:, hd * HEAD_DIM:(hd + 1) * HEAD_DIM].astype(jnp.bfloat16)
            k_h = qkv[:, EMBED + hd * HEAD_DIM:EMBED + (hd + 1) * HEAD_DIM].astype(jnp.bfloat16)
            v_h = qkv[:, 2 * EMBED + hd * HEAD_DIM:2 * EMBED + (hd + 1) * HEAD_DIM].astype(jnp.bfloat16)
            # scores: q @ k^T as an NT dot_general (contract last dim of both) -- the
            # 1/sqrt(head_dim) scale is pre-folded into the Q columns of qkv_w/qkv_b.
            s = lax.dot_general(q_h, k_h, (((1,), (1,)), ((), ())),
                                preferred_element_type=jnp.float32)            # (S, S) f32
            s = s - jnp.max(s, axis=-1, keepdims=True)
            p = jnp.exp(s)
            p = p * pl.reciprocal(jnp.sum(p, axis=-1, keepdims=True), approx=True)
            ctx = jnp.dot(p.astype(jnp.bfloat16), v_h,
                          preferred_element_type=jnp.float32)                  # (S, Dh)
            # output projection folded per head (avoids lane concat of head outputs)
            attn = attn + jnp.dot(ctx.astype(jnp.bfloat16),
                                  projw_l[hd * HEAD_DIM:(hd + 1) * HEAD_DIM, :],
                                  preferred_element_type=jnp.float32)
        x = x + attn + projb_ref[l]                      # residual 1

        # ---- MLP ----
        h2 = _layer_norm(x, ln2w_ref[l], ln2b_ref[l], LN_EPS_BLOCK)
        m = jnp.dot(h2.astype(jnp.bfloat16), fc1w_ref[l],
                    preferred_element_type=jnp.float32) + fc1b_ref[l]
        m = _gelu(m)
        m = jnp.dot(m.astype(jnp.bfloat16), fc2w_ref[l],
                    preferred_element_type=jnp.float32) + fc2b_ref[l]
        x = x + m                                        # residual 2

    # ---- AST_AT head: out_norm -> mean over non-token positions -> classifier ----
    xn = _layer_norm(x, onw_ref[...], onb_ref[...], LN_EPS_OUT)
    feat = jnp.mean(xn[2:, :], axis=0, keepdims=True)                          # (1, D)
    logit = jnp.dot(feat.astype(jnp.bfloat16), cw_ref[...],
                    preferred_element_type=jnp.float32) + cb_ref[...]          # (1, CLS_PAD)
    logit_ref[0] = logit


def _fused_forward(patches_full, p):
    """patches_full: (B, SEQ, 256) bf16 (rows 0-1 zero); returns logits (B, NUM_CLASSES)."""
    Bv = patches_full.shape[0]
    inputs = [patches_full, p['pos_full'], p['patch_w'],
              p['ln1_w'], p['ln1_b'], p['qkv_w'], p['qkv_b'], p['proj_w'], p['proj_b'],
              p['ln2_w'], p['ln2_b'], p['fc1_w'], p['fc1_b'], p['fc2_w'], p['fc2_b'],
              p['out_norm_w'], p['out_norm_b'], p['cls_w'], p['cls_b']]

    def const_spec(a):
        nd = a.ndim
        return pl.BlockSpec(a.shape, lambda b, _nd=nd: (0,) * _nd)

    in_specs = [pl.BlockSpec((1, SEQ, PATCH * PATCH), lambda b: (b, 0, 0))]
    in_specs += [const_spec(a) for a in inputs[1:]]

    logit_pad = pl.pallas_call(
        _fused_forward_kernel,
        out_shape=jax.ShapeDtypeStruct((Bv, 1, CLS_PAD), jnp.float32),
        grid=(Bv,),
        in_specs=in_specs,
        out_specs=pl.BlockSpec((1, 1, CLS_PAD), lambda b: (b, 0, 0)),
        compiler_params=pltpu.CompilerParams(
            dimension_semantics=("parallel",)),   # B=2 -> 2 TCs on v7x, serial on v5e/v6e
    )(*inputs)
    return logit_pad[:, 0, :NUM_CLASSES]


# ------------------------- glue: parameters & forward -------------------------
def init_params(key):
    ks = iter(jax.random.split(key, 64))

    def nrm(shape, std=0.02):
        return std * jax.random.normal(next(ks), shape, dtype=jnp.float32)

    params = {}
    # Conv2d(1, D, kernel=(16,16), stride=(10,10)) realized as (256, D) matmul weight
    w_conv = nrm((EMBED, PATCH, PATCH))
    params['patch_w'] = jnp.transpose(w_conv.reshape(EMBED, PATCH * PATCH))   # (256, D)
    params['patch_b'] = nrm((EMBED,))
    params['cls_token'] = nrm((1, 1, EMBED))
    params['dist_token'] = nrm((1, 1, EMBED))
    params['pos_embed'] = nrm((1, N_PATCH + 2, EMBED))
    blocks = []
    for _ in range(DEPTH):
        blocks.append(dict(
            ln1_w=jnp.ones((EMBED,), jnp.float32),
            ln1_b=jnp.zeros((EMBED,), jnp.float32),
            qkv_w=nrm((EMBED, 3 * EMBED)),     # Linear weights stored pre-transposed (in, out)
            qkv_b=nrm((3 * EMBED,)),
            proj_w=nrm((EMBED, EMBED)),
            proj_b=nrm((EMBED,)),
            ln2_w=jnp.ones((EMBED,), jnp.float32),
            ln2_b=jnp.zeros((EMBED,), jnp.float32),
            fc1_w=nrm((EMBED, MLP_DIM)),
            fc1_b=nrm((MLP_DIM,)),
            fc2_w=nrm((MLP_DIM, EMBED)),
            fc2_b=nrm((EMBED,)),
        ))
    params['blocks'] = blocks
    params['out_norm_w'] = jnp.ones((1, EMBED), jnp.float32)
    params['out_norm_b'] = jnp.zeros((1, EMBED), jnp.float32)
    params['cls_w'] = nrm((EMBED, NUM_CLASSES))
    params['cls_b'] = nrm((NUM_CLASSES,))
    return params


def get_mutable_pos_embedding(pos_embed, f_dim, total_dim):
    # Mirrors ASTModel.get_mutable_pos_embedding (identity when the stored table was
    # built for the same f_dim / t_dim, as it is here).
    time_dim = total_dim // f_dim
    parts = [pos_embed[:, :2, :]]
    for f in range(f_dim):
        parts.append(pos_embed[:, 2 + f * time_dim: 2 + (f + 1) * time_dim, :])
    return jnp.concatenate(parts, axis=1)


def prepare_params(params):
    """Stack per-block weights over DEPTH, cast matmul weights to bf16, fold the
    attention scale into Q, fold conv bias + tokens + pos embed into one (SEQ, D) table,
    and pad the classifier to 128 lanes."""
    bf = jnp.bfloat16
    scale = HEAD_DIM ** -0.5

    def stack(key):
        return jnp.stack([blk[key] for blk in params['blocks']], axis=0)

    qkv_w = stack('qkv_w')                               # (DEPTH, D, 3D) f32
    qkv_b = stack('qkv_b')                               # (DEPTH, 3D)
    qkv_w = qkv_w.at[:, :, :EMBED].multiply(scale)       # fold 1/sqrt(head_dim) into Q
    qkv_b = qkv_b.at[:, :EMBED].multiply(scale)

    pos = get_mutable_pos_embedding(params['pos_embed'], F_DIM, N_PATCH)[0]    # (S, D)
    prefix = (jnp.concatenate([params['cls_token'][0], params['dist_token'][0]], axis=0)
              + pos[:2, :])                                                    # (2, D)
    pos_full = jnp.concatenate([prefix, pos[2:, :] + params['patch_b']], axis=0)  # (S, D)

    cls_w_pad = jnp.zeros((EMBED, CLS_PAD), jnp.float32).at[:, :NUM_CLASSES].set(params['cls_w'])
    cls_b_pad = jnp.zeros((1, CLS_PAD), jnp.float32).at[0, :NUM_CLASSES].set(params['cls_b'])

    return {
        'patch_w': params['patch_w'].astype(bf),
        'pos_full': pos_full,
        'ln1_w': stack('ln1_w'), 'ln1_b': stack('ln1_b'),
        'qkv_w': qkv_w.astype(bf), 'qkv_b': qkv_b,
        'proj_w': stack('proj_w').astype(bf), 'proj_b': stack('proj_b'),
        'ln2_w': stack('ln2_w'), 'ln2_b': stack('ln2_b'),
        'fc1_w': stack('fc1_w').astype(bf), 'fc1_b': stack('fc1_b'),
        'fc2_w': stack('fc2_w').astype(bf), 'fc2_b': stack('fc2_b'),
        'out_norm_w': params['out_norm_w'], 'out_norm_b': params['out_norm_b'],
        'cls_w': cls_w_pad.astype(bf), 'cls_b': cls_b_pad,
    }


@jax.jit
def ast_at_forward(x, prepped):
    """x: (B, freq_bins, time_frames) — matches AST_AT.forward input layout."""
    Bv = x.shape[0]
    fbank = x

    # im2col for Conv2d(1, D, (16,16), stride=(10,10)); patch index = fi * T_DIM + ti
    patches = []
    for fi in range(F_DIM):
        for ti in range(T_DIM):
            p = x[:, fi * FSTRIDE:fi * FSTRIDE + PATCH, ti * TSTRIDE:ti * TSTRIDE + PATCH]
            patches.append(p.reshape(Bv, PATCH * PATCH))
    patches = jnp.stack(patches, axis=1)                                    # (B, N, 256)
    # two leading zero rows stand in for the cls/dist token positions (their content is
    # injected through the additive pos_full table inside the kernel)
    patches_full = jnp.concatenate(
        [jnp.zeros((Bv, 2, PATCH * PATCH), patches.dtype), patches], axis=1).astype(jnp.bfloat16)
    # pos_drop / attn_drop / drop_path: drop rate 0 in the reference -> identity.

    # Single fused Pallas kernel: patch-embed + all blocks + AST_AT head (logits only).
    # layer{AST_FEATURE_LAYER}_out is consumed directly inside the kernel (the reference
    # only stores it transposed and transposes back; same values).
    logits = _fused_forward(patches_full, prepped)                          # (B, 10)

    at_out = jax.nn.sigmoid(logits)
    # sed_out = sigmoid(logits).unsqueeze(1).repeat(1, 1000, 1).transpose(1, 2)
    sed_out = jnp.transpose(
        jnp.broadcast_to(at_out[:, None, :], (Bv, SED_FRAMES, NUM_CLASSES)), (0, 2, 1))
    other_dict = {'logit': logits, 'fbank': fbank}
    return sed_out, at_out, other_dict


if __name__ == "__main__":
    key = jax.random.PRNGKey(0)
    pkey, xkey = jax.random.split(key)
    params = init_params(pkey)
    prepped = prepare_params(params)
    x = jax.random.normal(xkey, (B, INPUT_FDIM, INPUT_TDIM), dtype=jnp.float32)

    sed_out, at_out, other = ast_at_forward(x, prepped)
    jax.block_until_ready((sed_out, at_out, other['logit']))

    assert sed_out.shape == (B, NUM_CLASSES, SED_FRAMES)
    assert at_out.shape == (B, NUM_CLASSES)
    assert other['logit'].shape == (B, NUM_CLASSES)
    assert other['fbank'].shape == (B, INPUT_FDIM, INPUT_TDIM)
    assert bool(jnp.all(jnp.isfinite(at_out)))
    assert bool(jnp.all((at_out >= 0.0) & (at_out <= 1.0)))
    print("KERNEL_OK")
</pallas_src>

<mosaic_0001>
module attributes {stable_mosaic.version = 11 : i64} {
  func.func @_fused_forward_kernel(%arg0: i32, %arg1: memref<1x17x256xbf16, #tpu.memory_space<vmem>>, %arg2: memref<17x128xf32, #tpu.memory_space<vmem>>, %arg3: memref<256x128xbf16, #tpu.memory_space<vmem>>, %arg4: memref<2x128xf32, #tpu.memory_space<vmem>>, %arg5: memref<2x128xf32, #tpu.memory_space<vmem>>, %arg6: memref<2x128x384xbf16, #tpu.memory_space<vmem>>, %arg7: memref<2x384xf32, #tpu.memory_space<vmem>>, %arg8: memref<2x128x128xbf16, #tpu.memory_space<vmem>>, %arg9: memref<2x128xf32, #tpu.memory_space<vmem>>, %arg10: memref<2x128xf32, #tpu.memory_space<vmem>>, %arg11: memref<2x128xf32, #tpu.memory_space<vmem>>, %arg12: memref<2x128x512xbf16, #tpu.memory_space<vmem>>, %arg13: memref<2x512xf32, #tpu.memory_space<vmem>>, %arg14: memref<2x512x128xbf16, #tpu.memory_space<vmem>>, %arg15: memref<2x128xf32, #tpu.memory_space<vmem>>, %arg16: memref<1x128xf32, #tpu.memory_space<vmem>>, %arg17: memref<1x128xf32, #tpu.memory_space<vmem>>, %arg18: memref<128x128xbf16, #tpu.memory_space<vmem>>, %arg19: memref<1x128xf32, #tpu.memory_space<vmem>>, %arg20: memref<1x1x128xf32, #tpu.memory_space<vmem>>) attributes {dimension_semantics = [#tpu.dimension_semantics<parallel>], iteration_bounds = array<i64: 2>, scalar_prefetch = 0 : i64, scratch_operands = 0 : i64, tpu.core_type = #tpu.core_type<tc>, window_params = [{transform_indices = @transform_0, window_bounds = array<i64: 1, 17, 256>}, {pipeline_mode = #tpu.pipeline_mode<synchronous>, transform_indices = @transform_1, window_bounds = array<i64: 17, 128>}, {pipeline_mode = #tpu.pipeline_mode<synchronous>, transform_indices = @transform_2, window_bounds = array<i64: 256, 128>}, {pipeline_mode = #tpu.pipeline_mode<synchronous>, transform_indices = @transform_3, window_bounds = array<i64: 2, 128>}, {pipeline_mode = #tpu.pipeline_mode<synchronous>, transform_indices = @transform_4, window_bounds = array<i64: 2, 128>}, {pipeline_mode = #tpu.pipeline_mode<synchronous>, transform_indices = @transform_5, window_bounds = array<i64: 2, 128, 384>}, {pipeline_mode = #tpu.pipeline_mode<synchronous>, transform_indices = @transform_6, window_bounds = array<i64: 2, 384>}, {pipeline_mode = #tpu.pipeline_mode<synchronous>, transform_indices = @transform_7, window_bounds = array<i64: 2, 128, 128>}, {pipeline_mode = #tpu.pipeline_mode<synchronous>, transform_indices = @transform_8, window_bounds = array<i64: 2, 128>}, {pipeline_mode = #tpu.pipeline_mode<synchronous>, transform_indices = @transform_9, window_bounds = array<i64: 2, 128>}, {pipeline_mode = #tpu.pipeline_mode<synchronous>, transform_indices = @transform_10, window_bounds = array<i64: 2, 128>}, {pipeline_mode = #tpu.pipeline_mode<synchronous>, transform_indices = @transform_11, window_bounds = array<i64: 2, 128, 512>}, {pipeline_mode = #tpu.pipeline_mode<synchronous>, transform_indices = @transform_12, window_bounds = array<i64: 2, 512>}, {pipeline_mode = #tpu.pipeline_mode<synchronous>, transform_indices = @transform_13, window_bounds = array<i64: 2, 512, 128>}, {pipeline_mode = #tpu.pipeline_mode<synchronous>, transform_indices = @transform_14, window_bounds = array<i64: 2, 128>}, {pipeline_mode = #tpu.pipeline_mode<synchronous>, transform_indices = @transform_15, window_bounds = array<i64: 1, 128>}, {pipeline_mode = #tpu.pipeline_mode<synchronous>, transform_indices = @transform_16, window_bounds = array<i64: 1, 128>}, {pipeline_mode = #tpu.pipeline_mode<synchronous>, transform_indices = @transform_17, window_bounds = array<i64: 128, 128>}, {pipeline_mode = #tpu.pipeline_mode<synchronous>, transform_indices = @transform_18, window_bounds = array<i64: 1, 128>}, {transform_indices = @transform_19, window_bounds = array<i64: 1, 1, 128>}]} {
    %c0 = arith.constant 0 : index
    %c0_0 = arith.constant 0 : index
    %c0_1 = arith.constant 0 : index
    %0 = vector.load %arg1[%c0, %c0_0, %c0_1] : memref<1x17x256xbf16, #tpu.memory_space<vmem>>, vector<1x17x256xbf16>
    %1 = vector.shape_cast %0 : vector<1x17x256xbf16> to vector<17x256xbf16>
    %c0_2 = arith.constant 0 : index
    %c0_3 = arith.constant 0 : index
    %2 = vector.load %arg3[%c0_2, %c0_3] : memref<256x128xbf16, #tpu.memory_space<vmem>>, vector<256x128xbf16>
    %cst = arith.constant dense<0.000000e+00> : vector<17x128xf32>
    %3 = tpu.matmul %1, %2, %cst {dimension_numbers = #tpu.dot_dimension_numbers<[1], [0], [0], [1], [0, 0, 1, 1], [], []>} : vector<17x256xbf16>, vector<256x128xbf16>, vector<17x128xf32> -> vector<17x128xf32>
    %c0_4 = arith.constant 0 : index
    %c0_5 = arith.constant 0 : index
    %4 = vector.load %arg2[%c0_4, %c0_5] : memref<17x128xf32, #tpu.memory_space<vmem>>, vector<17x128xf32>
    %5 = arith.addf %3, %4 : vector<17x128xf32>
    %c0_6 = arith.constant 0 : index
    %c0_7 = arith.constant 0 : index
    %6 = vector.load %arg4[%c0_6, %c0_7] : memref<2x128xf32, #tpu.memory_space<vmem>>, vector<1x128xf32>
    %7 = vector.shape_cast %6 : vector<1x128xf32> to vector<128xf32>
    %c0_8 = arith.constant 0 : index
    %c0_9 = arith.constant 0 : index
    %8 = vector.load %arg5[%c0_8, %c0_9] : memref<2x128xf32, #tpu.memory_space<vmem>>, vector<1x128xf32>
    %9 = vector.shape_cast %8 : vector<1x128xf32> to vector<128xf32>
    %cst_10 = arith.constant dense<0.000000e+00> : vector<17xf32>
    %10 = vector.multi_reduction <add>, %5, %cst_10 [1] : vector<17x128xf32> to vector<17xf32>
    %11 = vector.shape_cast %10 : vector<17xf32> to vector<17x1xf32>
    %cst_11 = arith.constant 1.280000e+02 : f32
    %12 = vector.broadcast %cst_11 : f32 to vector<17x1xf32>
    %13 = arith.divf %11, %12 : vector<17x1xf32>
    %14 = vector.broadcast %13 : vector<17x1xf32> to vector<17x128xf32>
    %15 = arith.subf %5, %14 : vector<17x128xf32>
    %16 = arith.mulf %15, %15 : vector<17x128xf32>
    %cst_12 = arith.constant dense<0.000000e+00> : vector<17xf32>
    %17 = vector.multi_reduction <add>, %16, %cst_12 [1] : vector<17x128xf32> to vector<17xf32>
    %18 = vector.shape_cast %17 : vector<17xf32> to vector<17x1xf32>
    %cst_13 = arith.constant 1.280000e+02 : f32
    %19 = vector.broadcast %cst_13 : f32 to vector<17x1xf32>
    %20 = arith.divf %18, %19 : vector<17x1xf32>
    %21 = vector.broadcast %13 : vector<17x1xf32> to vector<17x128xf32>
    %22 = arith.subf %5, %21 : vector<17x128xf32>
    %cst_14 = arith.constant 9.99999997E-7 : f32
    %23 = vector.broadcast %cst_14 : f32 to vector<17x1xf32>
    %24 = arith.addf %20, %23 : vector<17x1xf32>
    %25 = math.rsqrt %24 : vector<17x1xf32>
    %26 = vector.broadcast %25 : vector<17x1xf32> to vector<17x128xf32>
    %27 = arith.mulf %22, %26 : vector<17x128xf32>
    %28 = vector.shape_cast %7 : vector<128xf32> to vector<1x128xf32>
    %29 = vector.broadcast %28 : vector<1x128xf32> to vector<17x128xf32>
    %30 = arith.mulf %27, %29 : vector<17x128xf32>
    %31 = vector.shape_cast %9 : vector<128xf32> to vector<1x128xf32>
    %32 = vector.broadcast %31 : vector<1x128xf32> to vector<17x128xf32>
    %33 = arith.addf %30, %32 : vector<17x128xf32>
    %34 = arith.truncf %33 : vector<17x128xf32> to vector<17x128xbf16>
    %c0_15 = arith.constant 0 : index
    %c0_16 = arith.constant 0 : index
    %c0_17 = arith.constant 0 : index
    %35 = vector.load %arg6[%c0_15, %c0_16, %c0_17] : memref<2x128x384xbf16, #tpu.memory_space<vmem>>, vector<1x128x384xbf16>
    %36 = vector.shape_cast %35 : vector<1x128x384xbf16> to vector<128x384xbf16>
    %cst_18 = arith.constant dense<0.000000e+00> : vector<17x384xf32>
    %37 = tpu.matmul %34, %36, %cst_18 {dimension_numbers = #tpu.dot_dimension_numbers<[1], [0], [0], [1], [0, 0, 1, 1], [], []>} : vector<17x128xbf16>, vector<128x384xbf16>, vector<17x384xf32> -> vector<17x384xf32>
    %c0_19 = arith.constant 0 : index
    %c0_20 = arith.constant 0 : index
    %38 = vector.load %arg7[%c0_19, %c0_20] : memref<2x384xf32, #tpu.memory_space<vmem>>, vector<1x384xf32>
    %39 = vector.shape_cast %38 : vector<1x384xf32> to vector<384xf32>
    %40 = vector.shape_cast %39 : vector<384xf32> to vector<1x384xf32>
    %41 = vector.broadcast %40 : vector<1x384xf32> to vector<17x384xf32>
    %42 = arith.addf %37, %41 : vector<17x384xf32>
    %c0_21 = arith.constant 0 : index
    %c0_22 = arith.constant 0 : index
    %c0_23 = arith.constant 0 : index
    %43 = vector.load %arg8[%c0_21, %c0_22, %c0_23] : memref<2x128x128xbf16, #tpu.memory_space<vmem>>, vector<1x128x128xbf16>
    %44 = vector.shape_cast %43 : vector<1x128x128xbf16> to vector<128x128xbf16>
    %cst_24 = arith.constant 0.000000e+00 : f32
    %45 = vector.broadcast %cst_24 : f32 to vector<17x128xf32>
    %46 = vector.extract_strided_slice %42 {offsets = [0, 0], sizes = [17, 32], strides = [1, 1]} : vector<17x384xf32> to vector<17x32xf32>
    %47 = arith.truncf %46 : vector<17x32xf32> to vector<17x32xbf16>
    %48 = vector.extract_strided_slice %42 {offsets = [0, 128], sizes = [17, 32], strides = [1, 1]} : vector<17x384xf32> to vector<17x32xf32>
    %49 = arith.truncf %48 : vector<17x32xf32> to vector<17x32xbf16>
    %50 = vector.extract_strided_slice %42 {offsets = [0, 256], sizes = [17, 32], strides = [1, 1]} : vector<17x384xf32> to vector<17x32xf32>
    %51 = arith.truncf %50 : vector<17x32xf32> to vector<17x32xbf16>
    %cst_25 = arith.constant dense<0.000000e+00> : vector<17x17xf32>
    %52 = tpu.matmul %47, %49, %cst_25 {dimension_numbers = #tpu.dot_dimension_numbers<[1], [1], [0], [0], [0, 0, 1, 0], [], []>} : vector<17x32xbf16>, vector<17x32xbf16>, vector<17x17xf32> -> vector<17x17xf32>
    %cst_26 = arith.constant dense<0xFF800000> : vector<17xf32>
    %53 = vector.multi_reduction <maximumf>, %52, %cst_26 [1] : vector<17x17xf32> to vector<17xf32>
    %54 = vector.shape_cast %53 : vector<17xf32> to vector<17x1xf32>
    %55 = vector.broadcast %54 : vector<17x1xf32> to vector<17x17xf32>
    %56 = arith.subf %52, %55 : vector<17x17xf32>
    %57 = math.exp %56 : vector<17x17xf32>
    %cst_27 = arith.constant dense<0.000000e+00> : vector<17xf32>
    %58 = vector.multi_reduction <add>, %57, %cst_27 [1] : vector<17x17xf32> to vector<17xf32>
    %59 = vector.shape_cast %58 : vector<17xf32> to vector<17x1xf32>
    %60 = tpu.reciprocal %59 {approx = true} : vector<17x1xf32> -> vector<17x1xf32>
    %61 = vector.broadcast %60 : vector<17x1xf32> to vector<17x17xf32>
    %62 = arith.mulf %57, %61 : vector<17x17xf32>
    %63 = arith.truncf %62 : vector<17x17xf32> to vector<17x17xbf16>
    %cst_28 = arith.constant dense<0.000000e+00> : vector<17x32xf32>
    %64 = tpu.matmul %63, %51, %cst_28 {dimension_numbers = #tpu.dot_dimension_numbers<[1], [0], [0], [1], [0, 0, 1, 1], [], []>} : vector<17x17xbf16>, vector<17x32xbf16>, vector<17x32xf32> -> vector<17x32xf32>
    %65 = arith.truncf %64 : vector<17x32xf32> to vector<17x32xbf16>
    %66 = vector.extract_strided_slice %44 {offsets = [0, 0], sizes = [32, 128], strides = [1, 1]} : vector<128x128xbf16> to vector<32x128xbf16>
    %cst_29 = arith.constant dense<0.000000e+00> : vector<17x128xf32>
    %67 = tpu.matmul %65, %66, %cst_29 {dimension_numbers = #tpu.dot_dimension_numbers<[1], [0], [0], [1], [0, 0, 1, 1], [], []>} : vector<17x32xbf16>, vector<32x128xbf16>, vector<17x128xf32> -> vector<17x128xf32>
    %68 = arith.addf %45, %67 : vector<17x128xf32>
    %69 = vector.extract_strided_slice %42 {offsets = [0, 32], sizes = [17, 32], strides = [1, 1]} : vector<17x384xf32> to vector<17x32xf32>
    %70 = arith.truncf %69 : vector<17x32xf32> to vector<17x32xbf16>
    %71 = vector.extract_strided_slice %42 {offsets = [0, 160], sizes = [17, 32], strides = [1, 1]} : vector<17x384xf32> to vector<17x32xf32>
    %72 = arith.truncf %71 : vector<17x32xf32> to vector<17x32xbf16>
    %73 = vector.extract_strided_slice %42 {offsets = [0, 288], sizes = [17, 32], strides = [1, 1]} : vector<17x384xf32> to vector<17x32xf32>
    %74 = arith.truncf %73 : vector<17x32xf32> to vector<17x32xbf16>
    %cst_30 = arith.constant dense<0.000000e+00> : vector<17x17xf32>
    %75 = tpu.matmul %70, %72, %cst_30 {dimension_numbers = #tpu.dot_dimension_numbers<[1], [1], [0], [0], [0, 0, 1, 0], [], []>} : vector<17x32xbf16>, vector<17x32xbf16>, vector<17x17xf32> -> vector<17x17xf32>
    %cst_31 = arith.constant dense<0xFF800000> : vector<17xf32>
    %76 = vector.multi_reduction <maximumf>, %75, %cst_31 [1] : vector<17x17xf32> to vector<17xf32>
    %77 = vector.shape_cast %76 : vector<17xf32> to vector<17x1xf32>
    %78 = vector.broadcast %77 : vector<17x1xf32> to vector<17x17xf32>
    %79 = arith.subf %75, %78 : vector<17x17xf32>
    %80 = math.exp %79 : vector<17x17xf32>
    %cst_32 = arith.constant dense<0.000000e+00> : vector<17xf32>
    %81 = vector.multi_reduction <add>, %80, %cst_32 [1] : vector<17x17xf32> to vector<17xf32>
    %82 = vector.shape_cast %81 : vector<17xf32> to vector<17x1xf32>
    %83 = tpu.reciprocal %82 {approx = true} : vector<17x1xf32> -> vector<17x1xf32>
    %84 = vector.broadcast %83 : vector<17x1xf32> to vector<17x17xf32>
    %85 = arith.mulf %80, %84 : vector<17x17xf32>
    %86 = arith.truncf %85 : vector<17x17xf32> to vector<17x17xbf16>
    %cst_33 = arith.constant dense<0.000000e+00> : vector<17x32xf32>
    %87 = tpu.matmul %86, %74, %cst_33 {dimension_numbers = #tpu.dot_dimension_numbers<[1], [0], [0], [1], [0, 0, 1, 1], [], []>} : vector<17x17xbf16>, vector<17x32xbf16>, vector<17x32xf32> -> vector<17x32xf32>
    %88 = arith.truncf %87 : vector<17x32xf32> to vector<17x32xbf16>
    %89 = vector.extract_strided_slice %44 {offsets = [32, 0], sizes = [32, 128], strides = [1, 1]} : vector<128x128xbf16> to vector<32x128xbf16>
    %cst_34 = arith.constant dense<0.000000e+00> : vector<17x128xf32>
    %90 = tpu.matmul %88, %89, %cst_34 {dimension_numbers = #tpu.dot_dimension_numbers<[1], [0], [0], [1], [0, 0, 1, 1], [], []>} : vector<17x32xbf16>, vector<32x128xbf16>, vector<17x128xf32> -> vector<17x128xf32>
    %91 = arith.addf %68, %90 : vector<17x128xf32>
    %92 = vector.extract_strided_slice %42 {offsets = [0, 64], sizes = [17, 32], strides = [1, 1]} : vector<17x384xf32> to vector<17x32xf32>
    %93 = arith.truncf %92 : vector<17x32xf32> to vector<17x32xbf16>
    %94 = vector.extract_strided_slice %42 {offsets = [0, 192], sizes = [17, 32], strides = [1, 1]} : vector<17x384xf32> to vector<17x32xf32>
    %95 = arith.truncf %94 : vector<17x32xf32> to vector<17x32xbf16>
    %96 = vector.extract_strided_slice %42 {offsets = [0, 320], sizes = [17, 32], strides = [1, 1]} : vector<17x384xf32> to vector<17x32xf32>
    %97 = arith.truncf %96 : vector<17x32xf32> to vector<17x32xbf16>
    %cst_35 = arith.constant dense<0.000000e+00> : vector<17x17xf32>
    %98 = tpu.matmul %93, %95, %cst_35 {dimension_numbers = #tpu.dot_dimension_numbers<[1], [1], [0], [0], [0, 0, 1, 0], [], []>} : vector<17x32xbf16>, vector<17x32xbf16>, vector<17x17xf32> -> vector<17x17xf32>
    %cst_36 = arith.constant dense<0xFF800000> : vector<17xf32>
    %99 = vector.multi_reduction <maximumf>, %98, %cst_36 [1] : vector<17x17xf32> to vector<17xf32>
    %100 = vector.shape_cast %99 : vector<17xf32> to vector<17x1xf32>
    %101 = vector.broadcast %100 : vector<17x1xf32> to vector<17x17xf32>
    %102 = arith.subf %98, %101 : vector<17x17xf32>
    %103 = math.exp %102 : vector<17x17xf32>
    %cst_37 = arith.constant dense<0.000000e+00> : vector<17xf32>
    %104 = vector.multi_reduction <add>, %103, %cst_37 [1] : vector<17x17xf32> to vector<17xf32>
    %105 = vector.shape_cast %104 : vector<17xf32> to vector<17x1xf32>
    %106 = tpu.reciprocal %105 {approx = true} : vector<17x1xf32> -> vector<17x1xf32>
    %107 = vector.broadcast %106 : vector<17x1xf32> to vector<17x17xf32>
    %108 = arith.mulf %103, %107 : vector<17x17xf32>
    %109 = arith.truncf %108 : vector<17x17xf32> to vector<17x17xbf16>
    %cst_38 = arith.constant dense<0.000000e+00> : vector<17x32xf32>
    %110 = tpu.matmul %109, %97, %cst_38 {dimension_numbers = #tpu.dot_dimension_numbers<[1], [0], [0], [1], [0, 0, 1, 1], [], []>} : vector<17x17xbf16>, vector<17x32xbf16>, vector<17x32xf32> -> vector<17x32xf32>
    %111 = arith.truncf %110 : vector<17x32xf32> to vector<17x32xbf16>
    %112 = vector.extract_strided_slice %44 {offsets = [64, 0], sizes = [32, 128], strides = [1, 1]} : vector<128x128xbf16> to vector<32x128xbf16>
    %cst_39 = arith.constant dense<0.000000e+00> : vector<17x128xf32>
    %113 = tpu.matmul %111, %112, %cst_39 {dimension_numbers = #tpu.dot_dimension_numbers<[1], [0], [0], [1], [0, 0, 1, 1], [], []>} : vector<17x32xbf16>, vector<32x128xbf16>, vector<17x128xf32> -> vector<17x128xf32>
    %114 = arith.addf %91, %113 : vector<17x128xf32>
    %115 = vector.extract_strided_slice %42 {offsets = [0, 96], sizes = [17, 32], strides = [1, 1]} : vector<17x384xf32> to vector<17x32xf32>
    %116 = arith.truncf %115 : vector<17x32xf32> to vector<17x32xbf16>
    %117 = vector.extract_strided_slice %42 {offsets = [0, 224], sizes = [17, 32], strides = [1, 1]} : vector<17x384xf32> to vector<17x32xf32>
    %118 = arith.truncf %117 : vector<17x32xf32> to vector<17x32xbf16>
    %119 = vector.extract_strided_slice %42 {offsets = [0, 352], sizes = [17, 32], strides = [1, 1]} : vector<17x384xf32> to vector<17x32xf32>
    %120 = arith.truncf %119 : vector<17x32xf32> to vector<17x32xbf16>
    %cst_40 = arith.constant dense<0.000000e+00> : vector<17x17xf32>
    %121 = tpu.matmul %116, %118, %cst_40 {dimension_numbers = #tpu.dot_dimension_numbers<[1], [1], [0], [0], [0, 0, 1, 0], [], []>} : vector<17x32xbf16>, vector<17x32xbf16>, vector<17x17xf32> -> vector<17x17xf32>
    %cst_41 = arith.constant dense<0xFF800000> : vector<17xf32>
    %122 = vector.multi_reduction <maximumf>, %121, %cst_41 [1] : vector<17x17xf32> to vector<17xf32>
    %123 = vector.shape_cast %122 : vector<17xf32> to vector<17x1xf32>
    %124 = vector.broadcast %123 : vector<17x1xf32> to vector<17x17xf32>
    %125 = arith.subf %121, %124 : vector<17x17xf32>
    %126 = math.exp %125 : vector<17x17xf32>
    %cst_42 = arith.constant dense<0.000000e+00> : vector<17xf32>
    %127 = vector.multi_reduction <add>, %126, %cst_42 [1] : vector<17x17xf32> to vector<17xf32>
    %128 = vector.shape_cast %127 : vector<17xf32> to vector<17x1xf32>
    %129 = tpu.reciprocal %128 {approx = true} : vector<17x1xf32> -> vector<17x1xf32>
    %130 = vector.broadcast %129 : vector<17x1xf32> to vector<17x17xf32>
    %131 = arith.mulf %126, %130 : vector<17x17xf32>
    %132 = arith.truncf %131 : vector<17x17xf32> to vector<17x17xbf16>
    %cst_43 = arith.constant dense<0.000000e+00> : vector<17x32xf32>
    %133 = tpu.matmul %132, %120, %cst_43 {dimension_numbers = #tpu.dot_dimension_numbers<[1], [0], [0], [1], [0, 0, 1, 1], [], []>} : vector<17x17xbf16>, vector<17x32xbf16>, vector<17x32xf32> -> vector<17x32xf32>
    %134 = arith.truncf %133 : vector<17x32xf32> to vector<17x32xbf16>
    %135 = vector.extract_strided_slice %44 {offsets = [96, 0], sizes = [32, 128], strides = [1, 1]} : vector<128x128xbf16> to vector<32x128xbf16>
    %cst_44 = arith.constant dense<0.000000e+00> : vector<17x128xf32>
    %136 = tpu.matmul %134, %135, %cst_44 {dimension_numbers = #tpu.dot_dimension_numbers<[1], [0], [0], [1], [0, 0, 1, 1], [], []>} : vector<17x32xbf16>, vector<32x128xbf16>, vector<17x128xf32> -> vector<17x128xf32>
    %137 = arith.addf %114, %136 : vector<17x128xf32>
    %138 = arith.addf %5, %137 : vector<17x128xf32>
    %c0_45 = arith.constant 0 : index
    %c0_46 = arith.constant 0 : index
    %139 = vector.load %arg9[%c0_45, %c0_46] : memref<2x128xf32, #tpu.memory_space<vmem>>, vector<1x128xf32>
    %140 = vector.shape_cast %139 : vector<1x128xf32> to vector<128xf32>
    %141 = vector.shape_cast %140 : vector<128xf32> to vector<1x128xf32>
    %142 = vector.broadcast %141 : vector<1x128xf32> to vector<17x128xf32>
    %143 = arith.addf %138, %142 : vector<17x128xf32>
    %c0_47 = arith.constant 0 : index
    %c0_48 = arith.constant 0 : index
    %144 = vector.load %arg10[%c0_47, %c0_48] : memref<2x128xf32, #tpu.memory_space<vmem>>, vector<1x128xf32>
    %145 = vector.shape_cast %144 : vector<1x128xf32> to vector<128xf32>
    %c0_49 = arith.constant 0 : index
    %c0_50 = arith.constant 0 : index
    %146 = vector.load %arg11[%c0_49, %c0_50] : memref<2x128xf32, #tpu.memory_space<vmem>>, vector<1x128xf32>
    %147 = vector.shape_cast %146 : vector<1x128xf32> to vector<128xf32>
    %cst_51 = arith.constant dense<0.000000e+00> : vector<17xf32>
    %148 = vector.multi_reduction <add>, %143, %cst_51 [1] : vector<17x128xf32> to vector<17xf32>
    %149 = vector.shape_cast %148 : vector<17xf32> to vector<17x1xf32>
    %cst_52 = arith.constant 1.280000e+02 : f32
    %150 = vector.broadcast %cst_52 : f32 to vector<17x1xf32>
    %151 = arith.divf %149, %150 : vector<17x1xf32>
    %152 = vector.broadcast %151 : vector<17x1xf32> to vector<17x128xf32>
    %153 = arith.subf %143, %152 : vector<17x128xf32>
    %154 = arith.mulf %153, %153 : vector<17x128xf32>
    %cst_53 = arith.constant dense<0.000000e+00> : vector<17xf32>
    %155 = vector.multi_reduction <add>, %154, %cst_53 [1] : vector<17x128xf32> to vector<17xf32>
    %156 = vector.shape_cast %155 : vector<17xf32> to vector<17x1xf32>
    %cst_54 = arith.constant 1.280000e+02 : f32
    %157 = vector.broadcast %cst_54 : f32 to vector<17x1xf32>
    %158 = arith.divf %156, %157 : vector<17x1xf32>
    %159 = vector.broadcast %151 : vector<17x1xf32> to vector<17x128xf32>
    %160 = arith.subf %143, %159 : vector<17x128xf32>
    %cst_55 = arith.constant 9.99999997E-7 : f32
    %161 = vector.broadcast %cst_55 : f32 to vector<17x1xf32>
    %162 = arith.addf %158, %161 : vector<17x1xf32>
    %163 = math.rsqrt %162 : vector<17x1xf32>
    %164 = vector.broadcast %163 : vector<17x1xf32> to vector<17x128xf32>
    %165 = arith.mulf %160, %164 : vector<17x128xf32>
    %166 = vector.shape_cast %145 : vector<128xf32> to vector<1x128xf32>
    %167 = vector.broadcast %166 : vector<1x128xf32> to vector<17x128xf32>
    %168 = arith.mulf %165, %167 : vector<17x128xf32>
    %169 = vector.shape_cast %147 : vector<128xf32> to vector<1x128xf32>
    %170 = vector.broadcast %169 : vector<1x128xf32> to vector<17x128xf32>
    %171 = arith.addf %168, %170 : vector<17x128xf32>
    %172 = arith.truncf %171 : vector<17x128xf32> to vector<17x128xbf16>
    %c0_56 = arith.constant 0 : index
    %c0_57 = arith.constant 0 : index
    %c0_58 = arith.constant 0 : index
    %173 = vector.load %arg12[%c0_56, %c0_57, %c0_58] : memref<2x128x512xbf16, #tpu.memory_space<vmem>>, vector<1x128x512xbf16>
    %174 = vector.shape_cast %173 : vector<1x128x512xbf16> to vector<128x512xbf16>
    %cst_59 = arith.constant dense<0.000000e+00> : vector<17x512xf32>
    %175 = tpu.matmul %172, %174, %cst_59 {dimension_numbers = #tpu.dot_dimension_numbers<[1], [0], [0], [1], [0, 0, 1, 1], [], []>} : vector<17x128xbf16>, vector<128x512xbf16>, vector<17x512xf32> -> vector<17x512xf32>
    %c0_60 = arith.constant 0 : index
    %c0_61 = arith.constant 0 : index
    %176 = vector.load %arg13[%c0_60, %c0_61] : memref<2x512xf32, #tpu.memory_space<vmem>>, vector<1x512xf32>
    %177 = vector.shape_cast %176 : vector<1x512xf32> to vector<512xf32>
    %178 = vector.shape_cast %177 : vector<512xf32> to vector<1x512xf32>
    %179 = vector.broadcast %178 : vector<1x512xf32> to vector<17x512xf32>
    %180 = arith.addf %175, %179 : vector<17x512xf32>
    %cst_62 = arith.constant 5.000000e-01 : f32
    %181 = vector.broadcast %cst_62 : f32 to vector<17x512xf32>
    %182 = arith.mulf %181, %180 : vector<17x512xf32>
    %cst_63 = arith.constant 0.707106769 : f32
    %183 = vector.broadcast %cst_63 : f32 to vector<17x512xf32>
    %184 = arith.mulf %180, %183 : vector<17x512xf32>
    %cst_64 = arith.constant 0.000000e+00 : f32
    %185 = vector.broadcast %cst_64 : f32 to vector<17x512xf32>
    %186 = arith.cmpf oge, %184, %185 : vector<17x512xf32>
    %cst_65 = arith.constant 1.000000e+00 : f32
    %cst_66 = arith.constant -1.000000e+00 : f32
    %187 = vector.broadcast %cst_65 : f32 to vector<17x512xf32>
    %188 = vector.broadcast %cst_66 : f32 to vector<17x512xf32>
    %189 = arith.select %186, %187, %188 : vector<17x512xi1>, vector<17x512xf32>
    %190 = math.absf %184 : vector<17x512xf32>
    %cst_67 = arith.constant 0.327591091 : f32
    %191 = vector.broadcast %cst_67 : f32 to vector<17x512xf32>
    %192 = arith.mulf %191, %190 : vector<17x512xf32>
    %cst_68 = arith.constant 1.000000e+00 : f32
    %193 = vector.broadcast %cst_68 : f32 to vector<17x512xf32>
    %194 = arith.addf %193, %192 : vector<17x512xf32>
    %cst_69 = arith.constant 1.000000e+00 : f32
    %195 = vector.broadcast %cst_69 : f32 to vector<17x512xf32>
    %196 = arith.divf %195, %194 : vector<17x512xf32>
    %cst_70 = arith.constant 1.06140542 : f32
    %197 = vector.broadcast %cst_70 : f32 to vector<17x512xf32>
    %198 = arith.mulf %197, %196 : vector<17x512xf32>
    %cst_71 = arith.constant -1.45315206 : f32
    %199 = vector.broadcast %cst_71 : f32 to vector<17x512xf32>
    %200 = arith.addf %198, %199 : vector<17x512xf32>
    %201 = arith.mulf %200, %196 : vector<17x512xf32>
    %cst_72 = arith.constant 1.42141378 : f32
    %202 = vector.broadcast %cst_72 : f32 to vector<17x512xf32>
    %203 = arith.addf %201, %202 : vector<17x512xf32>
    %204 = arith.mulf %203, %196 : vector<17x512xf32>
    %cst_73 = arith.constant -0.284496725 : f32
    %205 = vector.broadcast %cst_73 : f32 to vector<17x512xf32>
    %206 = arith.addf %204, %205 : vector<17x512xf32>
    %207 = arith.mulf %206, %196 : vector<17x512xf32>
    %cst_74 = arith.constant 0.254829586 : f32
    %208 = vector.broadcast %cst_74 : f32 to vector<17x512xf32>
    %209 = arith.addf %207, %208 : vector<17x512xf32>
    %210 = arith.mulf %209, %196 : vector<17x512xf32>
    %cst_75 = arith.constant 0.000000e+00 : f32
    %211 = vector.broadcast %cst_75 : f32 to vector<17x512xf32>
    %212 = arith.subf %211, %190 : vector<17x512xf32>
    %213 = arith.mulf %212, %190 : vector<17x512xf32>
    %214 = math.exp %213 : vector<17x512xf32>
    %215 = arith.mulf %210, %214 : vector<17x512xf32>
    %cst_76 = arith.constant 1.000000e+00 : f32
    %216 = vector.broadcast %cst_76 : f32 to vector<17x512xf32>
    %217 = arith.subf %216, %215 : vector<17x512xf32>
    %218 = arith.mulf %189, %217 : vector<17x512xf32>
    %cst_77 = arith.constant 1.000000e+00 : f32
    %219 = vector.broadcast %cst_77 : f32 to vector<17x512xf32>
    %220 = arith.addf %219, %218 : vector<17x512xf32>
    %221 = arith.mulf %182, %220 : vector<17x512xf32>
    %222 = arith.truncf %221 : vector<17x512xf32> to vector<17x512xbf16>
    %c0_78 = arith.constant 0 : index
    %c0_79 = arith.constant 0 : index
    %c0_80 = arith.constant 0 : index
    %223 = vector.load %arg14[%c0_78, %c0_79, %c0_80] : memref<2x512x128xbf16, #tpu.memory_space<vmem>>, vector<1x512x128xbf16>
    %224 = vector.shape_cast %223 : vector<1x512x128xbf16> to vector<512x128xbf16>
    %cst_81 = arith.constant dense<0.000000e+00> : vector<17x128xf32>
    %225 = tpu.matmul %222, %224, %cst_81 {dimension_numbers = #tpu.dot_dimension_numbers<[1], [0], [0], [1], [0, 0, 1, 1], [], []>} : vector<17x512xbf16>, vector<512x128xbf16>, vector<17x128xf32> -> vector<17x128xf32>
    %c0_82 = arith.constant 0 : index
    %c0_83 = arith.constant 0 : index
    %226 = vector.load %arg15[%c0_82, %c0_83] : memref<2x128xf32, #tpu.memory_space<vmem>>, vector<1x128xf32>
    %227 = vector.shape_cast %226 : vector<1x128xf32> to vector<128xf32>
    %228 = vector.shape_cast %227 : vector<128xf32> to vector<1x128xf32>
    %229 = vector.broadcast %228 : vector<1x128xf32> to vector<17x128xf32>
    %230 = arith.addf %225, %229 : vector<17x128xf32>
    %231 = arith.addf %143, %230 : vector<17x128xf32>
    %c1 = arith.constant 1 : index
    %c0_84 = arith.constant 0 : index
    %232 = vector.load %arg4[%c1, %c0_84] : memref<2x128xf32, #tpu.memory_space<vmem>>, vector<1x128xf32>
    %233 = vector.shape_cast %232 : vector<1x128xf32> to vector<128xf32>
    %c1_85 = arith.constant 1 : index
    %c0_86 = arith.constant 0 : index
    %234 = vector.load %arg5[%c1_85, %c0_86] : memref<2x128xf32, #tpu.memory_space<vmem>>, vector<1x128xf32>
    %235 = vector.shape_cast %234 : vector<1x128xf32> to vector<128xf32>
    %cst_87 = arith.constant dense<0.000000e+00> : vector<17xf32>
    %236 = vector.multi_reduction <add>, %231, %cst_87 [1] : vector<17x128xf32> to vector<17xf32>
    %237 = vector.shape_cast %236 : vector<17xf32> to vector<17x1xf32>
    %cst_88 = arith.constant 1.280000e+02 : f32
    %238 = vector.broadcast %cst_88 : f32 to vector<17x1xf32>
    %239 = arith.divf %237, %238 : vector<17x1xf32>
    %240 = vector.broadcast %239 : vector<17x1xf32> to vector<17x128xf32>
    %241 = arith.subf %231, %240 : vector<17x128xf32>
    %242 = arith.mulf %241, %241 : vector<17x128xf32>
    %cst_89 = arith.constant dense<0.000000e+00> : vector<17xf32>
    %243 = vector.multi_reduction <add>, %242, %cst_89 [1] : vector<17x128xf32> to vector<17xf32>
    %244 = vector.shape_cast %243 : vector<17xf32> to vector<17x1xf32>
    %cst_90 = arith.constant 1.280000e+02 : f32
    %245 = vector.broadcast %cst_90 : f32 to vector<17x1xf32>
    %246 = arith.divf %244, %245 : vector<17x1xf32>
    %247 = vector.broadcast %239 : vector<17x1xf32> to vector<17x128xf32>
    %248 = arith.subf %231, %247 : vector<17x128xf32>
    %cst_91 = arith.constant 9.99999997E-7 : f32
    %249 = vector.broadcast %cst_91 : f32 to vector<17x1xf32>
    %250 = arith.addf %246, %249 : vector<17x1xf32>
    %251 = math.rsqrt %250 : vector<17x1xf32>
    %252 = vector.broadcast %251 : vector<17x1xf32> to vector<17x128xf32>
    %253 = arith.mulf %248, %252 : vector<17x128xf32>
    %254 = vector.shape_cast %233 : vector<128xf32> to vector<1x128xf32>
    %255 = vector.broadcast %254 : vector<1x128xf32> to vector<17x128xf32>
    %256 = arith.mulf %253, %255 : vector<17x128xf32>
    %257 = vector.shape_cast %235 : vector<128xf32> to vector<1x128xf32>
    %258 = vector.broadcast %257 : vector<1x128xf32> to vector<17x128xf32>
    %259 = arith.addf %256, %258 : vector<17x128xf32>
    %260 = arith.truncf %259 : vector<17x128xf32> to vector<17x128xbf16>
    %c1_92 = arith.constant 1 : index
    %c0_93 = arith.constant 0 : index
    %c0_94 = arith.constant 0 : index
    %261 = vector.load %arg6[%c1_92, %c0_93, %c0_94] : memref<2x128x384xbf16, #tpu.memory_space<vmem>>, vector<1x128x384xbf16>
    %262 = vector.shape_cast %261 : vector<1x128x384xbf16> to vector<128x384xbf16>
    %cst_95 = arith.constant dense<0.000000e+00> : vector<17x384xf32>
    %263 = tpu.matmul %260, %262, %cst_95 {dimension_numbers = #tpu.dot_dimension_numbers<[1], [0], [0], [1], [0, 0, 1, 1], [], []>} : vector<17x128xbf16>, vector<128x384xbf16>, vector<17x384xf32> -> vector<17x384xf32>
    %c1_96 = arith.constant 1 : index
    %c0_97 = arith.constant 0 : index
    %264 = vector.load %arg7[%c1_96, %c0_97] : memref<2x384xf32, #tpu.memory_space<vmem>>, vector<1x384xf32>
    %265 = vector.shape_cast %264 : vector<1x384xf32> to vector<384xf32>
    %266 = vector.shape_cast %265 : vector<384xf32> to vector<1x384xf32>
    %267 = vector.broadcast %266 : vector<1x384xf32> to vector<17x384xf32>
    %268 = arith.addf %263, %267 : vector<17x384xf32>
    %c1_98 = arith.constant 1 : index
    %c0_99 = arith.constant 0 : index
    %c0_100 = arith.constant 0 : index
    %269 = vector.load %arg8[%c1_98, %c0_99, %c0_100] : memref<2x128x128xbf16, #tpu.memory_space<vmem>>, vector<1x128x128xbf16>
    %270 = vector.shape_cast %269 : vector<1x128x128xbf16> to vector<128x128xbf16>
    %cst_101 = arith.constant 0.000000e+00 : f32
    %271 = vector.broadcast %cst_101 : f32 to vector<17x128xf32>
    %272 = vector.extract_strided_slice %268 {offsets = [0, 0], sizes = [17, 32], strides = [1, 1]} : vector<17x384xf32> to vector<17x32xf32>
    %273 = arith.truncf %272 : vector<17x32xf32> to vector<17x32xbf16>
    %274 = vector.extract_strided_slice %268 {offsets = [0, 128], sizes = [17, 32], strides = [1, 1]} : vector<17x384xf32> to vector<17x32xf32>
    %275 = arith.truncf %274 : vector<17x32xf32> to vector<17x32xbf16>
    %276 = vector.extract_strided_slice %268 {offsets = [0, 256], sizes = [17, 32], strides = [1, 1]} : vector<17x384xf32> to vector<17x32xf32>
    %277 = arith.truncf %276 : vector<17x32xf32> to vector<17x32xbf16>
    %cst_102 = arith.constant dense<0.000000e+00> : vector<17x17xf32>
    %278 = tpu.matmul %273, %275, %cst_102 {dimension_numbers = #tpu.dot_dimension_numbers<[1], [1], [0], [0], [0, 0, 1, 0], [], []>} : vector<17x32xbf16>, vector<17x32xbf16>, vector<17x17xf32> -> vector<17x17xf32>
    %cst_103 = arith.constant dense<0xFF800000> : vector<17xf32>
    %279 = vector.multi_reduction <maximumf>, %278, %cst_103 [1] : vector<17x17xf32> to vector<17xf32>
    %280 = vector.shape_cast %279 : vector<17xf32> to vector<17x1xf32>
    %281 = vector.broadcast %280 : vector<17x1xf32> to vector<17x17xf32>
    %282 = arith.subf %278, %281 : vector<17x17xf32>
    %283 = math.exp %282 : vector<17x17xf32>
    %cst_104 = arith.constant dense<0.000000e+00> : vector<17xf32>
    %284 = vector.multi_reduction <add>, %283, %cst_104 [1] : vector<17x17xf32> to vector<17xf32>
    %285 = vector.shape_cast %284 : vector<17xf32> to vector<17x1xf32>
    %286 = tpu.reciprocal %285 {approx = true} : vector<17x1xf32> -> vector<17x1xf32>
    %287 = vector.broadcast %286 : vector<17x1xf32> to vector<17x17xf32>
    %288 = arith.mulf %283, %287 : vector<17x17xf32>
    %289 = arith.truncf %288 : vector<17x17xf32> to vector<17x17xbf16>
    %cst_105 = arith.constant dense<0.000000e+00> : vector<17x32xf32>
    %290 = tpu.matmul %289, %277, %cst_105 {dimension_numbers = #tpu.dot_dimension_numbers<[1], [0], [0], [1], [0, 0, 1, 1], [], []>} : vector<17x17xbf16>, vector<17x32xbf16>, vector<17x32xf32> -> vector<17x32xf32>
    %291 = arith.truncf %290 : vector<17x32xf32> to vector<17x32xbf16>
    %292 = vector.extract_strided_slice %270 {offsets = [0, 0], sizes = [32, 128], strides = [1, 1]} : vector<128x128xbf16> to vector<32x128xbf16>
    %cst_106 = arith.constant dense<0.000000e+00> : vector<17x128xf32>
    %293 = tpu.matmul %291, %292, %cst_106 {dimension_numbers = #tpu.dot_dimension_numbers<[1], [0], [0], [1], [0, 0, 1, 1], [], []>} : vector<17x32xbf16>, vector<32x128xbf16>, vector<17x128xf32> -> vector<17x128xf32>
    %294 = arith.addf %271, %293 : vector<17x128xf32>
    %295 = vector.extract_strided_slice %268 {offsets = [0, 32], sizes = [17, 32], strides = [1, 1]} : vector<17x384xf32> to vector<17x32xf32>
    %296 = arith.truncf %295 : vector<17x32xf32> to vector<17x32xbf16>
    %297 = vector.extract_strided_slice %268 {offsets = [0, 160], sizes = [17, 32], strides = [1, 1]} : vector<17x384xf32> to vector<17x32xf32>
    %298 = arith.truncf %297 : vector<17x32xf32> to vector<17x32xbf16>
    %299 = vector.extract_strided_slice %268 {offsets = [0, 288], sizes = [17, 32], strides = [1, 1]} : vector<17x384xf32> to vector<17x32xf32>
    %300 = arith.truncf %299 : vector<17x32xf32> to vector<17x32xbf16>
    %cst_107 = arith.constant dense<0.000000e+00> : vector<17x17xf32>
    %301 = tpu.matmul %296, %298, %cst_107 {dimension_numbers = #tpu.dot_dimension_numbers<[1], [1], [0], [0], [0, 0, 1, 0], [], []>} : vector<17x32xbf16>, vector<17x32xbf16>, vector<17x17xf32> -> vector<17x17xf32>
    %cst_108 = arith.constant dense<0xFF800000> : vector<17xf32>
    %302 = vector.multi_reduction <maximumf>, %301, %cst_108 [1] : vector<17x17xf32> to vector<17xf32>
    %303 = vector.shape_cast %302 : vector<17xf32> to vector<17x1xf32>
    %304 = vector.broadcast %303 : vector<17x1xf32> to vector<17x17xf32>
    %305 = arith.subf %301, %304 : vector<17x17xf32>
    %306 = math.exp %305 : vector<17x17xf32>
    %cst_109 = arith.constant dense<0.000000e+00> : vector<17xf32>
    %307 = vector.multi_reduction <add>, %306, %cst_109 [1] : vector<17x17xf32> to vector<17xf32>
    %308 = vector.shape_cast %307 : vector<17xf32> to vector<17x1xf32>
    %309 = tpu.reciprocal %308 {approx = true} : vector<17x1xf32> -> vector<17x1xf32>
    %310 = vector.broadcast %309 : vector<17x1xf32> to vector<17x17xf32>
    %311 = arith.mulf %306, %310 : vector<17x17xf32>
    %312 = arith.truncf %311 : vector<17x17xf32> to vector<17x17xbf16>
    %cst_110 = arith.constant dense<0.000000e+00> : vector<17x32xf32>
    %313 = tpu.matmul %312, %300, %cst_110 {dimension_numbers = #tpu.dot_dimension_numbers<[1], [0], [0], [1], [0, 0, 1, 1], [], []>} : vector<17x17xbf16>, vector<17x32xbf16>, vector<17x32xf32> -> vector<17x32xf32>
    %314 = arith.truncf %313 : vector<17x32xf32> to vector<17x32xbf16>
    %315 = vector.extract_strided_slice %270 {offsets = [32, 0], sizes = [32, 128], strides = [1, 1]} : vector<128x128xbf16> to vector<32x128xbf16>
    %cst_111 = arith.constant dense<0.000000e+00> : vector<17x128xf32>
    %316 = tpu.matmul %314, %315, %cst_111 {dimension_numbers = #tpu.dot_dimension_numbers<[1], [0], [0], [1], [0, 0, 1, 1], [], []>} : vector<17x32xbf16>, vector<32x128xbf16>, vector<17x128xf32> -> vector<17x128xf32>
    %317 = arith.addf %294, %316 : vector<17x128xf32>
    %318 = vector.extract_strided_slice %268 {offsets = [0, 64], sizes = [17, 32], strides = [1, 1]} : vector<17x384xf32> to vector<17x32xf32>
    %319 = arith.truncf %318 : vector<17x32xf32> to vector<17x32xbf16>
    %320 = vector.extract_strided_slice %268 {offsets = [0, 192], sizes = [17, 32], strides = [1, 1]} : vector<17x384xf32> to vector<17x32xf32>
    %321 = arith.truncf %320 : vector<17x32xf32> to vector<17x32xbf16>
    %322 = vector.extract_strided_slice %268 {offsets = [0, 320], sizes = [17, 32], strides = [1, 1]} : vector<17x384xf32> to vector<17x32xf32>
    %323 = arith.truncf %322 : vector<17x32xf32> to vector<17x32xbf16>
    %cst_112 = arith.constant dense<0.000000e+00> : vector<17x17xf32>
    %324 = tpu.matmul %319, %321, %cst_112 {dimension_numbers = #tpu.dot_dimension_numbers<[1], [1], [0], [0], [0, 0, 1, 0], [], []>} : vector<17x32xbf16>, vector<17x32xbf16>, vector<17x17xf32> -> vector<17x17xf32>
    %cst_113 = arith.constant dense<0xFF800000> : vector<17xf32>
    %325 = vector.multi_reduction <maximumf>, %324, %cst_113 [1] : vector<17x17xf32> to vector<17xf32>
    %326 = vector.shape_cast %325 : vector<17xf32> to vector<17x1xf32>
    %327 = vector.broadcast %326 : vector<17x1xf32> to vector<17x17xf32>
    %328 = arith.subf %324, %327 : vector<17x17xf32>
    %329 = math.exp %328 : vector<17x17xf32>
    %cst_114 = arith.constant dense<0.000000e+00> : vector<17xf32>
    %330 = vector.multi_reduction <add>, %329, %cst_114 [1] : vector<17x17xf32> to vector<17xf32>
    %331 = vector.shape_cast %330 : vector<17xf32> to vector<17x1xf32>
    %332 = tpu.reciprocal %331 {approx = true} : vector<17x1xf32> -> vector<17x1xf32>
    %333 = vector.broadcast %332 : vector<17x1xf32> to vector<17x17xf32>
    %334 = arith.mulf %329, %333 : vector<17x17xf32>
    %335 = arith.truncf %334 : vector<17x17xf32> to vector<17x17xbf16>
    %cst_115 = arith.constant dense<0.000000e+00> : vector<17x32xf32>
    %336 = tpu.matmul %335, %323, %cst_115 {dimension_numbers = #tpu.dot_dimension_numbers<[1], [0], [0], [1], [0, 0, 1, 1], [], []>} : vector<17x17xbf16>, vector<17x32xbf16>, vector<17x32xf32> -> vector<17x32xf32>
    %337 = arith.truncf %336 : vector<17x32xf32> to vector<17x32xbf16>
    %338 = vector.extract_strided_slice %270 {offsets = [64, 0], sizes = [32, 128], strides = [1, 1]} : vector<128x128xbf16> to vector<32x128xbf16>
    %cst_116 = arith.constant dense<0.000000e+00> : vector<17x128xf32>
    %339 = tpu.matmul %337, %338, %cst_116 {dimension_numbers = #tpu.dot_dimension_numbers<[1], [0], [0], [1], [0, 0, 1, 1], [], []>} : vector<17x32xbf16>, vector<32x128xbf16>, vector<17x128xf32> -> vector<17x128xf32>
    %340 = arith.addf %317, %339 : vector<17x128xf32>
    %341 = vector.extract_strided_slice %268 {offsets = [0, 96], sizes = [17, 32], strides = [1, 1]} : vector<17x384xf32> to vector<17x32xf32>
    %342 = arith.truncf %341 : vector<17x32xf32> to vector<17x32xbf16>
    %343 = vector.extract_strided_slice %268 {offsets = [0, 224], sizes = [17, 32], strides = [1, 1]} : vector<17x384xf32> to vector<17x32xf32>
    %344 = arith.truncf %343 : vector<17x32xf32> to vector<17x32xbf16>
    %345 = vector.extract_strided_slice %268 {offsets = [0, 352], sizes = [17, 32], strides = [1, 1]} : vector<17x384xf32> to vector<17x32xf32>
    %346 = arith.truncf %345 : vector<17x32xf32> to vector<17x32xbf16>
    %cst_117 = arith.constant dense<0.000000e+00> : vector<17x17xf32>
    %347 = tpu.matmul %342, %344, %cst_117 {dimension_numbers = #tpu.dot_dimension_numbers<[1], [1], [0], [0], [0, 0, 1, 0], [], []>} : vector<17x32xbf16>, vector<17x32xbf16>, vector<17x17xf32> -> vector<17x17xf32>
    %cst_118 = arith.constant dense<0xFF800000> : vector<17xf32>
    %348 = vector.multi_reduction <maximumf>, %347, %cst_118 [1] : vector<17x17xf32> to vector<17xf32>
    %349 = vector.shape_cast %348 : vector<17xf32> to vector<17x1xf32>
    %350 = vector.broadcast %349 : vector<17x1xf32> to vector<17x17xf32>
    %351 = arith.subf %347, %350 : vector<17x17xf32>
    %352 = math.exp %351 : vector<17x17xf32>
    %cst_119 = arith.constant dense<0.000000e+00> : vector<17xf32>
    %353 = vector.multi_reduction <add>, %352, %cst_119 [1] : vector<17x17xf32> to vector<17xf32>
    %354 = vector.shape_cast %353 : vector<17xf32> to vector<17x1xf32>
    %355 = tpu.reciprocal %354 {approx = true} : vector<17x1xf32> -> vector<17x1xf32>
    %356 = vector.broadcast %355 : vector<17x1xf32> to vector<17x17xf32>
    %357 = arith.mulf %352, %356 : vector<17x17xf32>
    %358 = arith.truncf %357 : vector<17x17xf32> to vector<17x17xbf16>
    %cst_120 = arith.constant dense<0.000000e+00> : vector<17x32xf32>
    %359 = tpu.matmul %358, %346, %cst_120 {dimension_numbers = #tpu.dot_dimension_numbers<[1], [0], [0], [1], [0, 0, 1, 1], [], []>} : vector<17x17xbf16>, vector<17x32xbf16>, vector<17x32xf32> -> vector<17x32xf32>
    %360 = arith.truncf %359 : vector<17x32xf32> to vector<17x32xbf16>
    %361 = vector.extract_strided_slice %270 {offsets = [96, 0], sizes = [32, 128], strides = [1, 1]} : vector<128x128xbf16> to vector<32x128xbf16>
    %cst_121 = arith.constant dense<0.000000e+00> : vector<17x128xf32>
    %362 = tpu.matmul %360, %361, %cst_121 {dimension_numbers = #tpu.dot_dimension_numbers<[1], [0], [0], [1], [0, 0, 1, 1], [], []>} : vector<17x32xbf16>, vector<32x128xbf16>, vector<17x128xf32> -> vector<17x128xf32>
    %363 = arith.addf %340, %362 : vector<17x128xf32>
    %364 = arith.addf %231, %363 : vector<17x128xf32>
    %c1_122 = arith.constant 1 : index
    %c0_123 = arith.constant 0 : index
    %365 = vector.load %arg9[%c1_122, %c0_123] : memref<2x128xf32, #tpu.memory_space<vmem>>, vector<1x128xf32>
    %366 = vector.shape_cast %365 : vector<1x128xf32> to vector<128xf32>
    %367 = vector.shape_cast %366 : vector<128xf32> to vector<1x128xf32>
    %368 = vector.broadcast %367 : vector<1x128xf32> to vector<17x128xf32>
    %369 = arith.addf %364, %368 : vector<17x128xf32>
    %c1_124 = arith.constant 1 : index
    %c0_125 = arith.constant 0 : index
    %370 = vector.load %arg10[%c1_124, %c0_125] : memref<2x128xf32, #tpu.memory_space<vmem>>, vector<1x128xf32>
    %371 = vector.shape_cast %370 : vector<1x128xf32> to vector<128xf32>
    %c1_126 = arith.constant 1 : index
    %c0_127 = arith.constant 0 : index
    %372 = vector.load %arg11[%c1_126, %c0_127] : memref<2x128xf32, #tpu.memory_space<vmem>>, vector<1x128xf32>
    %373 = vector.shape_cast %372 : vector<1x128xf32> to vector<128xf32>
    %cst_128 = arith.constant dense<0.000000e+00> : vector<17xf32>
    %374 = vector.multi_reduction <add>, %369, %cst_128 [1] : vector<17x128xf32> to vector<17xf32>
    %375 = vector.shape_cast %374 : vector<17xf32> to vector<17x1xf32>
    %cst_129 = arith.constant 1.280000e+02 : f32
    %376 = vector.broadcast %cst_129 : f32 to vector<17x1xf32>
    %377 = arith.divf %375, %376 : vector<17x1xf32>
    %378 = vector.broadcast %377 : vector<17x1xf32> to vector<17x128xf32>
    %379 = arith.subf %369, %378 : vector<17x128xf32>
    %380 = arith.mulf %379, %379 : vector<17x128xf32>
    %cst_130 = arith.constant dense<0.000000e+00> : vector<17xf32>
    %381 = vector.multi_reduction <add>, %380, %cst_130 [1] : vector<17x128xf32> to vector<17xf32>
    %382 = vector.shape_cast %381 : vector<17xf32> to vector<17x1xf32>
    %cst_131 = arith.constant 1.280000e+02 : f32
    %383 = vector.broadcast %cst_131 : f32 to vector<17x1xf32>
    %384 = arith.divf %382, %383 : vector<17x1xf32>
    %385 = vector.broadcast %377 : vector<17x1xf32> to vector<17x128xf32>
    %386 = arith.subf %369, %385 : vector<17x128xf32>
    %cst_132 = arith.constant 9.99999997E-7 : f32
    %387 = vector.broadcast %cst_132 : f32 to vector<17x1xf32>
    %388 = arith.addf %384, %387 : vector<17x1xf32>
    %389 = math.rsqrt %388 : vector<17x1xf32>
    %390 = vector.broadcast %389 : vector<17x1xf32> to vector<17x128xf32>
    %391 = arith.mulf %386, %390 : vector<17x128xf32>
    %392 = vector.shape_cast %371 : vector<128xf32> to vector<1x128xf32>
    %393 = vector.broadcast %392 : vector<1x128xf32> to vector<17x128xf32>
    %394 = arith.mulf %391, %393 : vector<17x128xf32>
    %395 = vector.shape_cast %373 : vector<128xf32> to vector<1x128xf32>
    %396 = vector.broadcast %395 : vector<1x128xf32> to vector<17x128xf32>
    %397 = arith.addf %394, %396 : vector<17x128xf32>
    %398 = arith.truncf %397 : vector<17x128xf32> to vector<17x128xbf16>
    %c1_133 = arith.constant 1 : index
    %c0_134 = arith.constant 0 : index
    %c0_135 = arith.constant 0 : index
    %399 = vector.load %arg12[%c1_133, %c0_134, %c0_135] : memref<2x128x512xbf16, #tpu.memory_space<vmem>>, vector<1x128x512xbf16>
    %400 = vector.shape_cast %399 : vector<1x128x512xbf16> to vector<128x512xbf16>
    %cst_136 = arith.constant dense<0.000000e+00> : vector<17x512xf32>
    %401 = tpu.matmul %398, %400, %cst_136 {dimension_numbers = #tpu.dot_dimension_numbers<[1], [0], [0], [1], [0, 0, 1, 1], [], []>} : vector<17x128xbf16>, vector<128x512xbf16>, vector<17x512xf32> -> vector<17x512xf32>
    %c1_137 = arith.constant 1 : index
    %c0_138 = arith.constant 0 : index
    %402 = vector.load %arg13[%c1_137, %c0_138] : memref<2x512xf32, #tpu.memory_space<vmem>>, vector<1x512xf32>
    %403 = vector.shape_cast %402 : vector<1x512xf32> to vector<512xf32>
    %404 = vector.shape_cast %403 : vector<512xf32> to vector<1x512xf32>
    %405 = vector.broadcast %404 : vector<1x512xf32> to vector<17x512xf32>
    %406 = arith.addf %401, %405 : vector<17x512xf32>
    %cst_139 = arith.constant 5.000000e-01 : f32
    %407 = vector.broadcast %cst_139 : f32 to vector<17x512xf32>
    %408 = arith.mulf %407, %406 : vector<17x512xf32>
    %cst_140 = arith.constant 0.707106769 : f32
    %409 = vector.broadcast %cst_140 : f32 to vector<17x512xf32>
    %410 = arith.mulf %406, %409 : vector<17x512xf32>
    %cst_141 = arith.constant 0.000000e+00 : f32
    %411 = vector.broadcast %cst_141 : f32 to vector<17x512xf32>
    %412 = arith.cmpf oge, %410, %411 : vector<17x512xf32>
    %cst_142 = arith.constant 1.000000e+00 : f32
    %cst_143 = arith.constant -1.000000e+00 : f32
    %413 = vector.broadcast %cst_142 : f32 to vector<17x512xf32>
    %414 = vector.broadcast %cst_143 : f32 to vector<17x512xf32>
    %415 = arith.select %412, %413, %414 : vector<17x512xi1>, vector<17x512xf32>
    %416 = math.absf %410 : vector<17x512xf32>
    %cst_144 = arith.constant 0.327591091 : f32
    %417 = vector.broadcast %cst_144 : f32 to vector<17x512xf32>
    %418 = arith.mulf %417, %416 : vector<17x512xf32>
    %cst_145 = arith.constant 1.000000e+00 : f32
    %419 = vector.broadcast %cst_145 : f32 to vector<17x512xf32>
    %420 = arith.addf %419, %418 : vector<17x512xf32>
    %cst_146 = arith.constant 1.000000e+00 : f32
    %421 = vector.broadcast %cst_146 : f32 to vector<17x512xf32>
    %422 = arith.divf %421, %420 : vector<17x512xf32>
    %cst_147 = arith.constant 1.06140542 : f32
    %423 = vector.broadcast %cst_147 : f32 to vector<17x512xf32>
    %424 = arith.mulf %423, %422 : vector<17x512xf32>
    %cst_148 = arith.constant -1.45315206 : f32
    %425 = vector.broadcast %cst_148 : f32 to vector<17x512xf32>
    %426 = arith.addf %424, %425 : vector<17x512xf32>
    %427 = arith.mulf %426, %422 : vector<17x512xf32>
    %cst_149 = arith.constant 1.42141378 : f32
    %428 = vector.broadcast %cst_149 : f32 to vector<17x512xf32>
    %429 = arith.addf %427, %428 : vector<17x512xf32>
    %430 = arith.mulf %429, %422 : vector<17x512xf32>
    %cst_150 = arith.constant -0.284496725 : f32
    %431 = vector.broadcast %cst_150 : f32 to vector<17x512xf32>
    %432 = arith.addf %430, %431 : vector<17x512xf32>
    %433 = arith.mulf %432, %422 : vector<17x512xf32>
    %cst_151 = arith.constant 0.254829586 : f32
    %434 = vector.broadcast %cst_151 : f32 to vector<17x512xf32>
    %435 = arith.addf %433, %434 : vector<17x512xf32>
    %436 = arith.mulf %435, %422 : vector<17x512xf32>
    %cst_152 = arith.constant 0.000000e+00 : f32
    %437 = vector.broadcast %cst_152 : f32 to vector<17x512xf32>
    %438 = arith.subf %437, %416 : vector<17x512xf32>
    %439 = arith.mulf %438, %416 : vector<17x512xf32>
    %440 = math.exp %439 : vector<17x512xf32>
    %441 = arith.mulf %436, %440 : vector<17x512xf32>
    %cst_153 = arith.constant 1.000000e+00 : f32
    %442 = vector.broadcast %cst_153 : f32 to vector<17x512xf32>
    %443 = arith.subf %442, %441 : vector<17x512xf32>
    %444 = arith.mulf %415, %443 : vector<17x512xf32>
    %cst_154 = arith.constant 1.000000e+00 : f32
    %445 = vector.broadcast %cst_154 : f32 to vector<17x512xf32>
    %446 = arith.addf %445, %444 : vector<17x512xf32>
    %447 = arith.mulf %408, %446 : vector<17x512xf32>
    %448 = arith.truncf %447 : vector<17x512xf32> to vector<17x512xbf16>
    %c1_155 = arith.constant 1 : index
    %c0_156 = arith.constant 0 : index
    %c0_157 = arith.constant 0 : index
    %449 = vector.load %arg14[%c1_155, %c0_156, %c0_157] : memref<2x512x128xbf16, #tpu.memory_space<vmem>>, vector<1x512x128xbf16>
    %450 = vector.shape_cast %449 : vector<1x512x128xbf16> to vector<512x128xbf16>
    %cst_158 = arith.constant dense<0.000000e+00> : vector<17x128xf32>
    %451 = tpu.matmul %448, %450, %cst_158 {dimension_numbers = #tpu.dot_dimension_numbers<[1], [0], [0], [1], [0, 0, 1, 1], [], []>} : vector<17x512xbf16>, vector<512x128xbf16>, vector<17x128xf32> -> vector<17x128xf32>
    %c1_159 = arith.constant 1 : index
    %c0_160 = arith.constant 0 : index
    %452 = vector.load %arg15[%c1_159, %c0_160] : memref<2x128xf32, #tpu.memory_space<vmem>>, vector<1x128xf32>
    %453 = vector.shape_cast %452 : vector<1x128xf32> to vector<128xf32>
    %454 = vector.shape_cast %453 : vector<128xf32> to vector<1x128xf32>
    %455 = vector.broadcast %454 : vector<1x128xf32> to vector<17x128xf32>
    %456 = arith.addf %451, %455 : vector<17x128xf32>
    %457 = arith.addf %369, %456 : vector<17x128xf32>
    %c0_161 = arith.constant 0 : index
    %c0_162 = arith.constant 0 : index
    %458 = vector.load %arg16[%c0_161, %c0_162] : memref<1x128xf32, #tpu.memory_space<vmem>>, vector<1x128xf32>
    %c0_163 = arith.constant 0 : index
    %c0_164 = arith.constant 0 : index
    %459 = vector.load %arg17[%c0_163, %c0_164] : memref<1x128xf32, #tpu.memory_space<vmem>>, vector<1x128xf32>
    %cst_165 = arith.constant dense<0.000000e+00> : vector<17xf32>
    %460 = vector.multi_reduction <add>, %457, %cst_165 [1] : vector<17x128xf32> to vector<17xf32>
    %461 = vector.shape_cast %460 : vector<17xf32> to vector<17x1xf32>
    %cst_166 = arith.constant 1.280000e+02 : f32
    %462 = vector.broadcast %cst_166 : f32 to vector<17x1xf32>
    %463 = arith.divf %461, %462 : vector<17x1xf32>
    %464 = vector.broadcast %463 : vector<17x1xf32> to vector<17x128xf32>
    %465 = arith.subf %457, %464 : vector<17x128xf32>
    %466 = arith.mulf %465, %465 : vector<17x128xf32>
    %cst_167 = arith.constant dense<0.000000e+00> : vector<17xf32>
    %467 = vector.multi_reduction <add>, %466, %cst_167 [1] : vector<17x128xf32> to vector<17xf32>
    %468 = vector.shape_cast %467 : vector<17xf32> to vector<17x1xf32>
    %cst_168 = arith.constant 1.280000e+02 : f32
    %469 = vector.broadcast %cst_168 : f32 to vector<17x1xf32>
    %470 = arith.divf %468, %469 : vector<17x1xf32>
    %471 = vector.broadcast %463 : vector<17x1xf32> to vector<17x128xf32>
    %472 = arith.subf %457, %471 : vector<17x128xf32>
    %cst_169 = arith.constant 9.99999974E-6 : f32
    %473 = vector.broadcast %cst_169 : f32 to vector<17x1xf32>
    %474 = arith.addf %470, %473 : vector<17x1xf32>
    %475 = math.rsqrt %474 : vector<17x1xf32>
    %476 = vector.broadcast %475 : vector<17x1xf32> to vector<17x128xf32>
    %477 = arith.mulf %472, %476 : vector<17x128xf32>
    %478 = vector.broadcast %458 : vector<1x128xf32> to vector<17x128xf32>
    %479 = arith.mulf %477, %478 : vector<17x128xf32>
    %480 = vector.broadcast %459 : vector<1x128xf32> to vector<17x128xf32>
    %481 = arith.addf %479, %480 : vector<17x128xf32>
    %482 = vector.extract_strided_slice %481 {offsets = [2, 0], sizes = [15, 128], strides = [1, 1]} : vector<17x128xf32> to vector<15x128xf32>
    %cst_170 = arith.constant dense<0.000000e+00> : vector<128xf32>
    %483 = vector.multi_reduction <add>, %482, %cst_170 [0] : vector<15x128xf32> to vector<128xf32>
    %484 = vector.shape_cast %483 : vector<128xf32> to vector<1x128xf32>
    %cst_171 = arith.constant 1.500000e+01 : f32
    %485 = vector.broadcast %cst_171 : f32 to vector<1x128xf32>
    %486 = arith.divf %484, %485 : vector<1x128xf32>
    %487 = arith.truncf %486 : vector<1x128xf32> to vector<1x128xbf16>
    %c0_172 = arith.constant 0 : index
    %c0_173 = arith.constant 0 : index
    %488 = vector.load %arg18[%c0_172, %c0_173] : memref<128x128xbf16, #tpu.memory_space<vmem>>, vector<128x128xbf16>
    %cst_174 = arith.constant dense<0.000000e+00> : vector<1x128xf32>
    %489 = tpu.matmul %487, %488, %cst_174 {dimension_numbers = #tpu.dot_dimension_numbers<[1], [0], [0], [1], [0, 0, 1, 1], [], []>} : vector<1x128xbf16>, vector<128x128xbf16>, vector<1x128xf32> -> vector<1x128xf32>
    %c0_175 = arith.constant 0 : index
    %c0_176 = arith.constant 0 : index
    %490 = vector.load %arg19[%c0_175, %c0_176] : memref<1x128xf32, #tpu.memory_space<vmem>>, vector<1x128xf32>
    %491 = arith.addf %489, %490 : vector<1x128xf32>
    %c0_177 = arith.constant 0 : index
    %c0_178 = arith.constant 0 : index
    %c0_179 = arith.constant 0 : index
    %492 = vector.load %arg20[%c0_177, %c0_178, %c0_179] : memref<1x1x128xf32, #tpu.memory_space<vmem>>, vector<1x1x128xf32>
    %493 = vector.shape_cast %492 : vector<1x1x128xf32> to vector<1x128xf32>
    %494 = vector.shape_cast %491 : vector<1x128xf32> to vector<1x1x128xf32>
    tpu.vector_store %arg20[%c0_177, %c0_178, %c0_179], %494 {strides = array<i32>} : memref<1x1x128xf32, #tpu.memory_space<vmem>>, vector<1x1x128xf32>,
    return
  }
  func.func @transform_0(%arg0: i32) -> (i32, i32, i32) {
    %c0_i32 = arith.constant 0 : i32
    %c0_i32_0 = arith.constant 0 : i32
    %c0_i32_1 = arith.constant 0 : i32
    return %arg0, %c0_i32, %c0_i32_0 : i32, i32, i32
  }
  func.func @transform_1(%arg0: i32) -> (i32, i32) {
    %c0_i32 = arith.constant 0 : i32
    %c0_i32_0 = arith.constant 0 : i32
    %c0_i32_1 = arith.constant 0 : i32
    return %c0_i32, %c0_i32_0 : i32, i32
  }
  func.func @transform_2(%arg0: i32) -> (i32, i32) {
    %c0_i32 = arith.constant 0 : i32
    %c0_i32_0 = arith.constant 0 : i32
    %c0_i32_1 = arith.constant 0 : i32
    return %c0_i32, %c0_i32_0 : i32, i32
  }
  func.func @transform_3(%arg0: i32) -> (i32, i32) {
    %c0_i32 = arith.constant 0 : i32
    %c0_i32_0 = arith.constant 0 : i32
    %c0_i32_1 = arith.constant 0 : i32
    return %c0_i32, %c0_i32_0 : i32, i32
  }
  func.func @transform_4(%arg0: i32) -> (i32, i32) {
    %c0_i32 = arith.constant 0 : i32
    %c0_i32_0 = arith.constant 0 : i32
    %c0_i32_1 = arith.constant 0 : i32
    return %c0_i32, %c0_i32_0 : i32, i32
  }
  func.func @transform_5(%arg0: i32) -> (i32, i32, i32) {
    %c0_i32 = arith.constant 0 : i32
    %c0_i32_0 = arith.constant 0 : i32
    %c0_i32_1 = arith.constant 0 : i32
    %c0_i32_2 = arith.constant 0 : i32
    return %c0_i32, %c0_i32_0, %c0_i32_1 : i32, i32, i32
  }
  func.func @transform_6(%arg0: i32) -> (i32, i32) {
    %c0_i32 = arith.constant 0 : i32
    %c0_i32_0 = arith.constant 0 : i32
    %c0_i32_1 = arith.constant 0 : i32
    return %c0_i32, %c0_i32_0 : i32, i32
  }
  func.func @transform_7(%arg0: i32) -> (i32, i32, i32) {
    %c0_i32 = arith.constant 0 : i32
    %c0_i32_0 = arith.constant 0 : i32
    %c0_i32_1 = arith.constant 0 : i32
    %c0_i32_2 = arith.constant 0 : i32
    return %c0_i32, %c0_i32_0, %c0_i32_1 : i32, i32, i32
  }
  func.func @transform_8(%arg0: i32) -> (i32, i32) {
    %c0_i32 = arith.constant 0 : i32
    %c0_i32_0 = arith.constant 0 : i32
    %c0_i32_1 = arith.constant 0 : i32
    return %c0_i32, %c0_i32_0 : i32, i32
  }
  func.func @transform_9(%arg0: i32) -> (i32, i32) {
    %c0_i32 = arith.constant 0 : i32
    %c0_i32_0 = arith.constant 0 : i32
    %c0_i32_1 = arith.constant 0 : i32
    return %c0_i32, %c0_i32_0 : i32, i32
  }
  func.func @transform_10(%arg0: i32) -> (i32, i32) {
    %c0_i32 = arith.constant 0 : i32
    %c0_i32_0 = arith.constant 0 : i32
    %c0_i32_1 = arith.constant 0 : i32
    return %c0_i32, %c0_i32_0 : i32, i32
  }
  func.func @transform_11(%arg0: i32) -> (i32, i32, i32) {
    %c0_i32 = arith.constant 0 : i32
    %c0_i32_0 = arith.constant 0 : i32
    %c0_i32_1 = arith.constant 0 : i32
    %c0_i32_2 = arith.constant 0 : i32
    return %c0_i32, %c0_i32_0, %c0_i32_1 : i32, i32, i32
  }
  func.func @transform_12(%arg0: i32) -> (i32, i32) {
    %c0_i32 = arith.constant 0 : i32
    %c0_i32_0 = arith.constant 0 : i32
    %c0_i32_1 = arith.constant 0 : i32
    return %c0_i32, %c0_i32_0 : i32, i32
  }
  func.func @transform_13(%arg0: i32) -> (i32, i32, i32) {
    %c0_i32 = arith.constant 0 : i32
    %c0_i32_0 = arith.constant 0 : i32
    %c0_i32_1 = arith.constant 0 : i32
    %c0_i32_2 = arith.constant 0 : i32
    return %c0_i32, %c0_i32_0, %c0_i32_1 : i32, i32, i32
  }
  func.func @transform_14(%arg0: i32) -> (i32, i32) {
    %c0_i32 = arith.constant 0 : i32
    %c0_i32_0 = arith.constant 0 : i32
    %c0_i32_1 = arith.constant 0 : i32
    return %c0_i32, %c0_i32_0 : i32, i32
  }
  func.func @transform_15(%arg0: i32) -> (i32, i32) {
    %c0_i32 = arith.constant 0 : i32
    %c0_i32_0 = arith.constant 0 : i32
    %c0_i32_1 = arith.constant 0 : i32
    return %c0_i32, %c0_i32_0 : i32, i32
  }
  func.func @transform_16(%arg0: i32) -> (i32, i32) {
    %c0_i32 = arith.constant 0 : i32
    %c0_i32_0 = arith.constant 0 : i32
    %c0_i32_1 = arith.constant 0 : i32
    return %c0_i32, %c0_i32_0 : i32, i32
  }
  func.func @transform_17(%arg0: i32) -> (i32, i32) {
    %c0_i32 = arith.constant 0 : i32
    %c0_i32_0 = arith.constant 0 : i32
    %c0_i32_1 = arith.constant 0 : i32
    return %c0_i32, %c0_i32_0 : i32, i32
  }
  func.func @transform_18(%arg0: i32) -> (i32, i32) {
    %c0_i32 = arith.constant 0 : i32
    %c0_i32_0 = arith.constant 0 : i32
    %c0_i32_1 = arith.constant 0 : i32
    return %c0_i32, %c0_i32_0 : i32, i32
  }
  func.func @transform_19(%arg0: i32) -> (i32, i32, i32) {
    %c0_i32 = arith.constant 0 : i32
    %c0_i32_0 = arith.constant 0 : i32
    %c0_i32_1 = arith.constant 0 : i32
    return %arg0, %c0_i32, %c0_i32_0 : i32, i32, i32
  }
}

</mosaic_0001>

<bundles_post_ra>
// kernel: ast_at_forward.1
= control target key start
LH: loop header
LB: loop body
LE: loop exit
PB: predicated region body
PF: predicated region fallthrough
CT: control target
= control target key end

     0   :  { %s9405_s0 = inlined_call_operand.vmem [shape: bf16[2,17,256], index: 0, kind: input, shape index: {}]   ;;  %s9406_s1 = inlined_call_operand.hbm [shape: f32[17,128], index: 1, kind: input, shape index: {}]   ;;  %s9407_s2 = inlined_call_operand.vmem [shape: bf16[256,128], index: 2, kind: input, shape index: {}]   ;;  %s9408_s3 = inlined_call_operand.vmem [shape: f32[2,128], index: 3, kind: input, shape index: {}]   ;;  %s9409_s4 = inlined_call_operand.vmem [shape: f32[2,128], index: 4, kind: input, shape index: {}]   ;;  %s9410_s5 = inlined_call_operand.vmem [shape: bf16[2,128,384], index: 5, kind: input, shape index: {}]   ;;  %s9411_s6 = inlined_call_operand.hbm [shape: f32[2,384], index: 6, kind: input, shape index: {}]   ;;  %s9412_s7 = inlined_call_operand.hbm [shape: bf16[2,128,128], index: 7, kind: input, shape index: {}]   ;;  %s9413_s8 = inlined_call_operand.hbm [shape: f32[2,128], index: 8, kind: input, shape index: {}]   ;;  %s9414_s9 = inlined_call_operand.vmem [shape: f32[2,128], index: 9, kind: input, shape index: {}]   ;;  %s9415_s10 = inlined_call_operand.vmem [shape: f32[2,128], index: 10, kind: input, shape index: {}]   ;;  %s9416_s11 = inlined_call_operand.vmem [shape: bf16[2,128,512], index: 11, kind: input, shape index: {}]   ;;  %s9417_s12 = inlined_call_operand.vmem [shape: f32[2,512], index: 12, kind: input, shape index: {}]   ;;  %s9418_s13 = inlined_call_operand.vmem [shape: bf16[2,512,128], index: 13, kind: input, shape index: {}]   ;;  %s9419_s14 = inlined_call_operand.vmem [shape: f32[2,128], index: 14, kind: input, shape index: {}]   ;;  %s9420_s15 = inlined_call_operand.vmem [shape: f32[1,128], index: 15, kind: input, shape index: {}]   ;;  %s9421_s16 = inlined_call_operand.vmem [shape: f32[1,128], index: 16, kind: input, shape index: {}]   ;;  %s9422_s17 = inlined_call_operand.hbm [shape: bf16[128,128], index: 17, kind: input, shape index: {}]   ;;  %s9423_s18 = inlined_call_operand.vmem [shape: f32[1,128], index: 18, kind: input, shape index: {}]   ;;  %s9424_s19 = inlined_call_operand.vmem [shape: f32[2,1,128], index: 19, kind: output, shape index: {}]  }
   0x1   :  { %9441 = sst [smem:[#allocation17_spill]] %s9405_s0 }
   0x2   :  { %9442 = sst [smem:[#allocation18_spill]] %s9406_s1 }
   0x3   :  { %9443 = sst [smem:[#allocation19_spill]] %s9407_s2 }
   0x4   :  { %9444 = sst [smem:[#allocation20_spill]] %s9408_s3 }
   0x5   :  { %9445 = sst [smem:[#allocation21_spill]] %s9411_s6 }
   0x6   :  { %9446 = sst [smem:[#allocation22_spill]] %s9413_s8 }
   0x7   :  { %9447 = sst [smem:[#allocation23_spill]] %s9423_s18 }
   0x8   :  { %9448 = sst [smem:[#allocation24_spill]] %s9424_s19 }
   0x9   :  { %24 = vsyncpa [#allocation3], 0 }
   0xa   :  { %25 = vsyncpa [#allocation5], 0 }
   0xb   :  { %26 = vsyncpa [#allocation8], 0  ;;  %s7670_s0 = smov 0  }
   0xc LB: > { %9449 = sst [smem:[#allocation13_spill]] %s7552_s0  ;;  %s7554_s30 = smov [#allocation4]   ;;  %s7552_s0 = sphi %s7670_s0, %s32_s0  }
   0xd   : > { %s505_s20 = sshll.u32 %s7554_s30, 4  ;;  %s7676_s21 = sadd.s32 4294967295, %s7552_s0   ;;  %s7681_s20 = int_to_ptr.vmem [resolvable:$true] %s505_s20 }
   0xe   : > { %p5872_p0 = scmp.ge.s32.totalorder %s7552_s0, 1  ;;  %p467_p1 = scmp.lt.s32.totalorder %s7552_s0, 3 }
   0xf   : > { %p9429_p2 = scmp.eq.s32.totalorder %s7676_s21, 0  ;;  %s7555_s22 = smov [#allocation7]  }
  0x10   : > { %p7683_p3 = pnand %p5872_p0, %p467_p1  ;;  %s529_s2 = sshll.u32 %s7555_s22, 4  ;;  %s7689_s2 = int_to_ptr.vmem [resolvable:$true] %s529_s2 }
  0x11   : > { %s7556_s23 = smov [#allocation2]   ;;  %s7557_s3 = smov [#allocation6]  }
  0x12   : > { %s9450_s1 = scalar_select %p7683_p3, 1, 0 }
  0x13   : > { %p6853_p4 = pneg %p7683_p3  ;;  %s479_s24 = sshll.u32 %s7556_s23, 4  ;;  %s7697_s24 = int_to_ptr.vmem [resolvable:$true] %s479_s24 }
  0x14   : > { %s7699_s26 = sshll.u32 %s7557_s3, 4  ;;  %s9452_s6 = sld [smem:[#allocation21_spill]]  ;;  %s516_s26 = int_to_ptr.vmem [resolvable:$true] %s7699_s26 }
  0x15   : > { %p7693_p5 = pnand %p9429_p2, %p6853_p4 }
  0x17   : > { %p7709_p7 = pneg %p7693_p5 }
  0x1a   : > { %s7394_s29 = scalar_lea.hbm %s9452_s6, 96 }
  0x1b   : > { %p7395_p6 = scmp.ne.s32.totalorder %s9452_s6, %s7394_s29  ;;  %p7401_p10 = scmp.lt.u32.totalorder %s7394_s29, %s9452_s6 }
  0x1d   : > { %p7397_p8 = pnand %p7709_p7, %p7395_p6 }
  0x1f   : > { %p7398_p9 = pneg %p7397_p8 }
  0x21   : > { %p7403_p11 = pnand %p7401_p10, %p7398_p9 }
  0x23   : > { %7406 = shalt.err (!%p7403_p11)
}
  0x24   : > { %s7407_s27 = scalar_lea.vmem %s7681_s20, 96  ;;  %p7415_p1 = scmp.lt.s32.totalorder %s7681_s20, %s7681_s20 }
  0x25   : > { %p7408_p12 = scmp.ne.s32.totalorder %s7681_s20, %s7407_s27  ;;  %p7416_p4 = scmp.lt.s32.totalorder %s7407_s27, %s7407_s27 }
  0x27   : > { %p7410_p13 = pnand %p7408_p12, %p7709_p7  ;;  %p7417_p6 = por %p7416_p4, %p7415_p1 }
  0x29   : > { %p7411_p0 = pneg %p7410_p13 }
  0x2b   : > { %p7418_p8 = pnand %p7417_p6, %p7411_p0 }
  0x2d   : > { %7421 = shalt.err (!%p7418_p8)
}
  0x2e   : > { %6859 = dma.hbm_to_vmem [thread:$0]  (!%p7693_p5), %s9452_s6, 96, %s7681_s20, [#allocation5]  }
  0x2f   : > { %s9454_s8 = sld [smem:[#allocation22_spill]] }
  0x35   : > { %s7422_s22 = scalar_lea.hbm %s9454_s8, 32 }
  0x36   : > { %p7423_p9 = scmp.ne.s32.totalorder %s9454_s8, %s7422_s22  ;;  %p7429_p12 = scmp.lt.u32.totalorder %s7422_s22, %s9454_s8 }
  0x38   : > { %p7425_p10 = pnand %p7423_p9, %p7709_p7 }
  0x3a   : > { %p7426_p11 = pneg %p7425_p10 }
  0x3c   : > { %p7431_p13 = pnand %p7429_p12, %p7426_p11 }
  0x3e   : > { %7434 = shalt.err (!%p7431_p13)
}
  0x3f   : > { %s7435_s20 = scalar_lea.vmem %s7689_s2, 32  ;;  %p7443_p6 = scmp.lt.s32.totalorder %s7689_s2, %s7689_s2 }
  0x40   : > { %p7436_p0 = scmp.ne.s32.totalorder %s7689_s2, %s7435_s20  ;;  %p7444_p8 = scmp.lt.s32.totalorder %s7435_s20, %s7435_s20 }
  0x42   : > { %p7438_p1 = pnand %p7436_p0, %p7709_p7  ;;  %p7445_p9 = por %p7444_p8, %p7443_p6 }
  0x44   : > { %p7439_p4 = pneg %p7438_p1 }
  0x46   : > { %p7446_p10 = pnand %p7445_p9, %p7439_p4 }
  0x48   : > { %7449 = shalt.err (!%p7446_p10)
}
  0x49   : > { %6865 = dma.hbm_to_vmem [thread:$0]  (!%p7693_p5), %s9454_s8, 32, %s7689_s2, [#allocation8]  }
  0x4a   : > { %s9455_s29 = sld [smem:[#allocation18_spill]] }
  0x50   : > { %s7450_s30 = scalar_lea.hbm %s9455_s29, 384 }
  0x51   : > { %p7451_p11 = scmp.ne.s32.totalorder %s9455_s29, %s7450_s30  ;;  %p7457_p0 = scmp.lt.u32.totalorder %s7450_s30, %s9455_s29 }
  0x53   : > { %p7453_p12 = pnand %p7451_p11, %p7709_p7 }
  0x55   : > { %p7454_p13 = pneg %p7453_p12 }
  0x57   : > { %p7459_p1 = pnand %p7457_p0, %p7454_p13 }
  0x59   : > { %7462 = shalt.err (!%p7459_p1)
}
  0x5a   : > { %s7463_s2 = scalar_lea.vmem %s7697_s24, 384  ;;  %p7471_p9 = scmp.lt.s32.totalorder %s7697_s24, %s7697_s24 }
  0x5b   : > { %p7464_p4 = scmp.ne.s32.totalorder %s7697_s24, %s7463_s2  ;;  %p7472_p10 = scmp.lt.s32.totalorder %s7463_s2, %s7463_s2 }
  0x5d   : > { %p7466_p6 = pnand %p7464_p4, %p7709_p7  ;;  %p7473_p11 = por %p7472_p10, %p7471_p9 }
  0x5f   : > { %p7467_p8 = pneg %p7466_p6 }
  0x61   : > { %p7474_p12 = pnand %p7473_p11, %p7467_p8 }
  0x63   : > { %7477 = shalt.err (!%p7474_p12)
}
  0x64   : > { %s7558_s18 = smov 128   ;;  %s7559_s19 = smov 8  }
  0x65   : > { %6856 = dma.hbm_to_vmem [thread:$0]  (!%p7693_p5), %s9455_s29, 384, %s7697_s24, [#allocation3], %s7558_s18, %s7558_s18, %s7559_s19  }
  0x66   : > { %s7478_s3 = scalar_lea.hbm %s9412_s7, 2048 }
  0x67   : > { %p7479_p13 = scmp.ne.s32.totalorder %s9412_s7, %s7478_s3  ;;  %p7485_p4 = scmp.lt.u32.totalorder %s7478_s3, %s9412_s7 }
  0x69   : > { %p7481_p0 = pnand %p7479_p13, %p7709_p7 }
  0x6b   : > { %p7482_p1 = pneg %p7481_p0 }
  0x6d   : > { %p7487_p6 = pnand %p7485_p4, %p7482_p1 }
  0x6f   : > { %7490 = shalt.err (!%p7487_p6)
}
  0x70   : > { %s7491_s0 = scalar_lea.vmem %s516_s26, 2048  ;;  %p7499_p11 = scmp.lt.s32.totalorder %s516_s26, %s516_s26 }
  0x71   : > { %p7492_p8 = scmp.ne.s32.totalorder %s516_s26, %s7491_s0  ;;  %p7500_p12 = scmp.lt.s32.totalorder %s7491_s0, %s7491_s0 }
  0x73   : > { %p7494_p9 = pnand %p7492_p8, %p7709_p7  ;;  %p7501_p2 = por %p7500_p12, %p7499_p11 }
  0x75   : > { %p7495_p10 = pneg %p7494_p9 }
  0x77   : > { %p7502_p3 = pnand %p7501_p2, %p7495_p10 }
  0x79   : > { %7505 = shalt.err (!%p7502_p3)
}
  0x7a   : > { %s7560_s24 = smov 64   ;;  %s7561_s18 = smov 4  }
  0x7b   : > { %6862 = dma.hbm_to_vmem [thread:$0]  (!%p7693_p5), %s9412_s7, 2048, %s516_s26, [#allocation5], %s7560_s24, %s7560_s24, %s7561_s18  }
  0x7c   : > { %s7562_s28 = smov [#allocation9]   ;;  %s7506_s27 = scalar_lea.hbm %s9422_s17, 1024 }
  0x7d   : > { %s563_s30 = sshll.u32 %s7562_s28, 4  ;;  %p7507_p2 = scmp.ne.s32.totalorder %s9422_s17, %s7506_s27  ;;  %s564_s30 = int_to_ptr.vmem [resolvable:$true] %s563_s30 }
  0x7e   : > { %p7513_p0 = scmp.lt.u32.totalorder %s7506_s27, %s9422_s17 }
  0x7f   : > { %p7509_p3 = pnand %p7507_p2, %p7709_p7 }
  0x81   : > { %p7510_p13 = pneg %p7509_p3 }
  0x83   : > { %p7515_p1 = pnand %p7513_p0, %p7510_p13 }
  0x85   : > { %7518 = shalt.err (!%p7515_p1)
}
  0x86   : > { %s7519_s26 = scalar_lea.vmem %s564_s30, 1024  ;;  %p7527_p9 = scmp.lt.s32.totalorder %s564_s30, %s564_s30 }
  0x87   : > { %p7520_p4 = scmp.ne.s32.totalorder %s564_s30, %s7519_s26  ;;  %p7528_p10 = scmp.lt.s32.totalorder %s7519_s26, %s7519_s26 }
  0x89   : > { %p7522_p6 = pnand %p7520_p4, %p7709_p7  ;;  %p7529_p11 = por %p7528_p10, %p7527_p9 }
  0x8b   : > { %p7523_p8 = pneg %p7522_p6 }
  0x8d   : > { %p7530_p12 = pnand %p7529_p11, %p7523_p8 }
  0x8f   : > { %7533 = shalt.err (!%p7530_p12)
}
  0x90   : > { %6868 = dma.hbm_to_vmem [thread:$0]  (!%p7693_p5), %s9422_s17, 1024, %s564_s30, [#allocation8], %s7560_s24, %s7560_s24, %s7561_s18  }
  0x91   : > { %p9456_p2 = scmp.ne.s32.totalorder %s9450_s1, 0 }
  0x93   : > { %590 = sbr.rel (%p9456_p2) target bundleno = 8803 (0x2263), region = 96 }
  0x9a   : > { %p9457_p3 = scmp.eq.s32.totalorder %s7676_s21, 0 }
  0x9c   : > { %7539 = dma.done.wait (%p9457_p3), [#allocation3], 384   ;;  %p9458_p7 = pmov %p9457_p3 }
  0x9d   : > { %p9459_p13 = pmov %p9457_p3 }
  0x9e   : > { %7541 = vsyncadd (%p9458_p7), [#allocation3], 4294966912 }
  0x9f   : > { %7543 = dma.done.wait (%p9459_p13), [#allocation5], 2144   ;;  %p9460_p0 = pmov %p9457_p3 }
  0xa1   : > { %7545 = vsyncadd (%p9460_p0), [#allocation5], 4294965152  ;;  %p9461_p1 = pmov %p9460_p0 }
  0xa2   : > { %p9462_p5 = pmov %p9460_p0 }
  0xa3   : > { %7547 = dma.done.wait (%p9461_p1), [#allocation8], 1056  }
  0xa4   : > { %7549 = vsyncadd (%p9462_p5), [#allocation8], 4294966240  ;;  %s9463_s25 = sld [smem:[#allocation19_spill]]  ;;  %p660_p4 = scmp.lt.s32.totalorder %s7676_s21, 1  ;;  %v704_v22 = vld [vmem:[#allocation2] sm:$0xff]  ;;  %v705_v29 = vld [vmem:[#allocation2 + $0x8] sm:$0xff] }
  0xa5   : > { %s9464_s28 = sld [smem:[#allocation17_spill]]  ;;  %v706_v32 = vld [vmem:[#allocation2 + $0x10] sm:$0x1]  ;;  %vm874_vm0 = vcmask 1040384   ;;  %v6926_v40 = vld [vmem:[%s9410_s5] ss:$12 sps:$4 sm:$0xff]  }
  0xa6   : > { %s9479_s21 = smov (!%p660_p4, %s7676_s21), 1  ;;  %v6924_v39 = vld [vmem:[%s9410_s5 + $0x4] ss:$12 sps:$4 sm:$0xff]   ;;  %v6927_v41 = vld [vmem:[%s9410_s5 + $0x1c] ss:$12 sps:$4 sm:$0xff]   ;;  %s9465_s22 = sld [smem:[#allocation20_spill]] }
  0xa7   : > { %s6832_s6 = smul.u32 24, %s9479_s21  ;;  %1100 = vmatprep.subr.bf16.mxu1 %v6924_v39  ;;  %v6929_v55 = vld [vmem:[%s9410_s5 + $0x18] ss:$12 sps:$4 sm:$0xff]   ;;  %v6930_v56 = vld [vmem:[%s9410_s5 + $0x8] ss:$12 sps:$4 sm:$0xff]   ;;  %vm1221_vm1 = vcmask 261120  }
  0xa8   : > { %1101 = vmatpush1.bf16.msra.mxu1 %v6926_v40  ;;  %v6931_v57 = vld [vmem:[%s9410_s5 + $0x34] ss:$12 sps:$4 sm:$0xff]   ;;  %v6933_v58 = vld [vmem:[%s9410_s5 + $0x30] ss:$12 sps:$4 sm:$0xff]   ;;  %v6935_v60 = vld [vmem:[%s9410_s5 + $0x4c] ss:$12 sps:$4 sm:$0xff]  }
  0xa9   : > { %1102 = vmatprep.subr.bf16.mxu1 %v6927_v41  ;;  %v6934_v59 = vld [vmem:[%s9410_s5 + $0x20] ss:$12 sps:$4 sm:$0xff]   ;;  %v6937_v61 = vld [vmem:[%s9410_s5 + $0x48] ss:$12 sps:$4 sm:$0xff]   ;;  %v6938_v62 = vld [vmem:[%s9410_s5 + $0x38] ss:$12 sps:$4 sm:$0xff]   ;;  %v957_v41 = vlaneseq }
  0xaa   : > { %v6903_v0 = vld [vmem:[%s9463_s25 + $0x40] sm:$0xff]   ;;  %v6905_v2 = vld [vmem:[%s9463_s25 + $0x48] sm:$0xff]   ;;  %v6907_v4 = vld [vmem:[%s9463_s25 + $0x50] sm:$0xff]   ;;  %vm1282_vm2 = vcmask 138240   ;;  %vm1289_vm3 = vcmask 131072   ;;  %s7564_s20 = smov 96  }
  0xab   : > { %v6904_v1 = vld [vmem:[%s9463_s25] sm:$0xff]   ;;  %6299 = vmatprep.subr.bf16.mxu0 %v6903_v0  ;;  %v6906_v3 = vld [vmem:[%s9463_s25 + $0x8] sm:$0xff]   ;;  %v6908_v5 = vld [vmem:[%s9463_s25 + $0x10] sm:$0xff]   ;;  %s664_s30 = scalar_lea.vmem %s9464_s28, %s6832_s6  ;;  %s7565_s2 = smov 64  }
  0xac   : > { %6300 = vmatpush3.bf16.msra.mxu0 %v6904_v1  ;;  %v6909_v6 = vld [vmem:[%s9463_s25 + $0x58] sm:$0xff]   ;;  %v6911_v8 = vld [vmem:[%s9463_s25 + $0x60] sm:$0xff]   ;;  %v6913_v10 = vld [vmem:[%s9463_s25 + $0x68] sm:$0xff]   ;;  %1103 = vmatpush1.bf16.msra.mxu1 %v6929_v55  ;;  %s7566_s0 = smov 32   ;;  %s9475_s26 = sld [smem:[#allocation23_spill]] }
  0xad   : > { %6301 = vmatprep.subr.bf16.mxu0 %v6905_v2  ;;  %v6910_v7 = vld [vmem:[%s9463_s25 + $0x18] sm:$0xff]   ;;  %v6912_v9 = vld [vmem:[%s9463_s25 + $0x20] sm:$0xff]   ;;  %v6914_v11 = vld [vmem:[%s9463_s25 + $0x28] sm:$0xff]   ;;  %1104 = vmatprep.subr.bf16.mxu1 %v6931_v57  ;;  %s9476_s8 = sld [smem:[#allocation24_spill]] }
  0xae   : > { %v6921_v12 = vld [vmem:[%s664_s30 + $0x4] ss:$8 sps:$4 sm:$0xff]   ;;  %v6915_v13 = vld [vmem:[%s9463_s25 + $0x70] sm:$0xff]   ;;  %v6917_v15 = vld [vmem:[%s9463_s25 + $0x78] sm:$0xff]  }
  0xaf   : > { %852 = vmatprep.mubr.bf16.mxu0 %v6921_v12  ;;  %v6916_v14 = vld [vmem:[%s9463_s25 + $0x30] sm:$0xff]   ;;  %v6918_v16 = vld [vmem:[%s9463_s25 + $0x38] sm:$0xff]   ;;  %v6919_v18 = vld [vmem:[%s664_s30] ss:$8 sps:$4 sm:$0xff]  }
  0xb0   : > { %6302 = vmatpush3.bf16.msra.mxu0 %v6906_v3  ;;  %v671_v17 = vld [vmem:[%s664_s30 + $0x10] sm:$0x11]  ;;  %1105 = vmatpush1.bf16.msra.mxu1 %v6933_v58  ;;  %v6941_v0 = vld [vmem:[%s9410_s5 + $0x60] ss:$12 sps:$4 sm:$0xff]   ;;  %v6943_v2 = vld [vmem:[%s9410_s5 + $0x7c] ss:$12 sps:$4 sm:$0xff]  }
  0xb1   : > { %6303 = vmatprep.subr.bf16.mxu0 %v6907_v4  ;;  %v5889_v19 = vcombine.high %v671_v17, %v671_v17  ;;  %v5888_v20 = vcombine.low %v671_v17, %v671_v17  ;;  %1106 = vmatprep.subr.bf16.mxu1 %v6935_v60  ;;  %v6939_v63 = vld [vmem:[%s9410_s5 + $0x64] ss:$12 sps:$4 sm:$0xff]   ;;  %v6946_v4 = vld [vmem:[%s9410_s5 + $0x68] ss:$12 sps:$4 sm:$0xff]  }
  0xb2   : > { %v6942_v1 = vld [vmem:[%s9410_s5 + $0x50] ss:$12 sps:$4 sm:$0xff]   ;;  %v6945_v3 = vld [vmem:[%s9410_s5 + $0x78] ss:$12 sps:$4 sm:$0xff]  }
  0xb3   : > { %v6955_v12 = vld [vmem:[%s9410_s5 + $0xb0] ss:$12 sps:$4 sm:$0xff]   ;;  %s667_s1 = scalar_lea.vmem %s9476_s8, %s9479_s21 }
  0xb4   : > { %6304 = vmatpush3.bf16.msra.mxu0 %v6908_v5  ;;  %1107 = vmatpush1.bf16.msra.mxu1 %v6937_v61  ;;  %v6947_v5 = vld [vmem:[%s9410_s5 + $0x94] ss:$12 sps:$4 sm:$0xff]  }
  0xb5   : > { %6305 = vmatprep.subr.bf16.mxu0 %v6909_v6  ;;  %1108 = vmatprep.subr.bf16.mxu1 %v6939_v63  ;;  %v6949_v6 = vld [vmem:[%s9410_s5 + $0x90] ss:$12 sps:$4 sm:$0xff]  }
  0xb8   : > { %6306 = vmatpush3.bf16.msra.mxu0 %v6910_v7  ;;  %1109 = vmatpush1.bf16.msra.mxu1 %v6941_v0  ;;  %v6950_v7 = vld [vmem:[%s9410_s5 + $0x80] ss:$12 sps:$4 sm:$0xff]  }
  0xb9   : > { %6307 = vmatprep.subr.bf16.mxu0 %v6911_v8  ;;  %1110 = vmatprep.subr.bf16.mxu1 %v6943_v2  ;;  %v6951_v8 = vld [vmem:[%s9410_s5 + $0xac] ss:$12 sps:$4 sm:$0xff]  }
  0xbc   : > { %6308 = vmatpush3.bf16.msra.mxu0 %v6912_v9  ;;  %1111 = vmatpush1.bf16.msra.mxu1 %v6945_v3  ;;  %v6953_v9 = vld [vmem:[%s9410_s5 + $0xa8] ss:$12 sps:$4 sm:$0xff]  }
  0xbd   : > { %6309 = vmatprep.subr.bf16.mxu0 %v6913_v10  ;;  %1112 = vmatprep.subr.bf16.mxu1 %v6947_v5  ;;  %v6954_v10 = vld [vmem:[%s9410_s5 + $0x98] ss:$12 sps:$4 sm:$0xff]  }
  0xc0   : > { %6310 = vmatpush3.bf16.msra.mxu0 %v6914_v11  ;;  %1113 = vmatpush1.bf16.msra.mxu1 %v6949_v6  ;;  %v9432_v11 = vmov 0  }
  0xc1   : > { %6311 = vmatprep.subr.bf16.mxu0 %v6915_v13  ;;  %1114 = vmatprep.subr.bf16.mxu1 %v6951_v8 }
  0xc2   : > { %1132 = vmatprep.mubr.bf16.mxu1 %v9432_v11 }
  0xc4   : > { %6312 = vmatpush3.bf16.msra.mxu0 %v6916_v14  ;;  %1115 = vmatpush1.bf16.msra.mxu1 %v6953_v9 }
  0xc5   : > { %6313 = vmatprep.subr.bf16.mxu0 %v6917_v15 }
  0xc8   : > { %6314 = vmatpush3.bf16.msra.mxu0 %v6918_v16 }
  0xc9   : > { %6564 = vmatprep.subr.bf16.mxu0 %v6930_v56 }
  0xcb   : > { %853 = vmatmul.mubr.bf16.vlgmr.msra.gmra.mrb[0].mxu0 %v6919_v18 }
  0xcc   : > { %860 = vmatprep.mubr.bf16.mxu0 %v5889_v19  ;;  %6565 = vmatpush3.bf16.msra.mxu0 %v6930_v56 }
  0xcd   : > { %6566 = vmatprep.subr.bf16.mxu0 %v6934_v59 }
  0xd0   : > { %6567 = vmatpush3.bf16.msra.mxu0 %v6934_v59 }
  0xd1   : > { %6568 = vmatprep.subr.bf16.mxu0 %v6938_v62 }
  0xd3   : > { %861 = vmatmul.mubr.bf16.gmra.mrb[4].mxu0 %v5888_v20 }
  0xd4   : > { %6569 = vmatpush3.bf16.msra.mxu0 %v6938_v62 }
  0xd5   : > { %6570 = vmatprep.subr.bf16.mxu0 %v6942_v1 }
  0xd8   : > { %6571 = vmatpush3.bf16.msra.mxu0 %v6942_v1 }
  0xd9   : > { %6572 = vmatprep.subr.bf16.mxu0 %v6946_v4 }
  0xdc   : > { %6573 = vmatpush3.bf16.msra.mxu0 %v6946_v4 }
  0xdd   : > { %6574 = vmatprep.subr.bf16.mxu0 %v6950_v7 }
  0xe0   : > { %6575 = vmatpush3.bf16.msra.mxu0 %v6950_v7 }
  0xe1   : > { %6576 = vmatprep.subr.bf16.mxu0 %v6954_v10 }
  0xe4   : > { %6577 = vmatpush3.bf16.msra.mxu0 %v6954_v10 }
  0xe5   : > { %6578 = vmatprep.subr.bf16.mxu0 %v6955_v12 }
  0xe8   : > { %6579 = vmatpush3.bf16.msra.mxu0 %v6955_v12 }
 0x19e   : > { %v6315_v21 = vpop.f32.mrb[0].mxu0 }
 0x19f   : > { %v6316_v23 = vpop.f32.mrb[1].mxu0 }
 0x1a0   : > { %v6317_v24 = vadd.f32 %v6316_v23, %v6315_v21  ;;  %v6318_v25 = vpop.f32.mrb[2].mxu0 }
 0x1a1   : > { %v6319_v26 = vpop.f32.mrb[3].mxu0 }
 0x1a2   : > { %v7883_v27 = vadd.f32 %v6317_v24, %v704_v22  ;;  %v6320_v28 = vadd.f32 %v6319_v26, %v6318_v25  ;;  %v5906_v24 = vld [vmem:[%s9465_s22] ss:$0 sm:$0xff] }
 0x1a4   : > { %870 = vadd.xlane.f32.xlu0 %v7883_v27  ;;  %v7886_v30 = vadd.f32 %v6320_v28, %v705_v29  ;;  %v5907_v29 = vld [vmem:[%s9409_s4] ss:$0 sm:$0xff] }
 0x1a6   : > { %v6321_v31 = vpop.f32.mrb[4].mxu0 }
 0x1a7   : > { %v6322_v33 = vpop.f32.mrb[5].mxu0 }
 0x1a8   : > { %v6323_v34 = vadd.f32 %v6322_v33, %v6321_v31  ;;  %872 = vadd.xlane.f32.xlu0 %v7886_v30  ;;  %v6324_v35 = vpop.f32.mrb[6].mxu0 }
 0x1a9   : > { %v6325_v36 = vpop.f32.mrb[7].mxu0 }
 0x1aa   : > { %v7889_v37 = vadd.f32 %v6323_v34, %v706_v32 }
 0x1ac   : > { %v875_v38 = vsel %vm874_vm0, %v7889_v37, 0.0 }
 0x1ad   : > { %876 = vadd.xlane.f32.xlu1 %v875_v38 }
 0x231   : > { %v871_v42 = vpop.xlane.xlu0 %870 }
 0x232   : > { %v879_v43 = vmul.f32 0.0078125, %v871_v42  ;;  %v7992_v42 = vshrl.u32 %v957_v41, 7 }
 0x234   : > { %v7903_v44 = vsub.f32 %v7883_v27, %v879_v43  ;;  %9466 = vst [vmem:[#allocation14_spill] sm:$0xff] %v7992_v42  ;;  %v7995_v43 = vsub.s32 0, %v7992_v42 }
 0x235   : > { %v873_v45 = vpop.xlane.xlu0 %872 }
 0x236   : > { %v880_v46 = vmul.f32 0.0078125, %v873_v45  ;;  %v885_v47 = vmul.f32 %v7903_v44, %v7903_v44  ;;  %v7998_v45 = vsub.s32 1, %v7992_v42 }
 0x238   : > { %888 = vadd.xlane.f32.xlu1 %v885_v47  ;;  %v7908_v48 = vsub.f32 %v7886_v30, %v880_v46 }
 0x23a   : > { %v877_v49 = vpop.xlane.xlu1 %876  ;;  %v886_v50 = vmul.f32 %v7908_v48, %v7908_v48 }
 0x23b   : > { %v881_v51 = vmul.f32 0.0078125, %v877_v49 }
 0x23c   : > { %890 = vadd.xlane.f32.xlu0 %v886_v50 }
 0x23d   : > { %v7913_v52 = vsub.f32 %v7889_v37, %v881_v51  ;;  %v8003_v51 = vsub.s32 2, %v7992_v42 }
 0x23f   : > { %v887_v53 = vmul.f32 %v7913_v52, %v7913_v52  ;;  %9467 = vst [vmem:[#allocation15_spill] sm:$0xff] %v8003_v51 }
 0x241   : > { %v892_v54 = vsel %vm874_vm0, %v887_v53, 0.0 }
 0x242   : > { %893 = vadd.xlane.f32.xlu1 %v892_v54 }
 0x2c5   : > { %v889_v13 = vpop.xlane.xlu1 %888 }
 0x2c6   : > { %v895_v14 = vmul.f32 0.0078125, %v889_v13 }
 0x2c8   : > { %v898_v15 = vadd.f32 1e-06, %v895_v14 }
 0x2c9   : > { %v891_v16 = vpop.xlane.xlu0 %890 }
 0x2ca   : > { %7172 = vrsqrt.f32 %v898_v15  ;;  %v896_v17 = vmul.f32 0.0078125, %v891_v16  ;;  %v8029_v15 = vsel %vm874_vm0, 65535, %v9432_v11 }
 0x2cb   : > { %9468 = vst [vmem:[#allocation16_spill] sm:$0xff] %v8029_v15 }
 0x2cc   : > { %v899_v18 = vadd.f32 1e-06, %v896_v17 }
 0x2ce   : > { %7174 = vrsqrt.f32 %v899_v18 }
 0x2cf   : > { %v894_v19 = vpop.xlane.xlu1 %893 }
 0x2d0   : > { %v897_v20 = vmul.f32 0.0078125, %v894_v19 }
 0x2d2   : > { %v900_v21 = vadd.f32 1e-06, %v897_v20 }
 0x2d4   : > { %v7173_v22 = vpop.eup %7172  ;;  %7176 = vrsqrt.f32 %v900_v21 }
 0x2d5   : > { %v904_v23 = vmul.f32 %v7173_v22, %v7903_v44  ;;  %v955_v44 = vld [vmem:[#allocation4] ss:$2 sm:$0x7] }
 0x2d6   : > { %v960_v46 = vrot.slane %v955_v44, %v7995_v43  ;;  %v968_v59 = vrot.slane %v955_v44, %v8003_v51 }
 0x2d7   : > { %v911_v28 = vmul.f32 %v5906_v24, %v904_v23 }
 0x2d8   : > { %v7175_v25 = vpop.eup %7174 }
 0x2d9   : > { %v905_v26 = vmul.f32 %v7175_v25, %v7908_v48  ;;  %v918_v32 = vadd.f32 %v5907_v29, %v911_v28  ;;  %v964_v48 = vrot.slane %v955_v44, %v7998_v45 }
 0x2db   : > { %v912_v31 = vmul.f32 %v5906_v24, %v905_v26 }
 0x2dd   : > { %v919_v33 = vadd.f32 %v5907_v29, %v912_v31 }
 0x2de   : > { %v7177_v34 = vpop.eup %7176 }
 0x2df   : > { %v906_v35 = vmul.f32 %v7177_v34, %v7913_v52  ;;  %v921_v36 = vpack.c.bf16 %v919_v33, %v918_v32 }
 0x2e1   : > { %v913_v38 = vmul.f32 %v5906_v24, %v906_v35  ;;  %1133 = vmatmul.mubr.bf16.vlgmr.msra.gmra.mrb[0].mxu1 %v921_v36  ;;  %6580 = vmatprep.mubr.bf16.mxu0 %v921_v36 }
 0x2e2   : > { %1142 = vmatprep.mubr.bf16.mxu1 %v9432_v11 }
 0x2e3   : > { %v920_v39 = vadd.f32 %v5907_v29, %v913_v38 }
 0x2e5   : > { %v922_v40 = vpack.c.bf16 %v920_v39, %v920_v39 }
 0x2e7   : > { %6581 = vmatmul.mubr.bf16.vlgmr.msra.gmra.mrb[8].mxu0 %v922_v40 }
 0x2e9   : > { %1143 = vmatmul.mubr.bf16.gmra.mrb[4].mxu1 %v922_v40 }
 0x3b4   : > { %v1134_v47 = vpop.f32.mrb[0].mxu1 }
 0x3b5   : > { %v1136_v49 = vpop.f32.mrb[1].mxu1  ;;  %v1135_v52 = vadd.f32 %v1134_v47, %v960_v46 }
 0x3b6   : > { %v1138_v50 = vpop.f32.mrb[2].mxu1  ;;  %v1137_v55 = vadd.f32 %v1136_v49, %v964_v48 }
 0x3b7   : > { %v1139_v53 = vadd.f32 %v1138_v50, %v960_v46  ;;  %v1140_v54 = vpop.f32.mrb[3].mxu1 }
 0x3b8   : > { %v1141_v56 = vadd.f32 %v1140_v54, %v964_v48 }
 0x3b9   : > { %v8005_v57 = vpack.c.bf16 %v1139_v53, %v1135_v52 }
 0x3ba   : > { %v8007_v58 = vpack.c.bf16 %v1141_v56, %v1137_v55  ;;  %v6582_v60 = vpop.f32.mrb[8].mxu0 }
 0x3bb   : > { %v1185_v61 = vpop.f32.mrb[9].mxu0  ;;  %6588 = vmatprep.mubr.msk.bf16.mxu1 %vm1221_vm1, %v8005_v57  ;;  %v1194_v10 = vadd.f32 %v6582_v60, %v968_v59 }
 0x3bc   : > { %v1144_v62 = vpop.f32.mrb[4].mxu1  ;;  %v6583_v63 = vpop.f32.mrb[10].mxu0  ;;  %6816 = vmatprep.subr.msk.bf16.mxu1 %vm1221_vm1, %v8007_v58  ;;  %v1229_v0 = vsel %vm1221_vm1, %v8007_v58, 0  ;;  %v1186_v3 = vadd.f32 %v1185_v61, %v968_v59 }
 0x3bd   : > { %v1146_v1 = vpop.f32.mrb[5].mxu1  ;;  %v1188_v2 = vpop.f32.mrb[11].mxu0  ;;  %6585 = vmatpush3.bf16.xpose.msra.mxu1 %v1229_v0  ;;  %v1145_v13 = vadd.f32 %v1144_v62, %v960_v46  ;;  %v8025_v14 = vpack.c.bf16 %v1194_v10, %v1194_v10 }
 0x3be   : > { %v1147_v4 = vadd.f32 %v1146_v1, %v964_v48  ;;  %v1189_v5 = vadd.f32 %v1188_v2, %v968_v59  ;;  %v1148_v6 = vpop.f32.mrb[6].mxu1 }
 0x3bf   : > { %v1149_v7 = vpop.f32.mrb[7].mxu1  ;;  %v8031_v16 = vpack.c.bf16 %v1145_v13, %v1145_v13  ;;  %v1328_v17 = vand.u32 %v8029_v15, %v8025_v14 }
 0x3c0   : > { %v8016_v8 = vpack.c.bf16 %v1147_v4, %v1147_v4  ;;  %v8018_v9 = vpack.c.bf16 %v1189_v5, %v1186_v3 }
 0x3c2   : > { %6817 = vmatprep.subr.msk.bf16.mxu1 %vm1221_vm1, %v8016_v8  ;;  %v1232_v12 = vsel %vm1221_vm1, %v8016_v8, 0 }
 0x3c5   : > { %6587 = vmatpush3.bf16.xpose.msra.mxu1 %v1232_v12 }
 0x3c6   : > { %6592 = vmatprep.subr.bf16.mxu1 %v8018_v9 }
 0x3cc   : > { %6589 = vmatmul.mubr.msk.bf16.vlgmr.msra.gmra.mrb[8].mxu1 %vm1221_vm1, %v8031_v16 }
 0x3cd   : > { %6593 = vmatpush3.bf16.msra.mxu1 %v8018_v9 }
 0x3ce   : > { %6594 = vmatprep.subr.bf16.mxu1 %v1328_v17 }
 0x3d1   : > { %6595 = vmatpush3.bf16.msra.mxu1 %v1328_v17 }
 0x49f   : > { %v6590_v18 = vpop.f32.mrb[8].mxu1 }
 0x4a0   : > { %v1268_v19 = vpop.f32.mrb[9].mxu1  ;;  %v1290_v24 = vsel %vm1289_vm3, %v6590_v18, -inf }
 0x4a1   : > { %v6591_v20 = vpop.f32.mrb[10].mxu1  ;;  %v1283_v21 = vsel %vm1282_vm2, %v1268_v19, -inf }
 0x4a2   : > { %1284 = vmax.xlane.f32.xlu0 %v1283_v21  ;;  %v1271_v22 = vpop.f32.mrb[11].mxu1 }
 0x4a3   : > { %v1286_v23 = vsel %vm1282_vm2, %v1271_v22, -inf }
 0x4a4   : > { %1287 = vmax.xlane.f32.xlu1 %v1286_v23 }
 0x4a6   : > { %1291 = vmax.xlane.f32.xlu0 %v1290_v24 }
 0x52f   : > { %v1285_v25 = vpop.xlane.xlu0 %1284 }
 0x530   : > { %v1293_v26 = vsub.f32 %v1268_v19, %v1285_v25 }
 0x531   : > { %v1288_v28 = vpop.xlane.xlu1 %1287 }
 0x532   : > { %v1296_v29 = vmul.f32 1.442695, %v1293_v26  ;;  %v1294_v31 = vsub.f32 %v1271_v22, %v1288_v28 }
 0x533   : > { %v1292_v32 = vpop.xlane.xlu0 %1291 }
 0x534   : > { %7178 = vpow2.f32 %v1296_v29  ;;  %v1298_v33 = vmul.f32 1.442695, %v1294_v31  ;;  %v1295_v34 = vsub.f32 %v6590_v18, %v1292_v32 }
 0x536   : > { %7180 = vpow2.f32 %v1298_v33  ;;  %v1300_v35 = vmul.f32 1.442695, %v1295_v34 }
 0x538   : > { %7182 = vpow2.f32 %v1300_v35 }
 0x53e   : > { %v7179_v36 = vpop.eup %7178 }
 0x53f   : > { %v1302_v38 = vsel %vm1282_vm2, %v7179_v36, 0.0 }
 0x540   : > { %v7181_v39 = vpop.eup %7180  ;;  %1303 = vadd.xlane.f32.xlu1 %v1302_v38  ;;  %v6956_v38 = vld [vmem:[#allocation6 + $0x10] sm:$0xff]  }
 0x541   : > { %v1305_v40 = vsel %vm1282_vm2, %v7181_v39, 0.0  ;;  %6616 = vmatprep.subr.bf16.mxu0 %v6956_v38 }
 0x542   : > { %v7183_v41 = vpop.eup %7182  ;;  %1306 = vadd.xlane.f32.xlu0 %v1305_v40  ;;  %6617 = vmatpush3.bf16.msra.mxu0 %v6956_v38 }
 0x543   : > { %v1308_v44 = vsel %vm1289_vm3, %v7183_v41, 0.0 }
 0x544   : > { %1309 = vadd.xlane.f32.xlu1 %v1308_v44 }
 0x555   : > { %1390 = vrot.lane.b32.xlu1 %v8016_v8, %s7564_s20 }
 0x558   : > { %1388 = vrot.lane.b32.xlu0 %v8007_v58, %s7564_s20 }
 0x559   : > { %1382 = vrot.lane.b32.xlu1 %v8005_v57, %s7564_s20 }
 0x55d   : > { %1384 = vrot.lane.b32.xlu1 %v8031_v16, %s7564_s20 }
 0x5cd   : > { %v1304_v46 = vpop.xlane.xlu1 %1303 }
 0x5ce   : > { %7184 = vrcp.f32 %v1304_v46 }
 0x5cf   : > { %v1307_v47 = vpop.xlane.xlu0 %1306 }
 0x5d0   : > { %7186 = vrcp.f32 %v1307_v47 }
 0x5d1   : > { %v1310_v48 = vpop.xlane.xlu1 %1309 }
 0x5d2   : > { %7188 = vrcp.f32 %v1310_v48 }
 0x5d3   : > { %v1389_v49 = vpop.permute.xlu0 %1388 }
 0x5d4   : > { %6818 = vmatprep.subr.msk.bf16.mxu1 %vm1221_vm1, %v1389_v49  ;;  %v1399_v63 = vsel %vm1221_vm1, %v1389_v49, 0 }
 0x5d5   : > { %v1391_v53 = vpop.permute.xlu1 %1390 }
 0x5d6   : > { %v1402_v0 = vsel %vm1221_vm1, %v1391_v53, 0 }
 0x5d8   : > { %v7185_v50 = vpop.eup %7184 }
 0x5d9   : > { %v1314_v54 = vmul.f32 %v7185_v50, %v7179_v36  ;;  %v1383_v62 = vpop.permute.xlu1 %1382 }
 0x5da   : > { %v7187_v52 = vpop.eup %7186 }
 0x5db   : > { %v1315_v55 = vmul.f32 %v7187_v52, %v7181_v39  ;;  %v6957_v39 = vld [vmem:[#allocation6 + $0x18] sm:$0xff]  }
 0x5dc   : > { %v7189_v56 = vpop.eup %7188  ;;  %6618 = vmatprep.subr.bf16.mxu0 %v6957_v39 }
 0x5dd   : > { %v1317_v59 = vpack.c.bf16 %v1315_v55, %v1314_v54  ;;  %v1316_v60 = vmul.f32 %v7189_v56, %v7183_v41  ;;  %v1385_v1 = vpop.permute.xlu1 %1384  ;;  %6619 = vmatpush3.bf16.msra.mxu0 %v6957_v39  ;;  %v6959_v56 = vld [vmem:[#allocation6 + $0x8] sm:$0xff]  }
 0x5df   : > { %6596 = vmatprep.mubr.msk.bf16.mxu1 %vm1282_vm2, %v1317_v59  ;;  %v1318_v61 = vpack.c.bf16 %v1316_v60, %v1316_v60 }
 0x5e1   : > { %6597 = vmatmul.mubr.msk.bf16.vlgmr.msra.gmra.mrb[12].mxu1 %vm1282_vm2, %v1318_v61 }
 0x5e2   : > { %6601 = vmatpush3.bf16.xpose.msra.mxu1 %v1399_v63  ;;  %6604 = vmatprep.mubr.msk.bf16.mxu1 %vm1221_vm1, %v1383_v62 }
 0x5e3   : > { %6819 = vmatprep.subr.msk.bf16.mxu1 %vm1221_vm1, %v1391_v53 }
 0x5ea   : > { %6603 = vmatpush3.bf16.xpose.msra.mxu1 %v1402_v0 }
 0x5f1   : > { %6605 = vmatmul.mubr.msk.bf16.vlgmr.msra.gmra.mrb[16].mxu1 %vm1221_vm1, %v1385_v1 }
 0x6b4   : > { %v8060_v2 = vpop.f32.mrb[12].mxu1 }
 0x6b5   : > { %v8062_v3 = vpop.f32.mrb[13].mxu1  ;;  %v1379_v59 = vpack.c.bf16 %v8060_v2, %v8060_v2 }
 0x6b6   : > { %v6599_v4 = vpop.f32.mrb[14].mxu1 }
 0x6b7   : > { %v8064_v5 = vpop.f32.mrb[15].mxu1 }
 0x6b8   : > { %v1378_v6 = vpack.c.bf16 %v8064_v5, %v8062_v3 }
 0x6c4   : > { %v6606_v7 = vpop.f32.mrb[16].mxu1 }
 0x6c5   : > { %v1438_v10 = vpop.f32.mrb[17].mxu1  ;;  %v1458_v19 = vsel %vm1289_vm3, %v6606_v7, -inf }
 0x6c6   : > { %v6607_v12 = vpop.f32.mrb[18].mxu1  ;;  %v1452_v13 = vsel %vm1282_vm2, %v1438_v10, -inf }
 0x6c7   : > { %1453 = vmax.xlane.f32.xlu0 %v1452_v13  ;;  %v1441_v17 = vpop.f32.mrb[19].mxu1 }
 0x6c8   : > { %v1455_v18 = vsel %vm1282_vm2, %v1441_v17, -inf }
 0x6c9   : > { %1456 = vmax.xlane.f32.xlu1 %v1455_v18 }
 0x6cb   : > { %1459 = vmax.xlane.f32.xlu0 %v1458_v19 }
 0x754   : > { %v1454_v20 = vpop.xlane.xlu0 %1453 }
 0x755   : > { %v1461_v21 = vsub.f32 %v1438_v10, %v1454_v20 }
 0x756   : > { %v1457_v22 = vpop.xlane.xlu1 %1456 }
 0x757   : > { %v1464_v23 = vmul.f32 1.442695, %v1461_v21  ;;  %v1462_v24 = vsub.f32 %v1441_v17, %v1457_v22 }
 0x758   : > { %v1460_v25 = vpop.xlane.xlu0 %1459 }
 0x759   : > { %7190 = vpow2.f32 %v1464_v23  ;;  %v1466_v26 = vmul.f32 1.442695, %v1462_v24  ;;  %v1463_v28 = vsub.f32 %v6606_v7, %v1460_v25 }
 0x75b   : > { %7192 = vpow2.f32 %v1466_v26  ;;  %v1468_v29 = vmul.f32 1.442695, %v1463_v28 }
 0x75d   : > { %7194 = vpow2.f32 %v1468_v29 }
 0x763   : > { %v7191_v31 = vpop.eup %7190 }
 0x764   : > { %v1470_v32 = vsel %vm1282_vm2, %v7191_v31, 0.0 }
 0x765   : > { %v7193_v33 = vpop.eup %7192  ;;  %1471 = vadd.xlane.f32.xlu0 %v1470_v32 }
 0x766   : > { %v1473_v36 = vsel %vm1282_vm2, %v7193_v33, 0.0 }
 0x767   : > { %v7195_v34 = vpop.eup %7194 }
 0x768   : > { %v1476_v35 = vsel %vm1289_vm3, %v7195_v34, 0.0 }
 0x769   : > { %1477 = vadd.xlane.f32.xlu1 %v1476_v35  ;;  %1474 = vadd.xlane.f32.xlu0 %v1473_v36 }
 0x77a   : > { %1491 = vrot.lane.b32.xlu1 %v8025_v14, %s7564_s20 }
 0x77e   : > { %1689 = vrot.lane.b32.xlu1 %v8007_v58, %s7565_s2 }
 0x77f   : > { %1489 = vrot.lane.b32.xlu0 %v8018_v9, %s7564_s20 }
 0x782   : > { %1691 = vrot.lane.b32.xlu1 %v8016_v8, %s7565_s2 }
 0x783   : > { %1685 = vrot.lane.b32.xlu0 %v8005_v57, %s7565_s2 }
 0x786   : > { %1687 = vrot.lane.b32.xlu1 %v8031_v16, %s7565_s2 }
 0x787   : > { %1925 = vrot.lane.b32.xlu0 %v8007_v58, %s7566_s0  ;;  %v6958_v58 = vld [vmem:[#allocation6] sm:$0xff]  }
 0x78a   : > { %1927 = vrot.lane.b32.xlu1 %v8016_v8, %s7566_s0 }
 0x78b   : > { %1921 = vrot.lane.b32.xlu0 %v8005_v57, %s7566_s0 }
 0x78e   : > { %1923 = vrot.lane.b32.xlu1 %v8031_v16, %s7566_s0 }
 0x7f2   : > { %v1472_v40 = vpop.xlane.xlu0 %1471 }
 0x7f3   : > { %7196 = vrcp.f32 %v1472_v40 }
 0x7f6   : > { %v1475_v41 = vpop.xlane.xlu0 %1474  ;;  %v1478_v44 = vpop.xlane.xlu1 %1477 }
 0x7f7   : > { %7198 = vrcp.f32 %v1475_v41 }
 0x7f8   : > { %7200 = vrcp.f32 %v1478_v44 }
 0x7fa   : > { %v1490_v46 = vpop.permute.xlu0 %1489  ;;  %v1492_v47 = vpop.permute.xlu1 %1491 }
 0x7fb   : > { %v1501_v48 = vand.u32 %v1492_v47, %v8029_v15  ;;  %6608 = vmatprep.subr.bf16.mxu1 %v1490_v46 }
 0x7fc   : > { %6609 = vmatpush3.bf16.msra.mxu1 %v1490_v46 }
 0x7fd   : > { %6610 = vmatprep.subr.bf16.mxu1 %v1501_v48  ;;  %v7197_v49 = vpop.eup %7196 }
 0x7fe   : > { %v1690_v8 = vpop.permute.xlu1 %1689  ;;  %v1482_v50 = vmul.f32 %v7197_v49, %v7191_v31  ;;  %v1686_v4 = vpop.permute.xlu0 %1685 }
 0x7ff   : > { %6820 = vmatprep.subr.msk.bf16.mxu0 %vm1221_vm1, %v1690_v8  ;;  %v1700_v3 = vsel %vm1221_vm1, %v1690_v8, 0 }
 0x800   : > { %6611 = vmatpush3.bf16.msra.mxu1 %v1501_v48 }
 0x801   : > { %v7199_v57 = vpop.eup %7198  ;;  %6624 = vmatprep.subr.bf16.mxu1 %v6958_v58 }
 0x802   : > { %v7201_v16 = vpop.eup %7200  ;;  %v1483_v52 = vmul.f32 %v7199_v57, %v7193_v33  ;;  %v1692_v5 = vpop.permute.xlu1 %1691 }
 0x803   : > { %v1484_v53 = vmul.f32 %v7201_v16, %v7195_v34  ;;  %v1703_v12 = vsel %vm1221_vm1, %v1692_v5, 0  ;;  %v1926_v13 = vpop.permute.xlu0 %1925 }
 0x804   : > { %v1485_v54 = vpack.c.bf16 %v1483_v52, %v1482_v50  ;;  %v1936_v18 = vsel %vm1221_vm1, %v1926_v13, 0 }
 0x805   : > { %v1486_v55 = vpack.c.bf16 %v1484_v53, %v1484_v53 }
 0x806   : > { %6612 = vmatprep.mubr.msk.bf16.mxu1 %vm1282_vm2, %v1485_v54  ;;  %v1688_v17 = vpop.permute.xlu1 %1687 }
 0x807   : > { %6613 = vmatmul.mubr.msk.bf16.vlgmr.msra.gmra.mrb[20].mxu1 %vm1282_vm2, %v1486_v55  ;;  %v1922_v19 = vpop.permute.xlu0 %1921 }
 0x808   : > { %6625 = vmatpush3.bf16.msra.mxu1 %v6958_v58  ;;  %6628 = vmatprep.mubr.msk.bf16.mxu1 %vm1221_vm1, %v1378_v6 }
 0x809   : > { %6626 = vmatprep.subr.bf16.mxu1 %v6959_v56 }
 0x80a   : > { %v1928_v20 = vpop.permute.xlu1 %1927 }
 0x80b   : > { %v1939_v21 = vsel %vm1221_vm1, %v1928_v20, 0 }
 0x80c   : > { %6627 = vmatpush3.bf16.msra.mxu1 %v6959_v56 }
 0x80e   : > { %v1924_v22 = vpop.permute.xlu1 %1923 }
 0x80f   : > { %6629 = vmatmul.mubr.msk.bf16.vlgmr.msra.gmra.mrb[24].mxu1 %vm1221_vm1, %v1379_v59 }
 0x8da   : > { %v6614_v60 = vpop.f32.mrb[20].mxu1 }
 0x8db   : > { %v1537_v61 = vpop.f32.mrb[21].mxu1  ;;  %v1552_v1 = vpack.c.bf16 %v6614_v60, %v6614_v60 }
 0x8dc   : > { %v6615_v62 = vpop.f32.mrb[22].mxu1 }
 0x8dd   : > { %v1540_v63 = vpop.f32.mrb[23].mxu1 }
 0x8de   : > { %v1551_v0 = vpack.c.bf16 %v1540_v63, %v1537_v61 }
 0x8e0   : > { %6620 = vmatprep.mubr.msk.bf16.mxu0 %vm1221_vm1, %v1551_v0 }
 0x8e1   : > { %6621 = vmatmul.mubr.msk.bf16.vlgmr.msra.gmra.mrb[12].mxu0 %vm1221_vm1, %v1552_v1 }
 0x8e2   : > { %6633 = vmatpush3.bf16.xpose.msra.mxu0 %v1700_v3  ;;  %v6630_v6 = vpop.f32.mrb[24].mxu1  ;;  %6636 = vmatprep.mubr.msk.bf16.mxu0 %vm1221_vm1, %v1686_v4 }
 0x8e3   : > { %6821 = vmatprep.subr.msk.bf16.mxu0 %vm1221_vm1, %v1692_v5  ;;  %v1671_v2 = vpop.f32.mrb[25].mxu1 }
 0x8e4   : > { %v6631_v7 = vpop.f32.mrb[26].mxu1 }
 0x8e5   : > { %v1674_v10 = vpop.f32.mrb[27].mxu1 }
 0x8ea   : > { %6635 = vmatpush3.bf16.xpose.msra.mxu0 %v1703_v12 }
 0x8eb   : > { %6822 = vmatprep.subr.msk.bf16.mxu0 %vm1221_vm1, %v1926_v13 }
 0x8f1   : > { %6637 = vmatmul.mubr.msk.bf16.vlgmr.msra.gmra.mrb[16].mxu0 %vm1221_vm1, %v1688_v17 }
 0x8f2   : > { %6657 = vmatpush3.bf16.xpose.msra.mxu0 %v1936_v18  ;;  %6660 = vmatprep.mubr.msk.bf16.mxu0 %vm1221_vm1, %v1922_v19 }
 0x8f3   : > { %6823 = vmatprep.subr.msk.bf16.mxu0 %vm1221_vm1, %v1928_v20 }
 0x8fa   : > { %6659 = vmatpush3.bf16.xpose.msra.mxu0 %v1939_v21 }
 0x901   : > { %6661 = vmatmul.mubr.msk.bf16.vlgmr.msra.gmra.mrb[20].mxu0 %vm1221_vm1, %v1924_v22 }
 0x902   : > { %2467 = vmatprep.mubr.bf16.mxu0 %v9432_v11 }
 0x9b4   : > { %v6622_v23 = vpop.f32.mrb[12].mxu0 }
 0x9b5   : > { %v8119_v24 = vadd.f32 %v6630_v6, %v6622_v23  ;;  %v1605_v25 = vpop.f32.mrb[13].mxu0 }
 0x9b6   : > { %v8121_v26 = vadd.f32 %v1671_v2, %v1605_v25  ;;  %v6623_v28 = vpop.f32.mrb[14].mxu0  ;;  %v6960_v2 = vld [vmem:[#allocation6 + $0x20] sm:$0xff]  }
 0x9b7   : > { %v1608_v29 = vpop.f32.mrb[15].mxu0 }
 0x9b8   : > { %v8123_v31 = vadd.f32 %v1674_v10, %v1608_v29 }
 0x9c4   : > { %v6638_v32 = vpop.f32.mrb[16].mxu0 }
 0x9c5   : > { %v1739_v33 = vpop.f32.mrb[17].mxu0  ;;  %v1759_v39 = vsel %vm1289_vm3, %v6638_v32, -inf }
 0x9c6   : > { %v6639_v34 = vpop.f32.mrb[18].mxu0  ;;  %v1753_v35 = vsel %vm1282_vm2, %v1739_v33, -inf }
 0x9c7   : > { %1754 = vmax.xlane.f32.xlu0 %v1753_v35  ;;  %v1742_v36 = vpop.f32.mrb[19].mxu0 }
 0x9c8   : > { %v1756_v38 = vsel %vm1282_vm2, %v1742_v36, -inf }
 0x9c9   : > { %1757 = vmax.xlane.f32.xlu1 %v1756_v38 }
 0x9cb   : > { %1760 = vmax.xlane.f32.xlu0 %v1759_v39 }
 0x9d4   : > { %v8128_v40 = vpop.f32.mrb[20].mxu0 }
 0x9d5   : > { %v8130_v41 = vpop.f32.mrb[21].mxu0  ;;  %v1995_v63 = vsel %vm1289_vm3, %v8128_v40, -inf }
 0x9d6   : > { %v6663_v44 = vpop.f32.mrb[22].mxu0  ;;  %v1989_v61 = vsel %vm1282_vm2, %v8130_v41, -inf }
 0x9d7   : > { %v1978_v46 = vpop.f32.mrb[23].mxu0 }
 0x9d8   : > { %v1992_v62 = vsel %vm1282_vm2, %v1978_v46, -inf }
 0xa54   : > { %v1755_v47 = vpop.xlane.xlu0 %1754 }
 0xa55   : > { %v1762_v48 = vsub.f32 %v1739_v33, %v1755_v47 }
 0xa56   : > { %v1758_v58 = vpop.xlane.xlu1 %1757 }
 0xa57   : > { %v1765_v8 = vmul.f32 1.442695, %v1762_v48  ;;  %v1763_v49 = vsub.f32 %v1742_v36, %v1758_v58 }
 0xa58   : > { %v1761_v57 = vpop.xlane.xlu0 %1760 }
 0xa59   : > { %7202 = vpow2.f32 %v1765_v8  ;;  %v1767_v16 = vmul.f32 1.442695, %v1763_v49  ;;  %v1764_v50 = vsub.f32 %v6638_v32, %v1761_v57 }
 0xa5b   : > { %7204 = vpow2.f32 %v1767_v16  ;;  %v1769_v52 = vmul.f32 1.442695, %v1764_v50 }
 0xa5d   : > { %7206 = vpow2.f32 %v1769_v52 }
 0xa63   : > { %v7203_v53 = vpop.eup %7202 }
 0xa64   : > { %v1771_v54 = vsel %vm1282_vm2, %v7203_v53, 0.0 }
 0xa65   : > { %v7205_v55 = vpop.eup %7204  ;;  %1772 = vadd.xlane.f32.xlu0 %v1771_v54 }
 0xa66   : > { %v1774_v60 = vsel %vm1282_vm2, %v7205_v55, 0.0 }
 0xa67   : > { %v7207_v56 = vpop.eup %7206 }
 0xa68   : > { %v1777_v59 = vsel %vm1289_vm3, %v7207_v56, 0.0 }
 0xa69   : > { %1778 = vadd.xlane.f32.xlu1 %v1777_v59  ;;  %1775 = vadd.xlane.f32.xlu0 %v1774_v60 }
 0xa7a   : > { %1790 = vrot.lane.b32.xlu1 %v8025_v14, %s7565_s2 }
 0xa7f   : > { %1788 = vrot.lane.b32.xlu0 %v8018_v9, %s7565_s2 }
 0xa9e   : > { %1990 = vmax.xlane.f32.xlu1 %v1989_v61  ;;  %1993 = vmax.xlane.f32.xlu0 %v1992_v62 }
 0xaa2   : > { %1996 = vmax.xlane.f32.xlu0 %v1995_v63  ;;  %v6962_v63 = vld [vmem:[#allocation6 + $0x30] sm:$0xff]  }
 0xaf2   : > { %v1773_v0 = vpop.xlane.xlu0 %1772 }
 0xaf3   : > { %7208 = vrcp.f32 %v1773_v0  ;;  %v6963_v0 = vld [vmem:[#allocation6 + $0x38] sm:$0xff]  }
 0xaf6   : > { %v1776_v1 = vpop.xlane.xlu0 %1775  ;;  %v1779_v4 = vpop.xlane.xlu1 %1778 }
 0xaf7   : > { %7210 = vrcp.f32 %v1776_v1 }
 0xaf8   : > { %7212 = vrcp.f32 %v1779_v4 }
 0xafa   : > { %v1789_v3 = vpop.permute.xlu0 %1788  ;;  %v1791_v5 = vpop.permute.xlu1 %1790 }
 0xafb   : > { %v1800_v6 = vand.u32 %v1791_v5, %v8029_v15  ;;  %6640 = vmatprep.subr.bf16.mxu1 %v1789_v3 }
 0xafc   : > { %6641 = vmatpush3.bf16.msra.mxu1 %v1789_v3 }
 0xafd   : > { %6642 = vmatprep.subr.bf16.mxu1 %v1800_v6  ;;  %v7209_v7 = vpop.eup %7208 }
 0xafe   : > { %v1783_v13 = vmul.f32 %v7209_v7, %v7203_v53 }
 0xb00   : > { %6643 = vmatpush3.bf16.msra.mxu1 %v1800_v6 }
 0xb01   : > { %v7211_v10 = vpop.eup %7210  ;;  %6648 = vmatprep.subr.bf16.mxu1 %v6960_v2 }
 0xb02   : > { %v7213_v12 = vpop.eup %7212  ;;  %v1784_v17 = vmul.f32 %v7211_v10, %v7205_v55 }
 0xb03   : > { %v1785_v18 = vmul.f32 %v7213_v12, %v7207_v56 }
 0xb04   : > { %v1786_v19 = vpack.c.bf16 %v1784_v17, %v1783_v13 }
 0xb05   : > { %v1787_v20 = vpack.c.bf16 %v1785_v18, %v1785_v18 }
 0xb06   : > { %6644 = vmatprep.mubr.msk.bf16.mxu1 %vm1282_vm2, %v1786_v19 }
 0xb07   : > { %6645 = vmatmul.mubr.msk.bf16.vlgmr.msra.gmra.mrb[28].mxu1 %vm1282_vm2, %v1787_v20 }
 0xb08   : > { %6649 = vmatpush3.bf16.msra.mxu1 %v6960_v2 }
 0xb2b   : > { %v1994_v21 = vpop.xlane.xlu0 %1993  ;;  %v1991_v22 = vpop.xlane.xlu1 %1990 }
 0xb2c   : > { %v1999_v23 = vsub.f32 %v1978_v46, %v1994_v21  ;;  %v1998_v28 = vsub.f32 %v8130_v41, %v1991_v22  ;;  %v6961_v41 = vld [vmem:[#allocation6 + $0x28] sm:$0xff]  }
 0xb2d   : > { %6650 = vmatprep.subr.bf16.mxu1 %v6961_v41 }
 0xb2e   : > { %v2003_v25 = vmul.f32 1.442695, %v1999_v23  ;;  %v2001_v33 = vmul.f32 1.442695, %v1998_v28  ;;  %6651 = vmatpush3.bf16.msra.mxu1 %v6961_v41  ;;  %v5964_v23 = vld [vmem:[#allocation7] ss:$0 sm:$0xff] }
 0xb2f   : > { %v1997_v29 = vpop.xlane.xlu0 %1996  ;;  %v6973_v41 = vld [vmem:[%s9416_s11 + $0x28] ss:$16 sps:$4 sm:$0xff]  }
 0xb30   : > { %7214 = vpow2.f32 %v2003_v25  ;;  %v2000_v32 = vsub.f32 %v8128_v40, %v1997_v29 }
 0xb32   : > { %v2005_v34 = vmul.f32 1.442695, %v2000_v32 }
 0xb34   : > { %7216 = vpow2.f32 %v2005_v34 }
 0xb35   : > { %7218 = vpow2.f32 %v2001_v33 }
 0xb3a   : > { %v7215_v35 = vpop.eup %7214 }
 0xb3b   : > { %v2010_v36 = vsel %vm1282_vm2, %v7215_v35, 0.0 }
 0xb3c   : > { %2011 = vadd.xlane.f32.xlu0 %v2010_v36 }
 0xb3e   : > { %v7217_v38 = vpop.eup %7216 }
 0xb3f   : > { %v2013_v39 = vsel %vm1289_vm3, %v7217_v38, 0.0  ;;  %v7219_v44 = vpop.eup %7218 }
 0xb40   : > { %2014 = vadd.xlane.f32.xlu1 %v2013_v39  ;;  %v2007_v46 = vsel %vm1282_vm2, %v7219_v44, 0.0  ;;  %v6972_v39 = vld [vmem:[%s9416_s11 + $0x24] ss:$16 sps:$4 sm:$0xff]  }
 0xb44   : > { %2008 = vadd.xlane.f32.xlu1 %v2007_v46  ;;  %v6970_v46 = vld [vmem:[%s9416_s11 + $0x20] ss:$16 sps:$4 sm:$0xff]  }
 0xb52   : > { %2024 = vrot.lane.b32.xlu0 %v8018_v9, %s7566_s0 }
 0xb55   : > { %2026 = vrot.lane.b32.xlu1 %v8025_v14, %s7566_s0 }
 0xbc9   : > { %v2012_v40 = vpop.xlane.xlu0 %2011 }
 0xbca   : > { %7220 = vrcp.f32 %v2012_v40 }
 0xbcd   : > { %v2025_v47 = vpop.permute.xlu0 %2024  ;;  %v2015_v48 = vpop.xlane.xlu1 %2014 }
 0xbce   : > { %6664 = vmatprep.subr.bf16.mxu1 %v2025_v47 }
 0xbd1   : > { %v2009_v58 = vpop.xlane.xlu1 %2008 }
 0xbd2   : > { %7222 = vrcp.f32 %v2009_v58 }
 0xbd3   : > { %7224 = vrcp.f32 %v2015_v48 }
 0xbd4   : > { %v7221_v8 = vpop.eup %7220 }
 0xbd5   : > { %v2020_v54 = vmul.f32 %v7221_v8, %v7215_v35  ;;  %v2027_v9 = vpop.permute.xlu1 %2026 }
 0xbd6   : > { %v2036_v60 = vand.u32 %v2027_v9, %v8029_v15 }
 0xbda   : > { %v6646_v49 = vpop.f32.mrb[28].mxu1 }
 0xbdb   : > { %v1836_v57 = vpop.f32.mrb[29].mxu1  ;;  %v1851_v56 = vpack.c.bf16 %v6646_v49, %v6646_v49 }
 0xbdc   : > { %v7223_v16 = vpop.eup %7222  ;;  %v6647_v50 = vpop.f32.mrb[30].mxu1 }
 0xbdd   : > { %v1839_v52 = vpop.f32.mrb[31].mxu1  ;;  %v2019_v53 = vmul.f32 %v7223_v16, %v7219_v44  ;;  %v7225_v59 = vpop.eup %7224  ;;  %v6975_v44 = vld [vmem:[%s9416_s11 + $0x2c] ss:$16 sps:$4 sm:$0xff]  }
 0xbde   : > { %v1850_v55 = vpack.c.bf16 %v1839_v52, %v1836_v57  ;;  %v2021_v61 = vmul.f32 %v7225_v59, %v7217_v38  ;;  %v6969_v38 = vld [vmem:[%s9416_s11 + $0xc] ss:$16 sps:$4 sm:$0xff]   ;;  %v6979_v59 = vld [vmem:[%s9416_s11 + $0x48] ss:$16 sps:$4 sm:$0xff]  }
 0xbdf   : > { %v2022_v14 = vpack.c.bf16 %v2020_v54, %v2019_v53 }
 0xbe0   : > { %6652 = vmatprep.mubr.msk.bf16.mxu1 %vm1221_vm1, %v1850_v55  ;;  %v2023_v62 = vpack.c.bf16 %v2021_v61, %v2021_v61  ;;  %v6978_v55 = vld [vmem:[%s9416_s11 + $0x44] ss:$16 sps:$4 sm:$0xff]   ;;  %v6987_v61 = vld [vmem:[%s9416_s11 + $0x6c] ss:$16 sps:$4 sm:$0xff]  }
 0xbe1   : > { %6653 = vmatmul.mubr.msk.bf16.vlgmr.msra.gmra.mrb[32].mxu1 %vm1221_vm1, %v1851_v56  ;;  %v6981_v56 = vld [vmem:[%s9416_s11 + $0x4c] ss:$16 sps:$4 sm:$0xff]  }
 0xbe2   : > { %6665 = vmatpush3.bf16.msra.mxu1 %v2025_v47  ;;  %6668 = vmatprep.mubr.msk.bf16.mxu1 %vm1282_vm2, %v2022_v14  ;;  %v6976_v14 = vld [vmem:[%s9416_s11 + $0x40] ss:$16 sps:$4 sm:$0xff]  }
 0xbe3   : > { %6666 = vmatprep.subr.bf16.mxu1 %v2036_v60 }
 0xbe6   : > { %6667 = vmatpush3.bf16.msra.mxu1 %v2036_v60  ;;  %v6984_v60 = vld [vmem:[%s9416_s11 + $0x64] ss:$16 sps:$4 sm:$0xff]  }
 0xbe7   : > { %6672 = vmatprep.subr.bf16.mxu1 %v6962_v63 }
 0xbe9   : > { %6669 = vmatmul.mubr.msk.bf16.vlgmr.msra.gmra.mrb[36].mxu1 %vm1282_vm2, %v2023_v62  ;;  %v6982_v62 = vld [vmem:[%s9416_s11 + $0x60] ss:$16 sps:$4 sm:$0xff]  }
 0xbea   : > { %6673 = vmatpush3.bf16.msra.mxu1 %v6962_v63  ;;  %v6985_v63 = vld [vmem:[%s9416_s11 + $0x68] ss:$16 sps:$4 sm:$0xff]  }
 0xbeb   : > { %6674 = vmatprep.subr.bf16.mxu1 %v6963_v0 }
 0xbee   : > { %6675 = vmatpush3.bf16.msra.mxu1 %v6963_v0  ;;  %v6990_v0 = vld [vmem:[%s9416_s11 + $0x84] ss:$16 sps:$4 sm:$0xff]  }
 0xbef   : > { %2486 = vmatprep.subr.bf16.mxu1 %v6969_v38 }
 0xcb4   : > { %v6654_v1 = vpop.f32.mrb[32].mxu1 }
 0xcb5   : > { %v1920_v4 = vadd.f32 %v6654_v1, %v8119_v24  ;;  %v1904_v3 = vpop.f32.mrb[33].mxu1  ;;  %v6993_v1 = vld [vmem:[%s9416_s11 + $0x8c] ss:$16 sps:$4 sm:$0xff]  }
 0xcb6   : > { %v1918_v5 = vadd.f32 %v1904_v3, %v8121_v26  ;;  %v6655_v6 = vpop.f32.mrb[34].mxu1  ;;  %v6991_v3 = vld [vmem:[%s9416_s11 + $0x88] ss:$16 sps:$4 sm:$0xff]  }
 0xcb7   : > { %v1907_v2 = vpop.f32.mrb[35].mxu1  ;;  %v6999_v6 = vld [vmem:[%s9416_s11 + $0xac] ss:$16 sps:$4 sm:$0xff]  }
 0xcb8   : > { %v1919_v7 = vadd.f32 %v1907_v2, %v8123_v31  ;;  %v6994_v2 = vld [vmem:[%s9416_s11 + $0xa0] ss:$16 sps:$4 sm:$0xff]  }
 0xcbc   : > { %v6670_v10 = vpop.f32.mrb[36].mxu1 }
 0xcbd   : > { %v2072_v12 = vpop.f32.mrb[37].mxu1  ;;  %v2087_v19 = vpack.c.bf16 %v6670_v10, %v6670_v10  ;;  %v7002_v10 = vld [vmem:[%s9416_s11 + $0xc4] ss:$16 sps:$4 sm:$0xff]  }
 0xcbe   : > { %v6671_v13 = vpop.f32.mrb[38].mxu1 }
 0xcbf   : > { %v2075_v17 = vpop.f32.mrb[39].mxu1  ;;  %v7000_v13 = vld [vmem:[%s9416_s11 + $0xc0] ss:$16 sps:$4 sm:$0xff]  }
 0xcc0   : > { %v2086_v18 = vpack.c.bf16 %v2075_v17, %v2072_v12  ;;  %v7005_v12 = vld [vmem:[%s9416_s11 + $0xcc] ss:$16 sps:$4 sm:$0xff]   ;;  %v7003_v17 = vld [vmem:[%s9416_s11 + $0xc8] ss:$16 sps:$4 sm:$0xff]  }
 0xcc2   : > { %6676 = vmatprep.mubr.msk.bf16.mxu1 %vm1221_vm1, %v2086_v18  ;;  %v7008_v18 = vld [vmem:[%s9416_s11 + $0xe4] ss:$16 sps:$4 sm:$0xff]  }
 0xcc3   : > { %6677 = vmatmul.mubr.msk.bf16.vlgmr.msra.gmra.mrb[40].mxu1 %vm1221_vm1, %v2087_v19  ;;  %v7011_v19 = vld [vmem:[%s9416_s11 + $0xec] ss:$16 sps:$4 sm:$0xff]  }
 0xcc4   : > { %2518 = vmatprep.mubr.bf16.mxu1 %v9432_v11 }
 0xd96   : > { %v6678_v24 = vpop.f32.mrb[40].mxu1 }
 0xd97   : > { %v2156_v20 = vadd.f32 %v6678_v24, %v1920_v4  ;;  %v2140_v21 = vpop.f32.mrb[41].mxu1  ;;  %v6988_v4 = vld [vmem:[%s9416_s11 + $0x80] ss:$16 sps:$4 sm:$0xff]  }
 0xd98   : > { %v2154_v26 = vadd.f32 %v2140_v21, %v1918_v5  ;;  %v6679_v22 = vpop.f32.mrb[42].mxu1  ;;  %v6996_v5 = vld [vmem:[%s9416_s11 + $0xa4] ss:$16 sps:$4 sm:$0xff]   ;;  %v7006_v24 = vld [vmem:[%s9416_s11 + $0xe0] ss:$16 sps:$4 sm:$0xff]  }
 0xd99   : > { %v2143_v25 = vpop.f32.mrb[43].mxu1  ;;  %v2159_v29 = vadd.f32 %v2156_v20, %v7889_v37  ;;  %v6967_v37 = vld [vmem:[%s9416_s11 + $0x8] ss:$16 sps:$4 sm:$0xff]  }
 0xd9a   : > { %v2157_v31 = vadd.f32 %v2154_v26, %v7883_v27  ;;  %v2155_v28 = vadd.f32 %v2143_v25, %v1919_v7  ;;  %v6964_v27 = vld [vmem:[%s9416_s11] ss:$16 sps:$4 sm:$0xff]   ;;  %2487 = vmatpush1.bf16.msra.mxu1 %v6967_v37  ;;  %v6997_v7 = vld [vmem:[%s9416_s11 + $0xa8] ss:$16 sps:$4 sm:$0xff]  }
 0xd9b   : > { %v8175_v35 = vadd.f32 %v5964_v23, %v2159_v29  ;;  %2488 = vmatprep.subr.bf16.mxu1 %v6975_v44  ;;  %v7009_v20 = vld [vmem:[%s9416_s11 + $0xe8] ss:$16 sps:$4 sm:$0xff]   ;;  %v5966_v44 = vld [vmem:[%s9415_s10] ss:$0 sm:$0xff] }
 0xd9c   : > { %v2158_v32 = vadd.f32 %v2155_v28, %v7886_v30  ;;  %v8170_v33 = vadd.f32 %v5964_v23, %v2157_v31  ;;  %v6966_v30 = vld [vmem:[%s9416_s11 + $0x4] ss:$16 sps:$4 sm:$0xff]  }
 0xd9d   : > { %v2174_v36 = vsel %vm874_vm0, %v8175_v35, 0.0  ;;  %2435 = vmatprep.subr.bf16.mxu0 %v6966_v30 }
 0xd9e   : > { %2170 = vadd.xlane.f32.xlu1 %v8170_v33  ;;  %v8173_v34 = vadd.f32 %v5964_v23, %v2158_v32  ;;  %2436 = vmatpush1.bf16.msra.mxu0 %v6964_v27  ;;  %v5965_v27 = vld [vmem:[%s9414_s9] ss:$0 sm:$0xff] }
 0xd9f   : > { %2437 = vmatprep.subr.bf16.mxu0 %v6972_v39  ;;  %2489 = vmatpush1.bf16.msra.mxu1 %v6973_v41 }
 0xda0   : > { %2172 = vadd.xlane.f32.xlu0 %v8173_v34  ;;  %2490 = vmatprep.subr.bf16.mxu1 %v6981_v56  ;;  %v7019_v56 = vld [vmem:[%s9418_s13 + $0x88] sm:$0xff]  }
 0xda2   : > { %2438 = vmatpush1.bf16.msra.mxu0 %v6970_v46 }
 0xda3   : > { %2439 = vmatprep.subr.bf16.mxu0 %v6978_v55  ;;  %2491 = vmatpush1.bf16.msra.mxu1 %v6979_v59  ;;  %v7018_v55 = vld [vmem:[%s9418_s13 + $0x8] sm:$0xff]   ;;  %v7021_v59 = vld [vmem:[%s9418_s13 + $0xd0] sm:$0xff]  }
 0xda4   : > { %2175 = vadd.xlane.f32.xlu0 %v2174_v36  ;;  %2492 = vmatprep.subr.bf16.mxu1 %v6987_v61  ;;  %v7023_v61 = vld [vmem:[%s9418_s13 + $0x90] sm:$0xff]  }
 0xda6   : > { %2440 = vmatpush1.bf16.msra.mxu0 %v6976_v14  ;;  %v7020_v14 = vld [vmem:[%s9418_s13 + $0x50] sm:$0xff]  }
 0xda7   : > { %2441 = vmatprep.subr.bf16.mxu0 %v6984_v60  ;;  %2493 = vmatpush1.bf16.msra.mxu1 %v6985_v63  ;;  %v7022_v60 = vld [vmem:[%s9418_s13 + $0x10] sm:$0xff]   ;;  %v7025_v63 = vld [vmem:[%s9418_s13 + $0xd8] sm:$0xff]  }
 0xda8   : > { %2494 = vmatprep.subr.bf16.mxu1 %v6993_v1  ;;  %v7027_v1 = vld [vmem:[%s9418_s13 + $0x98] sm:$0xff]  }
 0xdaa   : > { %2442 = vmatpush1.bf16.msra.mxu0 %v6982_v62  ;;  %v7024_v62 = vld [vmem:[%s9418_s13 + $0x58] sm:$0xff]  }
 0xdab   : > { %2443 = vmatprep.subr.bf16.mxu0 %v6990_v0  ;;  %2495 = vmatpush1.bf16.msra.mxu1 %v6991_v3  ;;  %v7026_v0 = vld [vmem:[%s9418_s13 + $0x18] sm:$0xff]   ;;  %v7029_v3 = vld [vmem:[%s9418_s13 + $0xe0] sm:$0xff]  }
 0xdac   : > { %2496 = vmatprep.subr.bf16.mxu1 %v6999_v6  ;;  %v7031_v6 = vld [vmem:[%s9418_s13 + $0xa0] sm:$0xff]  }
 0xdae   : > { %2444 = vmatpush1.bf16.msra.mxu0 %v6988_v4  ;;  %v7028_v4 = vld [vmem:[%s9418_s13 + $0x60] sm:$0xff]  }
 0xdaf   : > { %2445 = vmatprep.subr.bf16.mxu0 %v6996_v5  ;;  %2497 = vmatpush1.bf16.msra.mxu1 %v6997_v7  ;;  %v7030_v5 = vld [vmem:[%s9418_s13 + $0x20] sm:$0xff]   ;;  %v7033_v7 = vld [vmem:[%s9418_s13 + $0xe8] sm:$0xff]  }
 0xdb0   : > { %2498 = vmatprep.subr.bf16.mxu1 %v7005_v12  ;;  %v7035_v12 = vld [vmem:[%s9418_s13 + $0xa8] sm:$0xff]  }
 0xdb2   : > { %2446 = vmatpush1.bf16.msra.mxu0 %v6994_v2  ;;  %v7032_v2 = vld [vmem:[%s9418_s13 + $0x68] sm:$0xff]  }
 0xdb3   : > { %2447 = vmatprep.subr.bf16.mxu0 %v7002_v10  ;;  %2499 = vmatpush1.bf16.msra.mxu1 %v7003_v17  ;;  %v7034_v10 = vld [vmem:[%s9418_s13 + $0x28] sm:$0xff]   ;;  %v7037_v17 = vld [vmem:[%s9418_s13 + $0xf0] sm:$0xff]  }
 0xdb4   : > { %2500 = vmatprep.subr.bf16.mxu1 %v7011_v19  ;;  %v7039_v19 = vld [vmem:[%s9418_s13 + $0xb0] sm:$0xff]  }
 0xdb6   : > { %2448 = vmatpush1.bf16.msra.mxu0 %v7000_v13  ;;  %v7036_v13 = vld [vmem:[%s9418_s13 + $0x70] sm:$0xff]  }
 0xdb7   : > { %2449 = vmatprep.subr.bf16.mxu0 %v7008_v18  ;;  %2501 = vmatpush1.bf16.msra.mxu1 %v7009_v20  ;;  %v7038_v18 = vld [vmem:[%s9418_s13 + $0x30] sm:$0xff]   ;;  %v7041_v20 = vld [vmem:[%s9418_s13 + $0xf8] sm:$0xff]  }
 0xdba   : > { %2450 = vmatpush1.bf16.msra.mxu0 %v7006_v24  ;;  %v7040_v24 = vld [vmem:[%s9418_s13 + $0x78] sm:$0xff]  }
 0xe2b   : > { %v2171_v40 = vpop.xlane.xlu1 %2170 }
 0xe2c   : > { %v2177_v47 = vmul.f32 0.0078125, %v2171_v40 }
 0xe2d   : > { %v2173_v48 = vpop.xlane.xlu0 %2172 }
 0xe2e   : > { %v8205_v58 = vsub.f32 %v8170_v33, %v2177_v47  ;;  %v2178_v8 = vmul.f32 0.0078125, %v2173_v48 }
 0xe30   : > { %v8208_v49 = vsub.f32 %v8173_v34, %v2178_v8  ;;  %v2183_v57 = vmul.f32 %v8205_v58, %v8205_v58 }
 0xe31   : > { %v2176_v16 = vpop.xlane.xlu0 %2175 }
 0xe32   : > { %v2179_v50 = vmul.f32 0.0078125, %v2176_v16  ;;  %2186 = vadd.xlane.f32.xlu1 %v2183_v57  ;;  %v2184_v52 = vmul.f32 %v8208_v49, %v8208_v49  ;;  %v7012_v16 = vld [vmem:[%s9418_s13 + $0x40] sm:$0xff]  }
 0xe33   : > { %6385 = vmatprep.subr.bf16.mxu0 %v7012_v16 }
 0xe34   : > { %v8215_v53 = vsub.f32 %v8175_v35, %v2179_v50  ;;  %2188 = vadd.xlane.f32.xlu0 %v2184_v52  ;;  %v7013_v50 = vld [vmem:[%s9418_s13 + $0xc0] sm:$0xff]  }
 0xe35   : > { %v7014_v52 = vld [vmem:[%s9418_s13] sm:$0xff]   ;;  %6413 = vmatprep.subr.bf16.mxu1 %v7013_v50 }
 0xe36   : > { %v2185_v54 = vmul.f32 %v8215_v53, %v8215_v53 }
 0xe38   : > { %v2190_v9 = vsel %vm874_vm0, %v2185_v54, 0.0  ;;  %v7016_v54 = vld [vmem:[%s9418_s13 + $0x48] sm:$0xff]  }
 0xe39   : > { %2191 = vadd.xlane.f32.xlu1 %v2190_v9  ;;  %v7017_v9 = vld [vmem:[%s9418_s13 + $0xc8] sm:$0xff]  }
 0xebf   : > { %v2187_v21 = vpop.xlane.xlu1 %2186 }
 0xec0   : > { %v2193_v26 = vmul.f32 0.0078125, %v2187_v21  ;;  %v7042_v21 = vld [vmem:[%s9418_s13 + $0x38] sm:$0xff]  }
 0xec1   : > { %v2189_v22 = vpop.xlane.xlu0 %2188 }
 0xec2   : > { %v2196_v23 = vadd.f32 1e-06, %v2193_v26  ;;  %v2194_v25 = vmul.f32 0.0078125, %v2189_v22  ;;  %v7043_v26 = vld [vmem:[%s9418_s13 + $0xb8] sm:$0xff]  }
 0xec3   : > { %v2253_v22 = vld [vmem:[%s9417_s12] ss:$2 sm:$0xf] }
 0xec4   : > { %7226 = vrsqrt.f32 %v2196_v23  ;;  %v2197_v31 = vadd.f32 1e-06, %v2194_v25  ;;  %v9431_v23 = vsub.s32 3, %v7992_v42  ;;  %v8404_v25 = vrot.slane %v2253_v22, %v7995_v43 }
 0xec6   : > { %7228 = vrsqrt.f32 %v2197_v31  ;;  %v2192_v28 = vpop.xlane.xlu1 %2191  ;;  %v8407_v31 = vrot.slane %v2253_v22, %v8003_v51 }
 0xec7   : > { %v2195_v29 = vmul.f32 0.0078125, %v2192_v28  ;;  %v8410_v28 = vrot.slane %v2253_v22, %v7998_v45 }
 0xec9   : > { %v2198_v32 = vadd.f32 1e-06, %v2195_v29  ;;  %v8414_v29 = vrot.slane %v2253_v22, %v9431_v23 }
 0xecb   : > { %7230 = vrsqrt.f32 %v2198_v32 }
 0xece   : > { %v7227_v36 = vpop.eup %7226 }
 0xecf   : > { %v2202_v30 = vmul.f32 %v7227_v36, %v8205_v58 }
 0xed0   : > { %v7229_v37 = vpop.eup %7228 }
 0xed1   : > { %v2203_v38 = vmul.f32 %v7229_v37, %v8208_v49  ;;  %v2209_v39 = vmul.f32 %v5965_v27, %v2202_v30 }
 0xed3   : > { %v2210_v46 = vmul.f32 %v5965_v27, %v2203_v38  ;;  %v2216_v40 = vadd.f32 %v5966_v44, %v2209_v39 }
 0xed5   : > { %v7231_v41 = vpop.eup %7230  ;;  %v2217_v47 = vadd.f32 %v5966_v44, %v2210_v46 }
 0xed6   : > { %v2204_v48 = vmul.f32 %v7231_v41, %v8215_v53  ;;  %v7015_v53 = vld [vmem:[%s9418_s13 + $0x80] sm:$0xff]  }
 0xed7   : > { %v2219_v8 = vpack.c.bf16 %v2217_v47, %v2216_v40 }
 0xed8   : > { %v2211_v57 = vmul.f32 %v5965_v27, %v2204_v48 }
 0xed9   : > { %2468 = vmatmul.mubr.bf16.vlgmr.msra.gmra.mrb[24].mxu0 %v2219_v8  ;;  %2519 = vmatmul.mubr.bf16.vlgmr.msra.gmra.mrb[44].mxu1 %v2219_v8 }
 0xeda   : > { %2477 = vmatprep.mubr.bf16.mxu0 %v9432_v11  ;;  %2528 = vmatprep.mubr.bf16.mxu1 %v9432_v11  ;;  %v2218_v58 = vadd.f32 %v5966_v44, %v2211_v57 }
 0xedb   : > { %6386 = vmatpush3.bf16.msra.mxu0 %v7014_v52  ;;  %6414 = vmatpush3.bf16.msra.mxu1 %v7015_v53 }
 0xedc   : > { %v2220_v49 = vpack.c.bf16 %v2218_v58, %v2218_v58  ;;  %6387 = vmatprep.subr.bf16.mxu0 %v7016_v54  ;;  %6415 = vmatprep.subr.bf16.mxu1 %v7017_v9 }
 0xedf   : > { %6388 = vmatpush3.bf16.msra.mxu0 %v7018_v55  ;;  %6416 = vmatpush3.bf16.msra.mxu1 %v7019_v56 }
 0xee0   : > { %6389 = vmatprep.subr.bf16.mxu0 %v7020_v14  ;;  %6417 = vmatprep.subr.bf16.mxu1 %v7021_v59 }
 0xee1   : > { %2478 = vmatmul.mubr.bf16.gmra.mrb[28].mxu0 %v2220_v49  ;;  %2529 = vmatmul.mubr.bf16.gmra.mrb[48].mxu1 %v2220_v49 }
 0xee3   : > { %6390 = vmatpush3.bf16.msra.mxu0 %v7022_v60  ;;  %6418 = vmatpush3.bf16.msra.mxu1 %v7023_v61 }
 0xee4   : > { %6391 = vmatprep.subr.bf16.mxu0 %v7024_v62  ;;  %6419 = vmatprep.subr.bf16.mxu1 %v7025_v63 }
 0xee7   : > { %6392 = vmatpush3.bf16.msra.mxu0 %v7026_v0  ;;  %6420 = vmatpush3.bf16.msra.mxu1 %v7027_v1 }
 0xee8   : > { %6393 = vmatprep.subr.bf16.mxu0 %v7028_v4  ;;  %6421 = vmatprep.subr.bf16.mxu1 %v7029_v3 }
 0xeeb   : > { %6394 = vmatpush3.bf16.msra.mxu0 %v7030_v5  ;;  %6422 = vmatpush3.bf16.msra.mxu1 %v7031_v6 }
 0xeec   : > { %6395 = vmatprep.subr.bf16.mxu0 %v7032_v2  ;;  %6423 = vmatprep.subr.bf16.mxu1 %v7033_v7 }
 0xeef   : > { %6396 = vmatpush3.bf16.msra.mxu0 %v7034_v10  ;;  %6424 = vmatpush3.bf16.msra.mxu1 %v7035_v12 }
 0xef0   : > { %6397 = vmatprep.subr.bf16.mxu0 %v7036_v13  ;;  %6425 = vmatprep.subr.bf16.mxu1 %v7037_v17 }
 0xef3   : > { %6398 = vmatpush3.bf16.msra.mxu0 %v7038_v18  ;;  %6426 = vmatpush3.bf16.msra.mxu1 %v7039_v19 }
 0xef4   : > { %6399 = vmatprep.subr.bf16.mxu0 %v7040_v24  ;;  %6427 = vmatprep.subr.bf16.mxu1 %v7041_v20 }
 0xef7   : > { %6400 = vmatpush3.bf16.msra.mxu0 %v7042_v21  ;;  %6428 = vmatpush3.bf16.msra.mxu1 %v7043_v26 }
 0xfac   : > { %v2469_v32 = vpop.f32.mrb[24].mxu0  ;;  %v2520_v36 = vpop.f32.mrb[44].mxu1 }
 0xfad   : > { %v2470_v27 = vadd.f32 %v2469_v32, %v8404_v25  ;;  %v2521_v30 = vadd.f32 %v2520_v36, %v8407_v31  ;;  %v2471_v37 = vpop.f32.mrb[25].mxu0  ;;  %v2522_v38 = vpop.f32.mrb[45].mxu1  ;;  %v9434_v36 = vmov -1.0  }
 0xfae   : > { %v2472_v39 = vadd.f32 %v2471_v37, %v8410_v28  ;;  %v8420_v44 = vadd.f32 %v2522_v38, %v8414_v29  ;;  %v2473_v46 = vpop.f32.mrb[26].mxu0  ;;  %v2524_v41 = vpop.f32.mrb[46].mxu1 }
 0xfaf   : > { %v2549_v40 = vmul.f32 0.70710677, %v2470_v27  ;;  %v2551_v47 = vmul.f32 0.70710677, %v2521_v30  ;;  %v2475_v16 = vpop.f32.mrb[27].mxu0  ;;  %v2526_v9 = vpop.f32.mrb[47].mxu1  ;;  %v2474_v1 = vadd.f32 %v2473_v46, %v8404_v25  ;;  %v2525_v10 = vadd.f32 %v2524_v41, %v8407_v31 }
 0xfb0   : > { %v2550_v48 = vmul.f32 0.70710677, %v2472_v39  ;;  %v2552_v49 = vmul.f32 0.70710677, %v8420_v44  ;;  %v8438_v13 = vmul.f32 0.5, %v2470_v27  ;;  %v8441_v18 = vadd.f32 %v2475_v16, %v8410_v28 }
 0xfb1   : > { %v2585_v8 = vand.u32 2147483647, %v2549_v40  ;;  %v2587_v57 = vand.u32 2147483647, %v2551_v47  ;;  %v8435_v7 = vmul.f32 0.70710677, %v2474_v1 }
 0xfb2   : > { %v2586_v58 = vand.u32 2147483647, %v2550_v48  ;;  %v8427_v60 = vand.u32 2147483647, %v2552_v49  ;;  %vm2561_vm4 = vcmp.ge.f32.partialorder %v2549_v40, 0.0  ;;  %v8444_v26 = vmul.f32 0.5, %v2521_v30 }
 0xfb3   : > { %v2597_v50 = vmul.f32 0.3275911, %v2585_v8  ;;  %v2599_v52 = vmul.f32 0.3275911, %v2587_v57  ;;  %v2753_v53 = vsub.f32 0.0, %v2585_v8  ;;  %v2755_v63 = vsub.f32 0.0, %v2587_v57 }
 0xfb4   : > { %v2598_v54 = vmul.f32 0.3275911, %v2586_v58  ;;  %v8423_v14 = vpop.f32.mrb[28].mxu0  ;;  %v8425_v59 = vpop.f32.mrb[48].mxu1  ;;  %v2600_v6 = vmul.f32 0.3275911, %v8427_v60  ;;  %v8458_v40 = vadd.f32 %v2526_v9, %v8414_v29 }
 0xfb5   : > { %v2609_v55 = vadd.f32 1.0, %v2597_v50  ;;  %v2611_v56 = vadd.f32 1.0, %v2599_v52  ;;  %v8429_v61 = vpop.f32.mrb[29].mxu0  ;;  %v8431_v62 = vpop.f32.mrb[49].mxu1  ;;  %v2765_v5 = vmul.f32 %v2753_v53, %v2585_v8  ;;  %v2767_v19 = vmul.f32 %v2755_v63, %v2587_v57 }
 0xfb6   : > { %v2610_v0 = vadd.f32 1.0, %v2598_v54  ;;  %v2483_v4 = vpop.f32.mrb[30].mxu0  ;;  %v2534_v3 = vpop.f32.mrb[50].mxu1  ;;  %v2612_v17 = vadd.f32 1.0, %v2600_v6  ;;  %v2754_v24 = vsub.f32 0.0, %v2586_v58  ;;  %v8446_v22 = vmul.f32 0.5, %v2472_v39 }
 0xfb7   : > { %7232 = vrcp.f32 %v2609_v55  ;;  %v2484_v2 = vpop.f32.mrb[31].mxu0  ;;  %v2535_v12 = vpop.f32.mrb[51].mxu1  ;;  %v2589_v20 = vand.u32 2147483647, %v8435_v7  ;;  %v2777_v21 = vmul.f32 1.442695, %v2765_v5 }
 0xfb8   : > { %7234 = vrcp.f32 %v2611_v56  ;;  %v8448_v32 = vmul.f32 0.70710677, %v2525_v10  ;;  %v8451_v27 = vsel %vm2561_vm4, 1.0, %v9434_v36  ;;  %vm2563_vm5 = vcmp.ge.f32.partialorder %v2551_v47, 0.0 }
 0xfb9   : > { %7236 = vrcp.f32 %v2610_v0  ;;  %v2601_v37 = vmul.f32 0.3275911, %v2589_v20  ;;  %vm2562_vm6 = vcmp.ge.f32.partialorder %v2550_v48, 0.0  ;;  %vm2564_vm7 = vcmp.ge.f32.partialorder %v2552_v49, 0.0 }
 0xfba   : > { %7238 = vrcp.f32 %v2612_v17  ;;  %v2591_v38 = vand.u32 2147483647, %v8448_v32  ;;  %v8455_v46 = vmul.f32 0.70710677, %v8441_v18  ;;  %v2781_v30 = vmul.f32 1.442695, %v2767_v19 }
 0xfbb   : > { %v2766_v41 = vmul.f32 %v2754_v24, %v2586_v58  ;;  %v2613_v39 = vadd.f32 1.0, %v2601_v37  ;;  %7240 = vpow2.f32 %v2777_v21  ;;  %v8461_v8 = vsel %vm2563_vm5, 1.0, %v9434_v36 }
 0xfbc   : > { %v2603_v47 = vmul.f32 0.3275911, %v2591_v38  ;;  %v8464_v57 = vand.u32 2147483647, %v8455_v46  ;;  %v8469_v49 = vsel %vm2562_vm6, 1.0, %v9434_v36  ;;  %v8472_v16 = vsel %vm2564_vm7, 1.0, %v9434_v36 }
 0xfbd   : > { %v2756_v58 = vsub.f32 0.0, %v8427_v60  ;;  %7242 = vrcp.f32 %v2613_v39  ;;  %v2757_v53 = vsub.f32 0.0, %v2589_v20  ;;  %v2779_v56 = vmul.f32 1.442695, %v2766_v41 }
 0xfbe   : > { %v2615_v54 = vadd.f32 1.0, %v2603_v47  ;;  %v2602_v9 = vmul.f32 0.3275911, %v8464_v57  ;;  %7244 = vpow2.f32 %v2781_v30  ;;  %v8481_v63 = vmul.f32 0.70710677, %v8458_v40 }
 0xfbf   : > { %v8483_v4 = vmul.f32 0.5, %v2474_v1  ;;  %v2768_v2 = vmul.f32 %v2756_v58, %v8427_v60  ;;  %vm2565_vm8 = vcmp.ge.f32.partialorder %v8435_v7, 0.0  ;;  %v2769_v24 = vmul.f32 %v2757_v53, %v2589_v20 }
 0xfc0   : > { %7246 = vrcp.f32 %v2615_v54  ;;  %v2614_v3 = vadd.f32 1.0, %v2602_v9  ;;  %v8490_v12 = vand.u32 2147483647, %v8481_v63  ;;  %v8494_v21 = vmul.f32 0.5, %v2525_v10 }
 0xfc1   : > { %v8466_v48 = vpop.eup %7232  ;;  %v2759_v30 = vsub.f32 0.0, %v2591_v38  ;;  %v8503_v10 = vadd.f32 %v8423_v14, %v8404_v25  ;;  %v2758_v7 = vsub.f32 0.0, %v8464_v57  ;;  %vm2567_vm9 = vcmp.ge.f32.partialorder %v8448_v32, 0.0 }
 0xfc2   : > { %v8475_v50 = vpop.eup %7234  ;;  %v2645_v52 = vmul.f32 1.0614054, %v8466_v48  ;;  %7248 = vrcp.f32 %v2614_v3  ;;  %v2604_v60 = vmul.f32 0.3275911, %v8490_v12  ;;  %vm2566_vm10 = vcmp.ge.f32.partialorder %v8455_v46, 0.0 }
 0xfc3   : > { %v2647_v55 = vmul.f32 1.0614054, %v8475_v50  ;;  %v8485_v5 = vpop.eup %7236  ;;  %7250 = vpow2.f32 %v2779_v56  ;;  %vm2568_vm11 = vcmp.ge.f32.partialorder %v8481_v63, 0.0 }
 0xfc4   : > { %v2657_v0 = vadd.f32 -1.4531521, %v2645_v52  ;;  %v2646_v19 = vmul.f32 1.0614054, %v8485_v5  ;;  %v8496_v1 = vpop.eup %7238  ;;  %v2783_v52 = vmul.f32 1.442695, %v2768_v2  ;;  %v2771_v2 = vmul.f32 %v2759_v30, %v2591_v38 }
 0xfc5   : > { %v2659_v6 = vadd.f32 -1.4531521, %v2647_v55  ;;  %v2648_v47 = vmul.f32 1.0614054, %v8496_v1  ;;  %v2616_v54 = vadd.f32 1.0, %v2604_v60  ;;  %v7241_v20 = vpop.eup %7240 }
 0xfc6   : > { %v2669_v17 = vmul.f32 %v8466_v48, %v2657_v0  ;;  %v2658_v39 = vadd.f32 -1.4531521, %v2646_v19  ;;  %v8510_v0 = vsel %vm2565_vm8, 1.0, %v9434_v36 }
 0xfc7   : > { %v2671_v37 = vmul.f32 %v8475_v50, %v2659_v6  ;;  %v2660_v55 = vadd.f32 -1.4531521, %v2648_v47  ;;  %v8512_v56 = vpop.eup %7242  ;;  %v2785_v6 = vmul.f32 1.442695, %v2769_v24  ;;  %7252 = vrcp.f32 %v2616_v54 }
 0xfc8   : > { %v2681_v41 = vadd.f32 1.4214138, %v2669_v17  ;;  %v2670_v9 = vmul.f32 %v8485_v5, %v2658_v39  ;;  %v2649_v19 = vmul.f32 1.0614054, %v8512_v56  ;;  %v8522_v39 = vmul.f32 0.70710677, %v8503_v10 }
 0xfc9   : > { %v2683_v58 = vadd.f32 1.4214138, %v2671_v37  ;;  %v2672_v17 = vmul.f32 %v8496_v1, %v2660_v55  ;;  %v7245_v37 = vpop.eup %7244  ;;  %7254 = vpow2.f32 %v2785_v6 }
 0xfca   : > { %v2693_v53 = vmul.f32 %v8466_v48, %v2681_v41  ;;  %v2682_v14 = vadd.f32 1.4214138, %v2670_v9  ;;  %v8518_v41 = vmul.f32 0.5, %v8441_v18  ;;  %v8524_v47 = vpop.eup %7246  ;;  %v2789_v9 = vmul.f32 1.442695, %v2771_v2 }
 0xfcb   : > { %v2695_v3 = vmul.f32 %v8475_v50, %v2683_v58  ;;  %v2684_v30 = vadd.f32 1.4214138, %v2672_v17  ;;  %v2661_v58 = vadd.f32 -1.4531521, %v2649_v19  ;;  %v2760_v18 = vsub.f32 0.0, %v8490_v12 }
 0xfcc   : > { %v2705_v25 = vadd.f32 -0.28449672, %v2693_v53  ;;  %v2694_v24 = vmul.f32 %v8485_v5, %v2682_v14  ;;  %v2651_v53 = vmul.f32 1.0614054, %v8524_v47  ;;  %v8533_v36 = vpop.eup %7248  ;;  %v2770_v14 = vmul.f32 %v2758_v7, %v8464_v57 }
 0xfcd   : > { %v2707_v60 = vadd.f32 -0.28449672, %v2695_v3  ;;  %v2696_v23 = vmul.f32 %v8496_v1, %v2684_v30  ;;  %v2673_v11 = vmul.f32 %v8512_v56, %v2661_v58  ;;  %v8537_v17 = vand.u32 2147483647, %v8522_v39  ;;  %v7251_v19 = vpop.eup %7250 }
 0xfce   : > { %v2717_v38 = vmul.f32 %v8466_v48, %v2705_v25  ;;  %v2706_v3 = vadd.f32 -0.28449672, %v2694_v24  ;;  %v2663_v42 = vadd.f32 -1.4531521, %v2651_v53  ;;  %v2650_v58 = vmul.f32 1.0614054, %v8533_v36 }
 0xfcf   : > { %v2719_v54 = vmul.f32 %v8475_v50, %v2707_v60  ;;  %v2685_v24 = vadd.f32 1.4214138, %v2673_v11  ;;  %7256 = vpow2.f32 %v2783_v52  ;;  %v2787_v11 = vmul.f32 1.442695, %v2770_v14 }
 0xfd0   : > { %v2729_v55 = vadd.f32 0.2548296, %v2717_v38  ;;  %v2718_v60 = vmul.f32 %v8485_v5, %v2706_v3  ;;  %v2708_v38 = vadd.f32 -0.28449672, %v2696_v23  ;;  %v2675_v30 = vmul.f32 %v8524_v47, %v2663_v42 }
 0xfd1   : > { %v2731_v25 = vadd.f32 0.2548296, %v2719_v54  ;;  %v2772_v54 = vmul.f32 %v2760_v18, %v8490_v12  ;;  %v2697_v15 = vmul.f32 %v8512_v56, %v2685_v24  ;;  %v8547_v51 = vpop.eup %7252  ;;  %v2662_v23 = vadd.f32 -1.4531521, %v2650_v58 }
 0xfd2   : > { %v2741_v2 = vmul.f32 %v8466_v48, %v2729_v55  ;;  %v2720_v7 = vmul.f32 %v8496_v1, %v2708_v38  ;;  %v2687_v48 = vadd.f32 1.4214138, %v2675_v30  ;;  %v2730_v6 = vadd.f32 0.2548296, %v2718_v60 }
 0xfd3   : > { %v2743_v57 = vmul.f32 %v8475_v50, %v2731_v25  ;;  %v2709_v55 = vadd.f32 -0.28449672, %v2697_v15  ;;  %7258 = vpow2.f32 %v2789_v9  ;;  %v2605_v42 = vmul.f32 0.3275911, %v8537_v17 }
 0xfd4   : > { %v2801_v53 = vmul.f32 %v7241_v20, %v2741_v2  ;;  %v2699_v12 = vmul.f32 %v8524_v47, %v2687_v48  ;;  %v2674_v20 = vmul.f32 %v8533_v36, %v2662_v23  ;;  %v2652_v50 = vmul.f32 1.0614054, %v8547_v51 }
 0xfd5   : > { %v2791_v18 = vmul.f32 1.442695, %v2772_v54  ;;  %v2803_v25 = vmul.f32 %v7245_v37, %v2743_v57  ;;  %v2732_v2 = vadd.f32 0.2548296, %v2720_v7  ;;  %v2721_v52 = vmul.f32 %v8512_v56, %v2709_v55  ;;  %v7255_v7 = vpop.eup %7254 }
 0xfd6   : > { %v2813_v3 = vsub.f32 1.0, %v2801_v53  ;;  %v2711_v38 = vadd.f32 -0.28449672, %v2699_v12  ;;  %v2686_v24 = vadd.f32 1.4214138, %v2674_v20  ;;  %v2742_v15 = vmul.f32 %v8485_v5, %v2730_v6 }
 0xfd7   : > { %v2664_v14 = vadd.f32 -1.4531521, %v2652_v50  ;;  %v2733_v9 = vadd.f32 0.2548296, %v2721_v52  ;;  %7260 = vpow2.f32 %v2787_v11  ;;  %v2617_v60 = vadd.f32 1.0, %v2605_v42 }
 0xfd8   : > { %v2723_v30 = vmul.f32 %v8524_v47, %v2711_v38  ;;  %v2698_v58 = vmul.f32 %v8533_v36, %v2686_v24  ;;  %v2815_v37 = vsub.f32 1.0, %v2803_v25  ;;  %v2744_v53 = vmul.f32 %v8496_v1, %v2732_v2 }
 0xfd9   : > { %v2676_v54 = vmul.f32 %v8547_v51, %v2664_v14  ;;  %v2745_v57 = vmul.f32 %v8512_v56, %v2733_v9  ;;  %7262 = vpow2.f32 %v2791_v18  ;;  %v2825_v5 = vmul.f32 %v2813_v3, %v8451_v27  ;;  %v7257_v12 = vpop.eup %7256 }
 0xfda   : > { %v2735_v48 = vadd.f32 0.2548296, %v2723_v30  ;;  %v2710_v23 = vadd.f32 -0.28449672, %v2698_v58  ;;  %v2802_v6 = vmul.f32 %v7251_v19, %v2742_v15  ;;  %7264 = vrcp.f32 %v2617_v60 }
 0xfdb   : > { %v2688_v11 = vadd.f32 1.4214138, %v2676_v54  ;;  %v2805_v55 = vmul.f32 %v7255_v7, %v2745_v57  ;;  %v8564_v42 = vadd.f32 %v8425_v59, %v8407_v31  ;;  %v9469_v20 = vmov -1.0  }
 0xfdc   : > { %v2579_v1 = vsel %vm2567_vm9, 1.0, %v9469_v20  ;;  %v2747_v56 = vmul.f32 %v8524_v47, %v2735_v48  ;;  %v2722_v50 = vmul.f32 %v8533_v36, %v2710_v23  ;;  %v2827_v19 = vmul.f32 %v2815_v37, %v8461_v8 }
 0xfdd   : > { %v2700_v27 = vmul.f32 %v8547_v51, %v2688_v11  ;;  %v7259_v18 = vpop.eup %7258  ;;  %v2804_v3 = vmul.f32 %v7257_v12, %v2744_v53  ;;  %v2817_v25 = vsub.f32 1.0, %v2805_v55  ;;  %v2837_v31 = vadd.f32 1.0, %v2825_v5 }
 0xfde   : > { %v2807_v59 = vmul.f32 %v7259_v18, %v2747_v56  ;;  %v2734_v2 = vadd.f32 0.2548296, %v2722_v50  ;;  %v2814_v38 = vsub.f32 1.0, %v2802_v6  ;;  %v8576_v47 = vmul.f32 0.70710677, %v8564_v42 }
 0xfdf   : > { %v2712_v52 = vadd.f32 -0.28449672, %v2700_v27  ;;  %v2829_v32 = vmul.f32 %v2817_v25, %v8510_v0  ;;  %v8580_v24 = vadd.f32 %v8429_v61, %v8410_v28  ;;  %v2578_v8 = vsel %vm2566_vm10, 1.0, %v9469_v20 }
 0xfe0   : > { %v2819_v14 = vsub.f32 1.0, %v2807_v59  ;;  %v2746_v15 = vmul.f32 %v8533_v36, %v2734_v2  ;;  %v2839_v60 = vadd.f32 1.0, %v2827_v19  ;;  %v2816_v30 = vsub.f32 1.0, %v2804_v3 }
 0xfe1   : > { %v2724_v46 = vmul.f32 %v8547_v51, %v2712_v52  ;;  %v7261_v9 = vpop.eup %7260  ;;  %v2841_v58 = vadd.f32 1.0, %v2829_v32  ;;  %v8586_v0 = vand.u32 2147483647, %v8576_v47  ;;  %v2849_v54 = vmul.f32 %v2837_v31, %v8438_v13 }
 0xfe2   : > { %v2831_v37 = vmul.f32 %v2819_v14, %v2579_v1  ;;  %v2806_v53 = vmul.f32 %v7261_v9, %v2746_v15  ;;  %v2826_v57 = vmul.f32 %v2814_v38, %v8469_v49  ;;  %v8593_v5 = vmul.f32 0.70710677, %v8580_v24 }
 0xfe3   : > { %v2736_v28 = vadd.f32 0.2548296, %v2724_v46  ;;  %v7263_v61 = vpop.eup %7262  ;;  %v2853_v7 = vmul.f32 %v2841_v58, %v8483_v4  ;;  %v2607_v36 = vmul.f32 0.3275911, %v8586_v0  ;;  %v2851_v6 = vmul.f32 %v2839_v60, %v8444_v26 }
 0xfe4   : > { %v2843_v48 = vadd.f32 1.0, %v2831_v37  ;;  %v2818_v23 = vsub.f32 1.0, %v2806_v53  ;;  %v8597_v13 = vpop.eup %7264  ;;  %v2828_v55 = vmul.f32 %v2816_v30, %v8472_v16  ;;  %v2838_v27 = vadd.f32 1.0, %v2826_v57 }
 0xfe5   : > { %v2748_v11 = vmul.f32 %v8547_v51, %v2736_v28  ;;  %v2861_v49 = vpack.c.bf16 %v2853_v7, %v2849_v54  ;;  %v2619_v12 = vadd.f32 1.0, %v2607_v36  ;;  %v2653_v50 = vmul.f32 1.0614054, %v8597_v13 }
 0xfe6   : > { %v2855_v4 = vmul.f32 %v2843_v48, %v8494_v21  ;;  %v2830_v1 = vmul.f32 %v2818_v23, %v2578_v8  ;;  %v2594_v18 = vand.u32 2147483647, %v8593_v5  ;;  %v8606_v51 = vadd.f32 %v8431_v62, %v8414_v29 }
 0xfe7   : > { %v2808_v56 = vmul.f32 %v7263_v61, %v2748_v11  ;;  %7266 = vrcp.f32 %v2619_v12  ;;  %v2665_v16 = vadd.f32 -1.4531521, %v2653_v50  ;;  %v2840_v25 = vadd.f32 1.0, %v2828_v55 }
 0xfe8   : > { %v2863_v19 = vpack.c.bf16 %v2855_v4, %v2851_v6  ;;  %v2842_v26 = vadd.f32 1.0, %v2830_v1  ;;  %v2580_v21 = vsel %vm2568_vm11, 1.0, %v9469_v20  ;;  %v2761_v31 = vsub.f32 0.0, %v8537_v17 }
 0xfe9   : > { %v2820_v3 = vsub.f32 1.0, %v2808_v56  ;;  %v2606_v59 = vmul.f32 0.3275911, %v2594_v18  ;;  %v2677_v38 = vmul.f32 %v8597_v13, %v2665_v16  ;;  %v8615_v29 = vmul.f32 0.70710677, %v8606_v51 }
 0xfea   : > { %v2854_v2 = vmul.f32 %v2842_v26, %v8518_v41  ;;  %v2850_v62 = vmul.f32 %v2838_v27, %v8446_v22  ;;  %v2540_v32 = vmul.f32 0.5, %v8420_v44  ;;  %v2544_v8 = vmul.f32 0.5, %v8458_v40 }
 0xfeb   : > { %v2832_v52 = vmul.f32 %v2820_v3, %v2580_v21  ;;  %v2618_v14 = vadd.f32 1.0, %v2606_v59  ;;  %v2689_v15 = vadd.f32 1.4214138, %v2677_v38  ;;  %v2596_v46 = vand.u32 2147483647, %v8615_v29 }
 0xfec   : > { %v2773_v9 = vmul.f32 %v2761_v31, %v8537_v17  ;;  %v2862_v41 = vpack.c.bf16 %v2854_v2, %v2850_v62  ;;  %v2852_v60 = vmul.f32 %v2840_v25, %v2540_v32  ;;  %v2763_v22 = vsub.f32 0.0, %v8586_v0 }
 0xfed   : > { %v2844_v63 = vadd.f32 1.0, %v2832_v52  ;;  %7268 = vrcp.f32 %v2618_v14  ;;  %v2701_v58 = vmul.f32 %v8597_v13, %v2689_v15  ;;  %v2608_v54 = vmul.f32 0.3275911, %v2596_v46 }
 0xfee   : > { %3162 = vmatprep.mubr.bf16.mxu0 %v2862_v41  ;;  %v2793_v28 = vmul.f32 1.442695, %v2773_v9  ;;  %v2775_v17 = vmul.f32 %v2763_v22, %v8586_v0  ;;  %v2762_v57 = vsub.f32 0.0, %v2594_v18  ;;  %v2764_v12 = vsub.f32 0.0, %v2596_v46 }
 0xfef   : > { %v2856_v30 = vmul.f32 %v2844_v63, %v2544_v8  ;;  %v2620_v44 = vadd.f32 1.0, %v2608_v54  ;;  %3163 = vmatmul.mubr.bf16.vlgmr.msra.gmra.mrb[32].mxu0 %v2861_v49  ;;  %v2713_v53 = vadd.f32 -0.28449672, %v2701_v58  ;;  %vm2569_vm12 = vcmp.ge.f32.partialorder %v8522_v39, 0.0 }
 0xff0   : > { %v2797_v11 = vmul.f32 1.442695, %v2775_v17  ;;  %v2774_v6 = vmul.f32 %v2762_v57, %v2594_v18  ;;  %vm2571_vm13 = vcmp.ge.f32.partialorder %v8576_v47, 0.0  ;;  %vm2570_vm14 = vcmp.ge.f32.partialorder %v8593_v5, 0.0 }
 0xff1   : > { %v2864_v37 = vpack.c.bf16 %v2856_v30, %v2852_v60  ;;  %v7267_v40 = vpop.eup %7266  ;;  %7270 = vrcp.f32 %v2620_v44  ;;  %v2725_v36 = vmul.f32 %v8597_v13, %v2713_v53  ;;  %v2581_v30 = vsel %vm2569_vm12, 1.0, %v9469_v20 }
 0xff2   : > { %v2655_v61 = vmul.f32 1.0614054, %v7267_v40  ;;  %7272 = vpow2.f32 %v2793_v28  ;;  %v2795_v50 = vmul.f32 1.442695, %v2774_v6  ;;  %v2583_v39 = vsel %vm2571_vm13, 1.0, %v9469_v20 }
 0xff3   : > { %3210 = vmatprep.mubr.bf16.mxu1 %v2864_v37  ;;  %v2737_v4 = vadd.f32 0.2548296, %v2725_v36  ;;  %7274 = vpow2.f32 %v2797_v11  ;;  %vm2572_vm15 = vcmp.ge.f32.partialorder %v8615_v29, 0.0  ;;  %v2546_v11 = vmul.f32 0.5, %v8580_v24 }
 0xff4   : > { %3211 = vmatmul.mubr.bf16.vlgmr.msra.gmra.mrb[52].mxu1 %v2863_v19  ;;  %v2667_v7 = vadd.f32 -1.4531521, %v2655_v61  ;;  %v2776_v19 = vmul.f32 %v2764_v12, %v2596_v46  ;;  %7276 = vpow2.f32 %v2795_v50  ;;  %v2582_v61 = vsel %vm2570_vm14, 1.0, %v9469_v20 }
 0xff5   : > { %v2749_v3 = vmul.f32 %v8597_v13, %v2737_v4  ;;  %v9470_v24 = vmov 0   ;;  %vm7569_vm13 = vmmov 0   ;;  %vm5655_vm14 = vcmask 1046528  }
 0xff6   : > { %v2679_v48 = vmul.f32 %v7267_v40, %v2667_v7  ;;  %v2799_v52 = vmul.f32 1.442695, %v2776_v19 }
 0xff7   : > { %v7269_v23 = vpop.eup %7268 }
 0xff8   : > { %v2691_v55 = vadd.f32 1.4214138, %v2679_v48  ;;  %v2654_v49 = vmul.f32 1.0614054, %v7269_v23  ;;  %7278 = vpow2.f32 %v2799_v52 }
 0xffa   : > { %v2703_v1 = vmul.f32 %v7267_v40, %v2691_v55  ;;  %v2666_v56 = vadd.f32 -1.4531521, %v2654_v49  ;;  %v2584_v49 = vsel %vm2572_vm15, 1.0, %v9469_v20 }
 0xffb   : > { %v7271_v27 = vpop.eup %7270 }
 0xffc   : > { %v2715_v0 = vadd.f32 -0.28449672, %v2703_v1  ;;  %v2678_v26 = vmul.f32 %v7269_v23, %v2666_v56  ;;  %v2656_v16 = vmul.f32 1.0614054, %v7271_v27  ;;  %v7273_v18 = vpop.eup %7272  ;;  %v2547_v56 = vmul.f32 0.5, %v8564_v42 }
 0xffd   : > { %v2809_v38 = vmul.f32 %v7273_v18, %v2749_v3  ;;  %v7275_v15 = vpop.eup %7274  ;;  %v5999_v42 = vld [vmem:[%s9419_s14] ss:$0 sm:$0xff] }
 0xffe   : > { %v2727_v25 = vmul.f32 %v7267_v40, %v2715_v0  ;;  %v2690_v21 = vadd.f32 1.4214138, %v2678_v26  ;;  %v2668_v31 = vadd.f32 -1.4531521, %v2656_v16  ;;  %v7277_v54 = vpop.eup %7276 }
 0xfff   : > { %v2821_v13 = vsub.f32 1.0, %v2809_v38 }
0x1000   : > { %v2739_v59 = vadd.f32 0.2548296, %v2727_v25  ;;  %v2702_v2 = vmul.f32 %v7269_v23, %v2690_v21  ;;  %v2680_v62 = vmul.f32 %v7271_v27, %v2668_v31 }
0x1001   : > { %v2833_v22 = vmul.f32 %v2821_v13, %v2581_v30 }
0x1002   : > { %v2751_v32 = vmul.f32 %v7267_v40, %v2739_v59  ;;  %v2714_v14 = vadd.f32 -0.28449672, %v2702_v2  ;;  %v2692_v8 = vadd.f32 1.4214138, %v2680_v62  ;;  %v7279_v7 = vpop.eup %7278 }
0x1003   : > { %v2845_v57 = vadd.f32 1.0, %v2833_v22 }
0x1004   : > { %v2726_v63 = vmul.f32 %v7269_v23, %v2714_v14  ;;  %v2704_v46 = vmul.f32 %v7271_v27, %v2692_v8  ;;  %v2811_v9 = vmul.f32 %v7275_v15, %v2751_v32 }
0x1006   : > { %v2738_v41 = vadd.f32 0.2548296, %v2726_v63  ;;  %v2716_v60 = vadd.f32 -0.28449672, %v2704_v46  ;;  %v2823_v37 = vsub.f32 1.0, %v2811_v9 }
0x1008   : > { %v2750_v58 = vmul.f32 %v7269_v23, %v2738_v41  ;;  %v2728_v44 = vmul.f32 %v7271_v27, %v2716_v60  ;;  %v2835_v36 = vmul.f32 %v2823_v37, %v2583_v39  ;;  %v2545_v23 = vmul.f32 0.5, %v8503_v10  ;;  %v7044_v39 = vld [vmem:[%s9410_s5 + $0xc0] ss:$12 sps:$4 sm:$0xff]  }
0x100a   : > { %v2810_v40 = vmul.f32 %v7277_v54, %v2750_v58  ;;  %v2740_v53 = vadd.f32 0.2548296, %v2728_v44  ;;  %v2857_v55 = vmul.f32 %v2845_v57, %v2545_v23  ;;  %v2847_v4 = vadd.f32 1.0, %v2835_v36 }
0x100c   : > { %v2822_v28 = vsub.f32 1.0, %v2810_v40  ;;  %v2752_v17 = vmul.f32 %v7271_v27, %v2740_v53  ;;  %v2548_v27 = vmul.f32 0.5, %v8606_v51  ;;  %v2865_v10 = vpack.c.bf16 %v2857_v55, %v2857_v55  ;;  %v7052_v55 = vld [vmem:[%s9410_s5 + $0xf4] ss:$12 sps:$4 sm:$0xff]  }
0x100d   : > { %v2859_v29 = vmul.f32 %v2847_v4, %v2547_v56  ;;  %v7057_v4 = vld [vmem:[%s9410_s5 + $0xe0] ss:$12 sps:$4 sm:$0xff]  }
0x100e   : > { %v2834_v48 = vmul.f32 %v2822_v28, %v2582_v61  ;;  %v2812_v47 = vmul.f32 %v7279_v7, %v2752_v17  ;;  %v7046_v61 = vld [vmem:[%s9410_s5 + $0xc4] ss:$12 sps:$4 sm:$0xff]   ;;  %v7049_v17 = vld [vmem:[%s9410_s5 + $0xdc] ss:$12 sps:$4 sm:$0xff]  }
0x100f   : > { %v2867_v3 = vpack.c.bf16 %v2859_v29, %v2859_v29  ;;  %3461 = vmatprep.subr.bf16.mxu0 %v7046_v61  ;;  %v7058_v29 = vld [vmem:[%s9410_s5 + $0x120] ss:$12 sps:$4 sm:$0xff]  }
0x1010   : > { %v2846_v5 = vadd.f32 1.0, %v2834_v48  ;;  %v2824_v6 = vsub.f32 1.0, %v2812_v47  ;;  %3462 = vmatpush1.bf16.msra.mxu0 %v7044_v39 }
0x1011   : > { %3463 = vmatprep.subr.bf16.mxu0 %v7049_v17 }
0x1012   : > { %v2858_v12 = vmul.f32 %v2846_v5, %v2546_v11  ;;  %v2836_v1 = vmul.f32 %v2824_v6, %v2584_v49  ;;  %v7050_v6 = vld [vmem:[%s9410_s5 + $0xf0] ss:$12 sps:$4 sm:$0xff]   ;;  %v7053_v49 = vld [vmem:[%s9410_s5 + $0xc8] ss:$12 sps:$4 sm:$0xff]  }
0x1013   : > { %6680 = vmatprep.subr.bf16.mxu1 %v7053_v49 }
0x1014   : > { %v2866_v50 = vpack.c.bf16 %v2858_v12, %v2858_v12  ;;  %v2848_v0 = vadd.f32 1.0, %v2836_v1  ;;  %v7056_v12 = vld [vmem:[%s9410_s5 + $0x10c] ss:$12 sps:$4 sm:$0xff]   ;;  %6681 = vmatpush3.bf16.msra.mxu1 %v7053_v49  ;;  %v7054_v1 = vld [vmem:[%s9410_s5 + $0x108] ss:$12 sps:$4 sm:$0xff]  }
0x1015   : > { %6682 = vmatprep.subr.bf16.mxu1 %v7057_v4 }
0x1016   : > { %3170 = vmatprep.mubr.bf16.mxu0 %v2866_v50  ;;  %v2860_v26 = vmul.f32 %v2848_v0, %v2548_v27  ;;  %v7060_v50 = vld [vmem:[%s9410_s5 + $0x124] ss:$12 sps:$4 sm:$0xff]  }
0x1017   : > { %3171 = vmatmul.mubr.bf16.gmra.mrb[36].mxu0 %v2865_v10  ;;  %v7061_v27 = vld [vmem:[%s9410_s5 + $0xf8] ss:$12 sps:$4 sm:$0xff]  }
0x1018   : > { %3493 = vmatprep.mubr.bf16.mxu0 %v9470_v24  ;;  %v2868_v19 = vpack.c.bf16 %v2860_v26, %v2860_v26  ;;  %6683 = vmatpush3.bf16.msra.mxu1 %v7057_v4 }
0x1019   : > { %6684 = vmatprep.subr.bf16.mxu1 %v7061_v27 }
0x101a   : > { %3218 = vmatprep.mubr.bf16.mxu1 %v2868_v19 }
0x101b   : > { %3219 = vmatmul.mubr.bf16.gmra.mrb[56].mxu1 %v2867_v3  ;;  %v7062_v3 = vld [vmem:[%s9410_s5 + $0x138] ss:$12 sps:$4 sm:$0xff]  }
0x101c   : > { %6685 = vmatpush3.bf16.msra.mxu1 %v7061_v27 }
0x10c2   : > { %v6401_v16 = vpop.f32.mrb[32].mxu0 }
0x10c3   : > { %v6402_v25 = vpop.f32.mrb[33].mxu0 }
0x10c4   : > { %v6403_v21 = vadd.f32 %v6402_v25, %v6401_v16  ;;  %v6404_v51 = vpop.f32.mrb[34].mxu0  ;;  %v7064_v16 = vld [vmem:[%s9410_s5 + $0x13c] ss:$12 sps:$4 sm:$0xff]   ;;  %v7068_v25 = vld [vmem:[%s9410_s5 + $0x154] ss:$12 sps:$4 sm:$0xff]  }
0x10c5   : > { %v6405_v18 = vpop.f32.mrb[35].mxu0 }
0x10c6   : > { %v3165_v59 = vadd.f32 %v6403_v21, %v5999_v42  ;;  %v6406_v52 = vadd.f32 %v6405_v18, %v6404_v51  ;;  %v7069_v21 = vld [vmem:[%s9410_s5 + $0x128] ss:$12 sps:$4 sm:$0xff]   ;;  %v7066_v51 = vld [vmem:[%s9410_s5 + $0x150] ss:$12 sps:$4 sm:$0xff]   ;;  %v7073_v18 = vld [vmem:[%s9410_s5 + $0x140] ss:$12 sps:$4 sm:$0xff]  }
0x10c7   : > { %v6429_v31 = vpop.f32.mrb[52].mxu1 }
0x10c8   : > { %v6430_v2 = vpop.f32.mrb[53].mxu1  ;;  %v3168_v32 = vadd.f32 %v6406_v52, %v5999_v42  ;;  %v7075_v52 = vld [vmem:[%s9410_s5 + $0x170] ss:$12 sps:$4 sm:$0xff]  }
0x10c9   : > { %v6431_v38 = vadd.f32 %v6430_v2, %v6429_v31  ;;  %v6432_v62 = vpop.f32.mrb[54].mxu1  ;;  %v7072_v31 = vld [vmem:[%s9410_s5 + $0x16c] ss:$12 sps:$4 sm:$0xff]  }
0x10ca   : > { %v6433_v14 = vpop.f32.mrb[55].mxu1  ;;  %v7074_v2 = vld [vmem:[%s9410_s5 + $0x158] ss:$12 sps:$4 sm:$0xff]  }
0x10cb   : > { %v3213_v8 = vadd.f32 %v6431_v38, %v3165_v59  ;;  %v6434_v63 = vadd.f32 %v6433_v14, %v6432_v62  ;;  %v7070_v59 = vld [vmem:[%s9410_s5 + $0x168] ss:$12 sps:$4 sm:$0xff]  }
0x10cd   : > { %v3216_v15 = vadd.f32 %v6434_v63, %v3168_v32  ;;  %v8644_v13 = vadd.f32 %v3213_v8, %v8170_v33 }
0x10cf   : > { %3231 = vadd.xlane.f32.xlu0 %v8644_v13  ;;  %v8648_v46 = vadd.f32 %v3216_v15, %v8173_v34 }
0x10d1   : > { %3233 = vadd.xlane.f32.xlu1 %v8648_v46 }
0x10ea   : > { %v6407_v9 = vpop.f32.mrb[36].mxu0 }
0x10eb   : > { %v6408_v41 = vpop.f32.mrb[37].mxu0 }
0x10ec   : > { %v6409_v60 = vadd.f32 %v6408_v41, %v6407_v9  ;;  %v6410_v30 = vpop.f32.mrb[38].mxu0  ;;  %v6032_v9 = vld [vmem:[%s9465_s22 + $0x1] ss:$0 sm:$0xff] }
0x10ed   : > { %v6411_v58 = vpop.f32.mrb[39].mxu0 }
0x10ee   : > { %v6435_v54 = vpop.f32.mrb[56].mxu1  ;;  %v3173_v22 = vadd.f32 %v6409_v60, %v5999_v42  ;;  %v7065_v42 = vld [vmem:[%s9410_s5 + $0x110] ss:$12 sps:$4 sm:$0xff]  }
0x10ef   : > { %v6436_v44 = vpop.f32.mrb[57].mxu1  ;;  %6686 = vmatprep.subr.bf16.mxu1 %v7065_v42 }
0x10f0   : > { %v6437_v37 = vadd.f32 %v6436_v44, %v6435_v54  ;;  %v6438_v40 = vpop.f32.mrb[58].mxu1  ;;  %6687 = vmatpush3.bf16.msra.mxu1 %v7065_v42  ;;  %v6033_v54 = vld [vmem:[%s9409_s4 + $0x1] ss:$0 sm:$0xff] }
0x10f1   : > { %v6439_v53 = vpop.f32.mrb[59].mxu1  ;;  %6688 = vmatprep.subr.bf16.mxu1 %v7069_v21 }
0x10f2   : > { %v3221_v33 = vadd.f32 %v6437_v37, %v3173_v22 }
0x10f4   : > { %v8652_v28 = vadd.f32 %v3221_v33, %v8175_v35  ;;  %v7047_v35 = vld [vmem:[%s9410_s5 + $0xd8] ss:$12 sps:$4 sm:$0xff]   ;;  %6689 = vmatpush3.bf16.msra.mxu1 %v7069_v21 }
0x10f5   : > { %3464 = vmatpush1.bf16.msra.mxu0 %v7047_v35  ;;  %6690 = vmatprep.subr.bf16.mxu1 %v7073_v18 }
0x10f6   : > { %v3235_v34 = vsel %vm874_vm0, %v8652_v28, 0.0  ;;  %3465 = vmatprep.subr.bf16.mxu0 %v7052_v55 }
0x10f7   : > { %3236 = vadd.xlane.f32.xlu0 %v3235_v34 }
0x10f8   : > { %6691 = vmatpush3.bf16.msra.mxu1 %v7073_v18 }
0x10f9   : > { %3466 = vmatpush1.bf16.msra.mxu0 %v7050_v6  ;;  %6692 = vmatprep.subr.bf16.mxu1 %v7074_v2 }
0x10fa   : > { %3467 = vmatprep.subr.bf16.mxu0 %v7056_v12 }
0x10fc   : > { %6693 = vmatpush3.bf16.msra.mxu1 %v7074_v2 }
0x10fd   : > { %3468 = vmatpush1.bf16.msra.mxu0 %v7054_v1  ;;  %6694 = vmatprep.subr.bf16.mxu1 %v7075_v52 }
0x10fe   : > { %3469 = vmatprep.subr.bf16.mxu0 %v7060_v50  ;;  %v9471_v50 = vld [vmem:[#allocation15_spill] sm:$0xff] }
0x1100   : > { %6695 = vmatpush3.bf16.msra.mxu1 %v7075_v52 }
0x1101   : > { %3470 = vmatpush1.bf16.msra.mxu0 %v7058_v29 }
0x1102   : > { %3471 = vmatprep.subr.bf16.mxu0 %v7064_v16 }
0x1105   : > { %3472 = vmatpush1.bf16.msra.mxu0 %v7062_v3 }
0x1106   : > { %3473 = vmatprep.subr.bf16.mxu0 %v7068_v25 }
0x1109   : > { %3474 = vmatpush1.bf16.msra.mxu0 %v7066_v51 }
0x110a   : > { %3475 = vmatprep.subr.bf16.mxu0 %v7072_v31 }
0x110d   : > { %3476 = vmatpush1.bf16.msra.mxu0 %v7070_v59 }
0x115c   : > { %v3232_v57 = vpop.xlane.xlu0 %3231 }
0x115d   : > { %v3238_v7 = vmul.f32 0.0078125, %v3232_v57 }
0x115e   : > { %v3234_v36 = vpop.xlane.xlu1 %3233 }
0x115f   : > { %v8669_v48 = vsub.f32 %v8644_v13, %v3238_v7  ;;  %v3239_v23 = vmul.f32 0.0078125, %v3234_v36  ;;  %v3316_v7 = vld [vmem:[#allocation4 + $0x1] ss:$2 sm:$0x7] }
0x1160   : > { %v3321_v36 = vrot.slane %v3316_v7, %v7995_v43  ;;  %v3329_v27 = vrot.slane %v3316_v7, %v9471_v50 }
0x1161   : > { %v8672_v47 = vsub.f32 %v8648_v46, %v3239_v23  ;;  %v3244_v11 = vmul.f32 %v8669_v48, %v8669_v48  ;;  %v3325_v23 = vrot.slane %v3316_v7, %v7998_v45 }
0x1163   : > { %3247 = vadd.xlane.f32.xlu1 %v3244_v11  ;;  %v3245_v5 = vmul.f32 %v8672_v47, %v8672_v47 }
0x1165   : > { %3249 = vadd.xlane.f32.xlu0 %v3245_v5 }
0x1184   : > { %v3237_v56 = vpop.xlane.xlu0 %3236 }
0x1185   : > { %v3240_v0 = vmul.f32 0.0078125, %v3237_v56 }
0x1187   : > { %v8703_v10 = vsub.f32 %v8652_v28, %v3240_v0 }
0x1189   : > { %v3246_v26 = vmul.f32 %v8703_v10, %v8703_v10 }
0x118b   : > { %v3251_v19 = vsel %vm874_vm0, %v3246_v26, 0.0 }
0x118c   : > { %3252 = vadd.xlane.f32.xlu1 %v3251_v19 }
0x11f0   : > { %v3248_v38 = vpop.xlane.xlu1 %3247 }
0x11f1   : > { %v3254_v62 = vmul.f32 0.0078125, %v3248_v38 }
0x11f2   : > { %v3250_v32 = vpop.xlane.xlu0 %3249 }
0x11f3   : > { %v3257_v14 = vadd.f32 1e-06, %v3254_v62  ;;  %v3255_v8 = vmul.f32 0.0078125, %v3250_v32  ;;  %v9472_v62 = vld [vmem:[#allocation16_spill] sm:$0xff] }
0x11f5   : > { %7280 = vrsqrt.f32 %v3257_v14  ;;  %v3258_v63 = vadd.f32 1e-06, %v3255_v8 }
0x11f7   : > { %7282 = vrsqrt.f32 %v3258_v63 }
0x11ff   : > { %v7281_v15 = vpop.eup %7280 }
0x1200   : > { %v3263_v41 = vmul.f32 %v7281_v15, %v8669_v48 }
0x1201   : > { %v7283_v60 = vpop.eup %7282 }
0x1202   : > { %v3270_v30 = vmul.f32 %v6032_v9, %v3263_v41  ;;  %v3264_v58 = vmul.f32 %v7283_v60, %v8672_v47 }
0x1204   : > { %v3271_v22 = vmul.f32 %v6032_v9, %v3264_v58  ;;  %v3277_v44 = vadd.f32 %v6033_v54, %v3270_v30 }
0x1206   : > { %v3278_v37 = vadd.f32 %v6033_v54, %v3271_v22 }
0x1208   : > { %v3280_v40 = vpack.c.bf16 %v3278_v37, %v3277_v44 }
0x120a   : > { %3494 = vmatmul.mubr.bf16.vlgmr.msra.gmra.mrb[40].mxu0 %v3280_v40  ;;  %6696 = vmatprep.mubr.bf16.mxu1 %v3280_v40 }
0x120b   : > { %3503 = vmatprep.mubr.bf16.mxu0 %v9470_v24 }
0x1219   : > { %v3253_v53 = vpop.xlane.xlu1 %3252 }
0x121a   : > { %v3256_v33 = vmul.f32 0.0078125, %v3253_v53 }
0x121c   : > { %v3259_v34 = vadd.f32 1e-06, %v3256_v33 }
0x121e   : > { %7284 = vrsqrt.f32 %v3259_v34 }
0x1228   : > { %v7285_v39 = vpop.eup %7284 }
0x1229   : > { %v3265_v61 = vmul.f32 %v7285_v39, %v8703_v10 }
0x122b   : > { %v3272_v17 = vmul.f32 %v6032_v9, %v3265_v61 }
0x122d   : > { %v3279_v35 = vadd.f32 %v6033_v54, %v3272_v17 }
0x122f   : > { %v3281_v57 = vpack.c.bf16 %v3279_v35, %v3279_v35 }
0x1231   : > { %3504 = vmatmul.mubr.bf16.gmra.mrb[44].mxu0 %v3281_v57  ;;  %6697 = vmatmul.mubr.bf16.vlgmr.msra.gmra.mrb[60].mxu1 %v3281_v57 }
0x12dd   : > { %v3495_v48 = vpop.f32.mrb[40].mxu0 }
0x12de   : > { %v3497_v47 = vpop.f32.mrb[41].mxu0  ;;  %v3496_v5 = vadd.f32 %v3495_v48, %v3321_v36 }
0x12df   : > { %v3499_v11 = vpop.f32.mrb[42].mxu0  ;;  %v3498_v49 = vadd.f32 %v3497_v47, %v3325_v23 }
0x12e0   : > { %v3500_v6 = vadd.f32 %v3499_v11, %v3321_v36  ;;  %v3501_v55 = vpop.f32.mrb[43].mxu0 }
0x12e1   : > { %v3502_v12 = vadd.f32 %v3501_v55, %v3325_v23 }
0x12e2   : > { %v8756_v4 = vpack.c.bf16 %v3500_v6, %v3496_v5 }
0x12e3   : > { %v8758_v1 = vpack.c.bf16 %v3502_v12, %v3498_v49 }
0x12e4   : > { %6704 = vmatprep.mubr.msk.bf16.mxu0 %vm1221_vm1, %v8756_v4 }
0x12e5   : > { %6824 = vmatprep.subr.msk.bf16.mxu0 %vm1221_vm1, %v8758_v1  ;;  %v3590_v56 = vsel %vm1221_vm1, %v8758_v1, 0 }
0x12e6   : > { %6701 = vmatpush3.bf16.xpose.msra.mxu0 %v3590_v56 }
0x1304   : > { %v3505_v0 = vpop.f32.mrb[44].mxu0  ;;  %v6698_v10 = vpop.f32.mrb[60].mxu1 }
0x1305   : > { %v3555_v29 = vadd.f32 %v6698_v10, %v3329_v27  ;;  %v3507_v26 = vpop.f32.mrb[45].mxu0  ;;  %v3546_v19 = vpop.f32.mrb[61].mxu1  ;;  %v3506_v38 = vadd.f32 %v3505_v0, %v3321_v36 }
0x1306   : > { %v3508_v3 = vadd.f32 %v3507_v26, %v3325_v23  ;;  %v3509_v16 = vpop.f32.mrb[46].mxu0  ;;  %v6699_v42 = vpop.f32.mrb[62].mxu1  ;;  %v3547_v18 = vadd.f32 %v3546_v19, %v3329_v27  ;;  %v7076_v26 = vld [vmem:[#allocation6 + $0x40] sm:$0xff]  }
0x1307   : > { %v3510_v25 = vpop.f32.mrb[47].mxu0  ;;  %v3549_v21 = vpop.f32.mrb[63].mxu1  ;;  %v8767_v51 = vpack.c.bf16 %v3555_v29, %v3555_v29  ;;  %v8781_v14 = vpack.c.bf16 %v3506_v38, %v3506_v38  ;;  %v7077_v16 = vld [vmem:[#allocation6 + $0x48] sm:$0xff]  }
0x1308   : > { %v8769_v31 = vpack.c.bf16 %v3508_v3, %v3508_v3  ;;  %v3550_v59 = vadd.f32 %v3549_v21, %v3329_v27 }
0x1309   : > { %v3685_v32 = vand.u32 %v8767_v51, %v9472_v62 }
0x130a   : > { %v8771_v2 = vpack.c.bf16 %v3550_v59, %v3547_v18  ;;  %6825 = vmatprep.subr.msk.bf16.mxu0 %vm1221_vm1, %v8769_v31  ;;  %v3593_v52 = vsel %vm1221_vm1, %v8769_v31, 0 }
0x130b   : > { %6703 = vmatpush3.bf16.xpose.msra.mxu0 %v3593_v52 }
0x130c   : > { %6708 = vmatprep.subr.bf16.mxu1 %v8771_v2 }
0x130d   : > { %6709 = vmatpush3.bf16.msra.mxu1 %v8771_v2 }
0x130e   : > { %6710 = vmatprep.subr.bf16.mxu1 %v3685_v32 }
0x1311   : > { %6711 = vmatpush3.bf16.msra.mxu1 %v3685_v32 }
0x1312   : > { %6705 = vmatmul.mubr.msk.bf16.vlgmr.msra.gmra.mrb[48].mxu0 %vm1221_vm1, %v8781_v14 }
0x13e5   : > { %v6706_v8 = vpop.f32.mrb[48].mxu0 }
0x13e6   : > { %v3629_v63 = vpop.f32.mrb[49].mxu0  ;;  %v3649_v30 = vsel %vm1289_vm3, %v6706_v8, -inf }
0x13e7   : > { %v6707_v15 = vpop.f32.mrb[50].mxu0  ;;  %v3643_v9 = vsel %vm1282_vm2, %v3629_v63, -inf }
0x13e8   : > { %3644 = vmax.xlane.f32.xlu0 %v3643_v9  ;;  %v3632_v41 = vpop.f32.mrb[51].mxu0 }
0x13e9   : > { %v3646_v60 = vsel %vm1282_vm2, %v3632_v41, -inf }
0x13ea   : > { %3647 = vmax.xlane.f32.xlu1 %v3646_v60 }
0x13ec   : > { %3650 = vmax.xlane.f32.xlu0 %v3649_v30 }
0x1475   : > { %v3645_v58 = vpop.xlane.xlu0 %3644 }
0x1476   : > { %v3652_v54 = vsub.f32 %v3629_v63, %v3645_v58 }
0x1477   : > { %v3648_v22 = vpop.xlane.xlu1 %3647 }
0x1478   : > { %v3655_v44 = vmul.f32 1.442695, %v3652_v54  ;;  %v3653_v37 = vsub.f32 %v3632_v41, %v3648_v22 }
0x1479   : > { %v3651_v40 = vpop.xlane.xlu0 %3650 }
0x147a   : > { %7286 = vpow2.f32 %v3655_v44  ;;  %v3657_v53 = vmul.f32 1.442695, %v3653_v37  ;;  %v3654_v33 = vsub.f32 %v6706_v8, %v3651_v40 }
0x147c   : > { %7288 = vpow2.f32 %v3657_v53  ;;  %v3659_v34 = vmul.f32 1.442695, %v3654_v33 }
0x147e   : > { %7290 = vpow2.f32 %v3659_v34 }
0x1484   : > { %v7287_v39 = vpop.eup %7286 }
0x1485   : > { %v3661_v61 = vsel %vm1282_vm2, %v7287_v39, 0.0 }
0x1486   : > { %v7289_v17 = vpop.eup %7288  ;;  %3662 = vadd.xlane.f32.xlu1 %v3661_v61 }
0x1487   : > { %v3664_v35 = vsel %vm1282_vm2, %v7289_v17, 0.0 }
0x1488   : > { %v7291_v57 = vpop.eup %7290  ;;  %3665 = vadd.xlane.f32.xlu0 %v3664_v35 }
0x1489   : > { %v3667_v7 = vsel %vm1289_vm3, %v7291_v57, 0.0 }
0x148a   : > { %3668 = vadd.xlane.f32.xlu1 %v3667_v7 }
0x149b   : > { %3747 = vrot.lane.b32.xlu1 %v8769_v31, %s7564_s20 }
0x149e   : > { %3745 = vrot.lane.b32.xlu0 %v8758_v1, %s7564_s20 }
0x149f   : > { %3739 = vrot.lane.b32.xlu1 %v8756_v4, %s7564_s20 }
0x14a3   : > { %3741 = vrot.lane.b32.xlu1 %v8781_v14, %s7564_s20 }
0x1513   : > { %v3663_v36 = vpop.xlane.xlu1 %3662 }
0x1514   : > { %7292 = vrcp.f32 %v3663_v36 }
0x1515   : > { %v3666_v48 = vpop.xlane.xlu0 %3665 }
0x1516   : > { %7294 = vrcp.f32 %v3666_v48 }
0x1517   : > { %v3669_v23 = vpop.xlane.xlu1 %3668 }
0x1518   : > { %7296 = vrcp.f32 %v3669_v23 }
0x1519   : > { %v3746_v47 = vpop.permute.xlu0 %3745 }
0x151a   : > { %6826 = vmatprep.subr.msk.bf16.mxu1 %vm1221_vm1, %v3746_v47  ;;  %v3756_v10 = vsel %vm1221_vm1, %v3746_v47, 0 }
0x151b   : > { %v3748_v6 = vpop.permute.xlu1 %3747 }
0x151c   : > { %v3759_v19 = vsel %vm1221_vm1, %v3748_v6, 0 }
0x151e   : > { %v7293_v11 = vpop.eup %7292 }
0x151f   : > { %v3673_v55 = vmul.f32 %v7293_v11, %v7287_v39  ;;  %v3740_v29 = vpop.permute.xlu1 %3739 }
0x1520   : > { %v7295_v5 = vpop.eup %7294 }
0x1521   : > { %v3674_v49 = vmul.f32 %v7295_v5, %v7289_v17 }
0x1522   : > { %v7297_v12 = vpop.eup %7296 }
0x1523   : > { %v3675_v56 = vmul.f32 %v7297_v12, %v7291_v57  ;;  %v3676_v27 = vpack.c.bf16 %v3674_v49, %v3673_v55  ;;  %v3742_v3 = vpop.permute.xlu1 %3741 }
0x1525   : > { %6712 = vmatprep.mubr.msk.bf16.mxu1 %vm1282_vm2, %v3676_v27  ;;  %v3677_v0 = vpack.c.bf16 %v3675_v56, %v3675_v56 }
0x1527   : > { %6713 = vmatmul.mubr.msk.bf16.vlgmr.msra.gmra.mrb[64].mxu1 %vm1282_vm2, %v3677_v0 }
0x1528   : > { %6717 = vmatpush3.bf16.xpose.msra.mxu1 %v3756_v10  ;;  %6720 = vmatprep.mubr.msk.bf16.mxu1 %vm1221_vm1, %v3740_v29  ;;  %v7079_v10 = vld [vmem:[#allocation6 + $0x58] sm:$0xff]  }
0x1529   : > { %6827 = vmatprep.subr.msk.bf16.mxu1 %vm1221_vm1, %v3748_v6 }
0x1530   : > { %6719 = vmatpush3.bf16.xpose.msra.mxu1 %v3759_v19 }
0x1531   : > { %6740 = vmatprep.subr.bf16.mxu1 %v7076_v26 }
0x1537   : > { %6721 = vmatmul.mubr.msk.bf16.vlgmr.msra.gmra.mrb[68].mxu1 %vm1221_vm1, %v3742_v3 }
0x1538   : > { %6741 = vmatpush3.bf16.msra.mxu1 %v7076_v26 }
0x1539   : > { %6742 = vmatprep.subr.bf16.mxu1 %v7077_v16 }
0x153c   : > { %6743 = vmatpush3.bf16.msra.mxu1 %v7077_v16 }
0x15fa   : > { %v6714_v42 = vpop.f32.mrb[64].mxu1 }
0x15fb   : > { %v3721_v25 = vpop.f32.mrb[65].mxu1  ;;  %v3736_v52 = vpack.c.bf16 %v6714_v42, %v6714_v42 }
0x15fc   : > { %v6715_v21 = vpop.f32.mrb[66].mxu1 }
0x15fd   : > { %v3724_v18 = vpop.f32.mrb[67].mxu1 }
0x15fe   : > { %v3735_v59 = vpack.c.bf16 %v3724_v18, %v3721_v25 }
0x1600   : > { %6744 = vmatprep.mubr.msk.bf16.mxu1 %vm1221_vm1, %v3735_v59 }
0x1601   : > { %6745 = vmatmul.mubr.msk.bf16.vlgmr.msra.gmra.mrb[72].mxu1 %vm1221_vm1, %v3736_v52 }
0x160a   : > { %v6722_v38 = vpop.f32.mrb[68].mxu1 }
0x160b   : > { %v3795_v32 = vpop.f32.mrb[69].mxu1  ;;  %v3815_v41 = vsel %vm1289_vm3, %v6722_v38, -inf }
0x160c   : > { %v6723_v8 = vpop.f32.mrb[70].mxu1  ;;  %v3809_v63 = vsel %vm1282_vm2, %v3795_v32, -inf }
0x160d   : > { %3810 = vmax.xlane.f32.xlu0 %v3809_v63  ;;  %v3798_v15 = vpop.f32.mrb[71].mxu1 }
0x160e   : > { %v3812_v9 = vsel %vm1282_vm2, %v3798_v15, -inf }
0x160f   : > { %3813 = vmax.xlane.f32.xlu1 %v3812_v9 }
0x1611   : > { %3816 = vmax.xlane.f32.xlu0 %v3815_v41 }
0x169a   : > { %v3811_v60 = vpop.xlane.xlu0 %3810 }
0x169b   : > { %v3818_v30 = vsub.f32 %v3795_v32, %v3811_v60 }
0x169c   : > { %v3814_v58 = vpop.xlane.xlu1 %3813 }
0x169d   : > { %v3821_v54 = vmul.f32 1.442695, %v3818_v30  ;;  %v3819_v22 = vsub.f32 %v3798_v15, %v3814_v58 }
0x169e   : > { %v3817_v44 = vpop.xlane.xlu0 %3816 }
0x169f   : > { %7298 = vpow2.f32 %v3821_v54  ;;  %v3823_v37 = vmul.f32 1.442695, %v3819_v22  ;;  %v3820_v40 = vsub.f32 %v6722_v38, %v3817_v44 }
0x16a1   : > { %7300 = vpow2.f32 %v3823_v37  ;;  %v3825_v53 = vmul.f32 1.442695, %v3820_v40 }
0x16a3   : > { %7302 = vpow2.f32 %v3825_v53 }
0x16a9   : > { %v7299_v33 = vpop.eup %7298 }
0x16aa   : > { %v3827_v34 = vsel %vm1282_vm2, %v7299_v33, 0.0 }
0x16ab   : > { %v7301_v39 = vpop.eup %7300  ;;  %3828 = vadd.xlane.f32.xlu0 %v3827_v34 }
0x16ac   : > { %v3830_v35 = vsel %vm1282_vm2, %v7301_v39, 0.0 }
0x16ad   : > { %v7303_v61 = vpop.eup %7302 }
0x16ae   : > { %v3833_v17 = vsel %vm1289_vm3, %v7303_v61, 0.0 }
0x16af   : > { %3834 = vadd.xlane.f32.xlu1 %v3833_v17  ;;  %3831 = vadd.xlane.f32.xlu0 %v3830_v35 }
0x16c0   : > { %3848 = vrot.lane.b32.xlu1 %v8767_v51, %s7564_s20 }
0x16c4   : > { %4046 = vrot.lane.b32.xlu1 %v8758_v1, %s7565_s2 }
0x16c5   : > { %3846 = vrot.lane.b32.xlu0 %v8771_v2, %s7564_s20 }
0x16c8   : > { %4048 = vrot.lane.b32.xlu1 %v8769_v31, %s7565_s2 }
0x16c9   : > { %4042 = vrot.lane.b32.xlu0 %v8756_v4, %s7565_s2 }
0x16cc   : > { %4044 = vrot.lane.b32.xlu1 %v8781_v14, %s7565_s2 }
0x16cd   : > { %4282 = vrot.lane.b32.xlu0 %v8758_v1, %s7566_s0 }
0x16d0   : > { %4284 = vrot.lane.b32.xlu1 %v8769_v31, %s7566_s0 }
0x16d1   : > { %4278 = vrot.lane.b32.xlu0 %v8756_v4, %s7566_s0 }
0x16d4   : > { %4280 = vrot.lane.b32.xlu1 %v8781_v14, %s7566_s0  ;;  %v8835_v57 = vpop.f32.mrb[72].mxu1  ;;  %v7078_v14 = vld [vmem:[#allocation6 + $0x50] sm:$0xff]  }
0x16d5   : > { %v8837_v7 = vpop.f32.mrb[73].mxu1 }
0x16d6   : > { %v6747_v36 = vpop.f32.mrb[74].mxu1 }
0x16d7   : > { %v8839_v48 = vpop.f32.mrb[75].mxu1 }
0x1738   : > { %v3829_v23 = vpop.xlane.xlu0 %3828 }
0x1739   : > { %7304 = vrcp.f32 %v3829_v23 }
0x173c   : > { %v3832_v47 = vpop.xlane.xlu0 %3831  ;;  %v3835_v1 = vpop.xlane.xlu1 %3834 }
0x173d   : > { %7306 = vrcp.f32 %v3832_v47 }
0x173e   : > { %7308 = vrcp.f32 %v3835_v1 }
0x1740   : > { %v3847_v31 = vpop.permute.xlu0 %3846  ;;  %v3849_v11 = vpop.permute.xlu1 %3848 }
0x1741   : > { %v3858_v4 = vand.u32 %v3849_v11, %v9472_v62  ;;  %6724 = vmatprep.subr.bf16.mxu0 %v3847_v31 }
0x1742   : > { %6725 = vmatpush3.bf16.msra.mxu0 %v3847_v31 }
0x1743   : > { %6726 = vmatprep.subr.bf16.mxu0 %v3858_v4  ;;  %v7305_v5 = vpop.eup %7304 }
0x1744   : > { %v3839_v49 = vmul.f32 %v7305_v5, %v7299_v33  ;;  %v4047_v29 = vpop.permute.xlu1 %4046  ;;  %v4043_v21 = vpop.permute.xlu0 %4042 }
0x1745   : > { %v4057_v18 = vsel %vm1221_vm1, %v4047_v29, 0 }
0x1746   : > { %6727 = vmatpush3.bf16.msra.mxu0 %v3858_v4 }
0x1747   : > { %v7307_v6 = vpop.eup %7306  ;;  %6732 = vmatprep.subr.bf16.mxu0 %v7078_v14 }
0x1748   : > { %v7309_v55 = vpop.eup %7308  ;;  %v3840_v12 = vmul.f32 %v7307_v6, %v7301_v39  ;;  %v4049_v59 = vpop.permute.xlu1 %4048 }
0x1749   : > { %v3841_v56 = vmul.f32 %v7309_v55, %v7303_v61  ;;  %v4060_v52 = vsel %vm1221_vm1, %v4049_v59, 0  ;;  %v4283_v38 = vpop.permute.xlu0 %4282 }
0x174a   : > { %v3842_v27 = vpack.c.bf16 %v3840_v12, %v3839_v49  ;;  %v4293_v8 = vsel %vm1221_vm1, %v4283_v38, 0 }
0x174b   : > { %v3843_v0 = vpack.c.bf16 %v3841_v56, %v3841_v56 }
0x174c   : > { %6728 = vmatprep.mubr.msk.bf16.mxu0 %vm1282_vm2, %v3842_v27  ;;  %v4045_v32 = vpop.permute.xlu1 %4044 }
0x174d   : > { %6729 = vmatmul.mubr.msk.bf16.vlgmr.msra.gmra.mrb[52].mxu0 %vm1282_vm2, %v3843_v0  ;;  %v4279_v63 = vpop.permute.xlu0 %4278 }
0x174e   : > { %6733 = vmatpush3.bf16.msra.mxu0 %v7078_v14 }
0x174f   : > { %6734 = vmatprep.subr.bf16.mxu0 %v7079_v10 }
0x1750   : > { %v4285_v15 = vpop.permute.xlu1 %4284 }
0x1751   : > { %v4296_v9 = vsel %vm1221_vm1, %v4285_v15, 0 }
0x1752   : > { %6735 = vmatpush3.bf16.msra.mxu0 %v7079_v10 }
0x1753   : > { %6828 = vmatprep.subr.msk.bf16.mxu0 %vm1221_vm1, %v4047_v29 }
0x1754   : > { %v4281_v41 = vpop.permute.xlu1 %4280 }
0x1820   : > { %v6730_v26 = vpop.f32.mrb[52].mxu0 }
0x1821   : > { %v3894_v19 = vpop.f32.mrb[53].mxu0  ;;  %v3909_v25 = vpack.c.bf16 %v6730_v26, %v6730_v26 }
0x1822   : > { %v6731_v3 = vpop.f32.mrb[54].mxu0 }
0x1823   : > { %v3897_v16 = vpop.f32.mrb[55].mxu0 }
0x1824   : > { %v3908_v42 = vpack.c.bf16 %v3897_v16, %v3894_v19 }
0x1826   : > { %6736 = vmatprep.mubr.msk.bf16.mxu0 %vm1221_vm1, %v3908_v42 }
0x1827   : > { %6737 = vmatmul.mubr.msk.bf16.vlgmr.msra.gmra.mrb[56].mxu0 %vm1221_vm1, %v3909_v25 }
0x1828   : > { %6749 = vmatpush3.bf16.xpose.msra.mxu0 %v4057_v18  ;;  %6752 = vmatprep.mubr.msk.bf16.mxu0 %vm1221_vm1, %v4043_v21  ;;  %v7080_v21 = vld [vmem:[#allocation6 + $0x60] sm:$0xff]  }
0x1829   : > { %6829 = vmatprep.subr.msk.bf16.mxu0 %vm1221_vm1, %v4049_v59 }
0x1830   : > { %6751 = vmatpush3.bf16.xpose.msra.mxu0 %v4060_v52 }
0x1831   : > { %6830 = vmatprep.subr.msk.bf16.mxu0 %vm1221_vm1, %v4283_v38 }
0x1837   : > { %6753 = vmatmul.mubr.msk.bf16.vlgmr.msra.gmra.mrb[60].mxu0 %vm1221_vm1, %v4045_v32 }
0x1838   : > { %6773 = vmatpush3.bf16.xpose.msra.mxu0 %v4293_v8  ;;  %6776 = vmatprep.mubr.msk.bf16.mxu0 %vm1221_vm1, %v4279_v63 }
0x1839   : > { %6831 = vmatprep.subr.msk.bf16.mxu0 %vm1221_vm1, %v4285_v15 }
0x1840   : > { %6775 = vmatpush3.bf16.xpose.msra.mxu0 %v4296_v9 }
0x1847   : > { %6777 = vmatmul.mubr.msk.bf16.vlgmr.msra.gmra.mrb[64].mxu0 %vm1221_vm1, %v4281_v41 }
0x1848   : > { %4826 = vmatprep.mubr.bf16.mxu0 %v9470_v24 }
0x18fa   : > { %v6738_v60 = vpop.f32.mrb[56].mxu0 }
0x18fb   : > { %v8860_v30 = vadd.f32 %v8835_v57, %v6738_v60  ;;  %v3962_v58 = vpop.f32.mrb[57].mxu0 }
0x18fc   : > { %v8863_v54 = vadd.f32 %v8837_v7, %v3962_v58  ;;  %v6739_v22 = vpop.f32.mrb[58].mxu0 }
0x18fd   : > { %v3965_v44 = vpop.f32.mrb[59].mxu0 }
0x18fe   : > { %v8866_v37 = vadd.f32 %v8839_v48, %v3965_v44 }
0x190a   : > { %v6754_v40 = vpop.f32.mrb[60].mxu0 }
0x190b   : > { %v4096_v53 = vpop.f32.mrb[61].mxu0  ;;  %v4116_v17 = vsel %vm1289_vm3, %v6754_v40, -inf }
0x190c   : > { %v6755_v33 = vpop.f32.mrb[62].mxu0  ;;  %v4110_v34 = vsel %vm1282_vm2, %v4096_v53, -inf }
0x190d   : > { %4111 = vmax.xlane.f32.xlu0 %v4110_v34  ;;  %v4099_v39 = vpop.f32.mrb[63].mxu0 }
0x190e   : > { %v4113_v61 = vsel %vm1282_vm2, %v4099_v39, -inf }
0x190f   : > { %4114 = vmax.xlane.f32.xlu1 %v4113_v61 }
0x1911   : > { %4117 = vmax.xlane.f32.xlu0 %v4116_v17 }
0x191a   : > { %v8871_v35 = vpop.f32.mrb[64].mxu0 }
0x191b   : > { %v8873_v57 = vpop.f32.mrb[65].mxu0  ;;  %v4352_v29 = vsel %vm1289_vm3, %v8871_v35, -inf }
0x191c   : > { %v6779_v7 = vpop.f32.mrb[66].mxu0  ;;  %v4346_v0 = vsel %vm1282_vm2, %v8873_v57, -inf }
0x191d   : > { %v4335_v36 = vpop.f32.mrb[67].mxu0 }
0x191e   : > { %v4349_v10 = vsel %vm1282_vm2, %v4335_v36, -inf }
0x199a   : > { %v4112_v48 = vpop.xlane.xlu0 %4111 }
0x199b   : > { %v4119_v23 = vsub.f32 %v4096_v53, %v4112_v48 }
0x199c   : > { %v4115_v47 = vpop.xlane.xlu1 %4114 }
0x199d   : > { %v4122_v1 = vmul.f32 1.442695, %v4119_v23  ;;  %v4120_v31 = vsub.f32 %v4099_v39, %v4115_v47 }
0x199e   : > { %v4118_v11 = vpop.xlane.xlu0 %4117 }
0x199f   : > { %7310 = vpow2.f32 %v4122_v1  ;;  %v4124_v4 = vmul.f32 1.442695, %v4120_v31  ;;  %v4121_v14 = vsub.f32 %v6754_v40, %v4118_v11 }
0x19a1   : > { %7312 = vpow2.f32 %v4124_v4  ;;  %v4126_v5 = vmul.f32 1.442695, %v4121_v14 }
0x19a3   : > { %7314 = vpow2.f32 %v4126_v5 }
0x19a9   : > { %v7311_v6 = vpop.eup %7310 }
0x19aa   : > { %v4128_v55 = vsel %vm1282_vm2, %v7311_v6, 0.0 }
0x19ab   : > { %v7313_v49 = vpop.eup %7312  ;;  %4129 = vadd.xlane.f32.xlu0 %v4128_v55 }
0x19ac   : > { %v4131_v27 = vsel %vm1282_vm2, %v7313_v49, 0.0 }
0x19ad   : > { %v7315_v12 = vpop.eup %7314 }
0x19ae   : > { %v4134_v56 = vsel %vm1289_vm3, %v7315_v12, 0.0 }
0x19af   : > { %4135 = vadd.xlane.f32.xlu1 %v4134_v56  ;;  %4132 = vadd.xlane.f32.xlu0 %v4131_v27 }
0x19c0   : > { %4147 = vrot.lane.b32.xlu1 %v8767_v51, %s7565_s2 }
0x19c5   : > { %4145 = vrot.lane.b32.xlu0 %v8771_v2, %s7565_s2 }
0x19e4   : > { %4347 = vmax.xlane.f32.xlu1 %v4346_v0  ;;  %4350 = vmax.xlane.f32.xlu0 %v4349_v10 }
0x19e8   : > { %4353 = vmax.xlane.f32.xlu0 %v4352_v29  ;;  %v7082_v29 = vld [vmem:[#allocation6 + $0x70] sm:$0xff]  }
0x1a38   : > { %v4130_v26 = vpop.xlane.xlu0 %4129 }
0x1a39   : > { %7316 = vrcp.f32 %v4130_v26  ;;  %v7083_v26 = vld [vmem:[#allocation6 + $0x78] sm:$0xff]  }
0x1a3c   : > { %v4133_v19 = vpop.xlane.xlu0 %4132  ;;  %v4136_v3 = vpop.xlane.xlu1 %4135 }
0x1a3d   : > { %7318 = vrcp.f32 %v4133_v19 }
0x1a3e   : > { %7320 = vrcp.f32 %v4136_v3 }
0x1a40   : > { %v4146_v16 = vpop.permute.xlu0 %4145  ;;  %v4148_v42 = vpop.permute.xlu1 %4147 }
0x1a41   : > { %v4157_v25 = vand.u32 %v4148_v42, %v9472_v62  ;;  %6756 = vmatprep.subr.bf16.mxu1 %v4146_v16 }
0x1a42   : > { %6757 = vmatpush3.bf16.msra.mxu1 %v4146_v16 }
0x1a43   : > { %6758 = vmatprep.subr.bf16.mxu1 %v4157_v25  ;;  %v7317_v18 = vpop.eup %7316 }
0x1a44   : > { %v4140_v38 = vmul.f32 %v7317_v18, %v7311_v6 }
0x1a46   : > { %6759 = vmatpush3.bf16.msra.mxu1 %v4157_v25 }
0x1a47   : > { %v7319_v59 = vpop.eup %7318  ;;  %6764 = vmatprep.subr.bf16.mxu1 %v7080_v21 }
0x1a48   : > { %v7321_v52 = vpop.eup %7320  ;;  %v4141_v32 = vmul.f32 %v7319_v59, %v7313_v49 }
0x1a49   : > { %v4142_v8 = vmul.f32 %v7321_v52, %v7315_v12 }
0x1a4a   : > { %v4143_v63 = vpack.c.bf16 %v4141_v32, %v4140_v38 }
0x1a4b   : > { %v4144_v15 = vpack.c.bf16 %v4142_v8, %v4142_v8 }
0x1a4c   : > { %6760 = vmatprep.mubr.msk.bf16.mxu1 %vm1282_vm2, %v4143_v63 }
0x1a4d   : > { %6761 = vmatmul.mubr.msk.bf16.vlgmr.msra.gmra.mrb[76].mxu1 %vm1282_vm2, %v4144_v15 }
0x1a4e   : > { %6765 = vmatpush3.bf16.msra.mxu1 %v7080_v21 }
0x1a71   : > { %v4351_v9 = vpop.xlane.xlu0 %4350  ;;  %v4348_v41 = vpop.xlane.xlu1 %4347 }
0x1a72   : > { %v4356_v60 = vsub.f32 %v4335_v36, %v4351_v9  ;;  %v4355_v22 = vsub.f32 %v8873_v57, %v4348_v41  ;;  %v7081_v57 = vld [vmem:[#allocation6 + $0x68] sm:$0xff]   ;;  %v6122_v41 = vld [vmem:[#allocation7 + $0x1] ss:$0 sm:$0xff] }
0x1a73   : > { %6766 = vmatprep.subr.bf16.mxu1 %v7081_v57 }
0x1a74   : > { %v4360_v58 = vmul.f32 1.442695, %v4356_v60  ;;  %v4358_v53 = vmul.f32 1.442695, %v4355_v22  ;;  %6767 = vmatpush3.bf16.msra.mxu1 %v7081_v57 }
0x1a75   : > { %v4354_v44 = vpop.xlane.xlu0 %4353 }
0x1a76   : > { %7322 = vpow2.f32 %v4360_v58  ;;  %v4357_v40 = vsub.f32 %v8871_v35, %v4354_v44 }
0x1a78   : > { %v4362_v33 = vmul.f32 1.442695, %v4357_v40 }
0x1a7a   : > { %7324 = vpow2.f32 %v4362_v33 }
0x1a7b   : > { %7326 = vpow2.f32 %v4358_v53 }
0x1a80   : > { %v7323_v34 = vpop.eup %7322 }
0x1a81   : > { %v4367_v39 = vsel %vm1282_vm2, %v7323_v34, 0.0 }
0x1a82   : > { %4368 = vadd.xlane.f32.xlu0 %v4367_v39  ;;  %v7089_v39 = vld [vmem:[%s9416_s11 + $0x10c] ss:$16 sps:$4 sm:$0xff]  }
0x1a84   : > { %v7325_v61 = vpop.eup %7324 }
0x1a85   : > { %v4370_v17 = vsel %vm1289_vm3, %v7325_v61, 0.0  ;;  %v7327_v7 = vpop.eup %7326 }
0x1a86   : > { %4371 = vadd.xlane.f32.xlu1 %v4370_v17  ;;  %v4364_v36 = vsel %vm1282_vm2, %v7327_v7, 0.0  ;;  %v7095_v17 = vld [vmem:[%s9416_s11 + $0x12c] ss:$16 sps:$4 sm:$0xff]  }
0x1a8a   : > { %4365 = vadd.xlane.f32.xlu1 %v4364_v36  ;;  %v7093_v36 = vld [vmem:[%s9416_s11 + $0x128] ss:$16 sps:$4 sm:$0xff]  }
0x1a98   : > { %4381 = vrot.lane.b32.xlu0 %v8771_v2, %s7566_s0 }
0x1a9b   : > { %4383 = vrot.lane.b32.xlu1 %v8767_v51, %s7566_s0 }
0x1b0f   : > { %v4369_v35 = vpop.xlane.xlu0 %4368 }
0x1b10   : > { %7328 = vrcp.f32 %v4369_v35 }
0x1b13   : > { %v4382_v48 = vpop.permute.xlu0 %4381  ;;  %v4372_v23 = vpop.xlane.xlu1 %4371 }
0x1b14   : > { %6780 = vmatprep.subr.bf16.mxu1 %v4382_v48 }
0x1b17   : > { %v4366_v47 = vpop.xlane.xlu1 %4365 }
0x1b18   : > { %7330 = vrcp.f32 %v4366_v47 }
0x1b19   : > { %7332 = vrcp.f32 %v4372_v23 }
0x1b1a   : > { %v7329_v1 = vpop.eup %7328 }
0x1b1b   : > { %v4377_v55 = vmul.f32 %v7329_v1, %v7323_v34  ;;  %v4384_v2 = vpop.permute.xlu1 %4383 }
0x1b1c   : > { %v4393_v27 = vand.u32 %v4384_v2, %v9472_v62  ;;  %v7098_v2 = vld [vmem:[%s9416_s11 + $0x144] ss:$16 sps:$4 sm:$0xff]  }
0x1b20   : > { %v6762_v31 = vpop.f32.mrb[76].mxu1 }
0x1b21   : > { %v4193_v11 = vpop.f32.mrb[77].mxu1  ;;  %v4208_v12 = vpack.c.bf16 %v6762_v31, %v6762_v31 }
0x1b22   : > { %v7331_v4 = vpop.eup %7330  ;;  %v6763_v14 = vpop.f32.mrb[78].mxu1 }
0x1b23   : > { %v4196_v5 = vpop.f32.mrb[79].mxu1  ;;  %v4376_v6 = vmul.f32 %v7331_v4, %v7327_v7  ;;  %v7333_v56 = vpop.eup %7332  ;;  %v7090_v7 = vld [vmem:[%s9416_s11 + $0x120] ss:$16 sps:$4 sm:$0xff]  }
0x1b24   : > { %v4207_v49 = vpack.c.bf16 %v4196_v5, %v4193_v11  ;;  %v4378_v0 = vmul.f32 %v7333_v56, %v7325_v61  ;;  %v7092_v61 = vld [vmem:[%s9416_s11 + $0x124] ss:$16 sps:$4 sm:$0xff]  }
0x1b25   : > { %v4379_v51 = vpack.c.bf16 %v4377_v55, %v4376_v6  ;;  %v7104_v56 = vld [vmem:[%s9416_s11 + $0x164] ss:$16 sps:$4 sm:$0xff]  }
0x1b26   : > { %6768 = vmatprep.mubr.msk.bf16.mxu1 %vm1221_vm1, %v4207_v49  ;;  %v4380_v10 = vpack.c.bf16 %v4378_v0, %v4378_v0  ;;  %v7101_v49 = vld [vmem:[%s9416_s11 + $0x14c] ss:$16 sps:$4 sm:$0xff]   ;;  %v7102_v0 = vld [vmem:[%s9416_s11 + $0x160] ss:$16 sps:$4 sm:$0xff]  }
0x1b27   : > { %6769 = vmatmul.mubr.msk.bf16.vlgmr.msra.gmra.mrb[80].mxu1 %vm1221_vm1, %v4208_v12  ;;  %v7096_v12 = vld [vmem:[%s9416_s11 + $0x140] ss:$16 sps:$4 sm:$0xff]  }
0x1b28   : > { %6781 = vmatpush3.bf16.msra.mxu1 %v4382_v48  ;;  %6784 = vmatprep.mubr.msk.bf16.mxu1 %vm1282_vm2, %v4379_v51  ;;  %v7099_v51 = vld [vmem:[%s9416_s11 + $0x148] ss:$16 sps:$4 sm:$0xff]  }
0x1b29   : > { %6782 = vmatprep.subr.bf16.mxu1 %v4393_v27 }
0x1b2c   : > { %6783 = vmatpush3.bf16.msra.mxu1 %v4393_v27  ;;  %v7107_v27 = vld [vmem:[%s9416_s11 + $0x16c] ss:$16 sps:$4 sm:$0xff]  }
0x1b2d   : > { %6788 = vmatprep.subr.bf16.mxu1 %v7082_v29 }
0x1b2f   : > { %6785 = vmatmul.mubr.msk.bf16.vlgmr.msra.gmra.mrb[84].mxu1 %vm1282_vm2, %v4380_v10  ;;  %v7105_v10 = vld [vmem:[%s9416_s11 + $0x168] ss:$16 sps:$4 sm:$0xff]  }
0x1b30   : > { %6789 = vmatpush3.bf16.msra.mxu1 %v7082_v29  ;;  %v7110_v29 = vld [vmem:[%s9416_s11 + $0x184] ss:$16 sps:$4 sm:$0xff]  }
0x1b31   : > { %6790 = vmatprep.subr.bf16.mxu1 %v7083_v26 }
0x1b34   : > { %6791 = vmatpush3.bf16.msra.mxu1 %v7083_v26  ;;  %v7113_v26 = vld [vmem:[%s9416_s11 + $0x18c] ss:$16 sps:$4 sm:$0xff]  }
0x1b35   : > { %4845 = vmatprep.subr.bf16.mxu1 %v7089_v39 }
0x1bfa   : > { %v6770_v19 = vpop.f32.mrb[80].mxu1 }
0x1bfb   : > { %v4277_v62 = vadd.f32 %v6770_v19, %v8860_v30  ;;  %v4261_v3 = vpop.f32.mrb[81].mxu1  ;;  %v7108_v19 = vld [vmem:[%s9416_s11 + $0x180] ss:$16 sps:$4 sm:$0xff]  }
0x1bfc   : > { %v4275_v16 = vadd.f32 %v4261_v3, %v8863_v54  ;;  %v6771_v42 = vpop.f32.mrb[82].mxu1  ;;  %v7116_v3 = vld [vmem:[%s9416_s11 + $0x1a4] ss:$16 sps:$4 sm:$0xff]  }
0x1bfd   : > { %v4264_v25 = vpop.f32.mrb[83].mxu1  ;;  %v7114_v42 = vld [vmem:[%s9416_s11 + $0x1a0] ss:$16 sps:$4 sm:$0xff]  }
0x1bfe   : > { %v4276_v21 = vadd.f32 %v4264_v25, %v8866_v37  ;;  %v7117_v25 = vld [vmem:[%s9416_s11 + $0x1a8] ss:$16 sps:$4 sm:$0xff]  }
0x1c02   : > { %v6786_v18 = vpop.f32.mrb[84].mxu1 }
0x1c03   : > { %v4429_v59 = vpop.f32.mrb[85].mxu1  ;;  %v4444_v8 = vpack.c.bf16 %v6786_v18, %v6786_v18  ;;  %v7120_v18 = vld [vmem:[%s9416_s11 + $0x1c0] ss:$16 sps:$4 sm:$0xff]  }
0x1c04   : > { %v6787_v52 = vpop.f32.mrb[86].mxu1 }
0x1c05   : > { %v4432_v38 = vpop.f32.mrb[87].mxu1  ;;  %v7125_v52 = vld [vmem:[%s9416_s11 + $0x1cc] ss:$16 sps:$4 sm:$0xff]  }
0x1c06   : > { %v4443_v32 = vpack.c.bf16 %v4432_v38, %v4429_v59  ;;  %v7123_v59 = vld [vmem:[%s9416_s11 + $0x1c8] ss:$16 sps:$4 sm:$0xff]   ;;  %v7128_v38 = vld [vmem:[%s9416_s11 + $0x1e4] ss:$16 sps:$4 sm:$0xff]  }
0x1c08   : > { %6792 = vmatprep.mubr.msk.bf16.mxu1 %vm1221_vm1, %v4443_v32  ;;  %v7131_v32 = vld [vmem:[%s9416_s11 + $0x1ec] ss:$16 sps:$4 sm:$0xff]  }
0x1c09   : > { %6793 = vmatmul.mubr.msk.bf16.vlgmr.msra.gmra.mrb[88].mxu1 %vm1221_vm1, %v4444_v8  ;;  %v7126_v8 = vld [vmem:[%s9416_s11 + $0x1e0] ss:$16 sps:$4 sm:$0xff]  }
0x1c0a   : > { %4877 = vmatprep.mubr.bf16.mxu1 %v9470_v24 }
0x1cdc   : > { %v6794_v30 = vpop.f32.mrb[88].mxu1 }
0x1cdd   : > { %v4513_v63 = vadd.f32 %v6794_v30, %v4277_v62  ;;  %v4497_v15 = vpop.f32.mrb[89].mxu1  ;;  %v7111_v62 = vld [vmem:[%s9416_s11 + $0x188] ss:$16 sps:$4 sm:$0xff]  }
0x1cde   : > { %v4511_v54 = vadd.f32 %v4497_v15, %v4275_v16  ;;  %v6795_v9 = vpop.f32.mrb[90].mxu1  ;;  %v7119_v16 = vld [vmem:[%s9416_s11 + $0x1ac] ss:$16 sps:$4 sm:$0xff]   ;;  %v7129_v30 = vld [vmem:[%s9416_s11 + $0x1e8] ss:$16 sps:$4 sm:$0xff]  }
0x1cdf   : > { %v4500_v60 = vpop.f32.mrb[91].mxu1  ;;  %v4516_v22 = vadd.f32 %v4513_v63, %v8652_v28  ;;  %v7087_v28 = vld [vmem:[%s9416_s11 + $0x108] ss:$16 sps:$4 sm:$0xff]  }
0x1ce0   : > { %v4514_v37 = vadd.f32 %v4511_v54, %v8644_v13  ;;  %v4512_v58 = vadd.f32 %v4500_v60, %v4276_v21  ;;  %v7084_v13 = vld [vmem:[%s9416_s11 + $0x100] ss:$16 sps:$4 sm:$0xff]   ;;  %4846 = vmatpush1.bf16.msra.mxu1 %v7087_v28  ;;  %v7122_v21 = vld [vmem:[%s9416_s11 + $0x1c4] ss:$16 sps:$4 sm:$0xff]  }
0x1ce1   : > { %v8918_v33 = vadd.f32 %v6122_v41, %v4516_v22  ;;  %4847 = vmatprep.subr.bf16.mxu1 %v7095_v17 }
0x1ce2   : > { %v4515_v44 = vadd.f32 %v4512_v58, %v8648_v46  ;;  %v8913_v40 = vadd.f32 %v6122_v41, %v4514_v37  ;;  %v7086_v46 = vld [vmem:[%s9416_s11 + $0x104] ss:$16 sps:$4 sm:$0xff]  }
0x1ce3   : > { %v4531_v34 = vsel %vm874_vm0, %v8918_v33, 0.0  ;;  %4794 = vmatprep.subr.bf16.mxu0 %v7086_v46 }
0x1ce4   : > { %4527 = vadd.xlane.f32.xlu1 %v8913_v40  ;;  %v8916_v53 = vadd.f32 %v6122_v41, %v4515_v44  ;;  %4795 = vmatpush1.bf16.msra.mxu0 %v7084_v13 }
0x1ce5   : > { %4796 = vmatprep.subr.bf16.mxu0 %v7092_v61  ;;  %4848 = vmatpush1.bf16.msra.mxu1 %v7093_v36  ;;  %v6124_v61 = vld [vmem:[%s9415_s10 + $0x1] ss:$0 sm:$0xff] }
0x1ce6   : > { %4529 = vadd.xlane.f32.xlu0 %v8916_v53  ;;  %4849 = vmatprep.subr.bf16.mxu1 %v7101_v49  ;;  %v7141_v49 = vld [vmem:[%s9418_s13 + $0x1d0] sm:$0xff]  }
0x1ce8   : > { %4797 = vmatpush1.bf16.msra.mxu0 %v7090_v7 }
0x1ce9   : > { %4798 = vmatprep.subr.bf16.mxu0 %v7098_v2  ;;  %4850 = vmatpush1.bf16.msra.mxu1 %v7099_v51  ;;  %v7140_v2 = vld [vmem:[%s9418_s13 + $0x150] sm:$0xff]  }
0x1cea   : > { %4532 = vadd.xlane.f32.xlu0 %v4531_v34  ;;  %4851 = vmatprep.subr.bf16.mxu1 %v7107_v27  ;;  %v6123_v34 = vld [vmem:[%s9414_s9 + $0x1] ss:$0 sm:$0xff]  ;;  %v7143_v51 = vld [vmem:[%s9418_s13 + $0x190] sm:$0xff]   ;;  %v7145_v27 = vld [vmem:[%s9418_s13 + $0x1d8] sm:$0xff]  }
0x1cec   : > { %4799 = vmatpush1.bf16.msra.mxu0 %v7096_v12  ;;  %v7142_v12 = vld [vmem:[%s9418_s13 + $0x110] sm:$0xff]  }
0x1ced   : > { %4800 = vmatprep.subr.bf16.mxu0 %v7104_v56  ;;  %4852 = vmatpush1.bf16.msra.mxu1 %v7105_v10  ;;  %v7144_v56 = vld [vmem:[%s9418_s13 + $0x158] sm:$0xff]  }
0x1cee   : > { %4853 = vmatprep.subr.bf16.mxu1 %v7113_v26  ;;  %v7147_v10 = vld [vmem:[%s9418_s13 + $0x198] sm:$0xff]   ;;  %v7149_v26 = vld [vmem:[%s9418_s13 + $0x1e0] sm:$0xff]  }
0x1cf0   : > { %4801 = vmatpush1.bf16.msra.mxu0 %v7102_v0  ;;  %v7146_v0 = vld [vmem:[%s9418_s13 + $0x118] sm:$0xff]  }
0x1cf1   : > { %4802 = vmatprep.subr.bf16.mxu0 %v7110_v29  ;;  %4854 = vmatpush1.bf16.msra.mxu1 %v7111_v62  ;;  %v7148_v29 = vld [vmem:[%s9418_s13 + $0x160] sm:$0xff]  }
0x1cf2   : > { %4855 = vmatprep.subr.bf16.mxu1 %v7119_v16  ;;  %v7151_v62 = vld [vmem:[%s9418_s13 + $0x1a0] sm:$0xff]   ;;  %v7153_v16 = vld [vmem:[%s9418_s13 + $0x1e8] sm:$0xff]  }
0x1cf4   : > { %4803 = vmatpush1.bf16.msra.mxu0 %v7108_v19  ;;  %v7150_v19 = vld [vmem:[%s9418_s13 + $0x120] sm:$0xff]  }
0x1cf5   : > { %4804 = vmatprep.subr.bf16.mxu0 %v7116_v3  ;;  %4856 = vmatpush1.bf16.msra.mxu1 %v7117_v25  ;;  %v7152_v3 = vld [vmem:[%s9418_s13 + $0x168] sm:$0xff]  }
0x1cf6   : > { %4857 = vmatprep.subr.bf16.mxu1 %v7125_v52  ;;  %v7155_v25 = vld [vmem:[%s9418_s13 + $0x1a8] sm:$0xff]   ;;  %v7159_v52 = vld [vmem:[%s9418_s13 + $0x1b0] sm:$0xff]  }
0x1cf8   : > { %4805 = vmatpush1.bf16.msra.mxu0 %v7114_v42  ;;  %v7154_v42 = vld [vmem:[%s9418_s13 + $0x128] sm:$0xff]  }
0x1cf9   : > { %4806 = vmatprep.subr.bf16.mxu0 %v7122_v21  ;;  %4858 = vmatpush1.bf16.msra.mxu1 %v7123_v59  ;;  %v7156_v21 = vld [vmem:[%s9418_s13 + $0x170] sm:$0xff]  }
0x1cfa   : > { %4859 = vmatprep.subr.bf16.mxu1 %v7131_v32  ;;  %v7158_v59 = vld [vmem:[%s9418_s13 + $0x130] sm:$0xff]   ;;  %v7161_v32 = vld [vmem:[%s9418_s13 + $0x1f8] sm:$0xff]  }
0x1cfc   : > { %4807 = vmatpush1.bf16.msra.mxu0 %v7120_v18  ;;  %v7157_v18 = vld [vmem:[%s9418_s13 + $0x1f0] sm:$0xff]  }
0x1cfd   : > { %4808 = vmatprep.subr.bf16.mxu0 %v7128_v38  ;;  %4860 = vmatpush1.bf16.msra.mxu1 %v7129_v30  ;;  %v7160_v38 = vld [vmem:[%s9418_s13 + $0x178] sm:$0xff]  }
0x1cfe   : > { %v7163_v30 = vld [vmem:[%s9418_s13 + $0x1b8] sm:$0xff]  }
0x1d00   : > { %4809 = vmatpush1.bf16.msra.mxu0 %v7126_v8  ;;  %v7162_v8 = vld [vmem:[%s9418_s13 + $0x138] sm:$0xff]  }
0x1d71   : > { %v4528_v57 = vpop.xlane.xlu1 %4527 }
0x1d72   : > { %v4534_v35 = vmul.f32 0.0078125, %v4528_v57 }
0x1d73   : > { %v4530_v48 = vpop.xlane.xlu0 %4529 }
0x1d74   : > { %v8948_v23 = vsub.f32 %v8913_v40, %v4534_v35  ;;  %v4535_v47 = vmul.f32 0.0078125, %v4530_v48 }
0x1d76   : > { %v8951_v1 = vsub.f32 %v8916_v53, %v4535_v47  ;;  %v4540_v31 = vmul.f32 %v8948_v23, %v8948_v23 }
0x1d77   : > { %v4533_v11 = vpop.xlane.xlu0 %4532 }
0x1d78   : > { %v4536_v4 = vmul.f32 0.0078125, %v4533_v11  ;;  %4543 = vadd.xlane.f32.xlu1 %v4540_v31  ;;  %v4541_v14 = vmul.f32 %v8951_v1, %v8951_v1  ;;  %v7132_v31 = vld [vmem:[%s9418_s13 + $0x140] sm:$0xff]  }
0x1d79   : > { %v7133_v11 = vld [vmem:[%s9418_s13 + $0x1c0] sm:$0xff]   ;;  %6499 = vmatprep.subr.bf16.mxu0 %v7132_v31 }
0x1d7a   : > { %v8958_v5 = vsub.f32 %v8918_v33, %v4536_v4  ;;  %4545 = vadd.xlane.f32.xlu0 %v4541_v14  ;;  %v7134_v4 = vld [vmem:[%s9418_s13 + $0x100] sm:$0xff]   ;;  %6527 = vmatprep.subr.bf16.mxu1 %v7133_v11  ;;  %v7136_v14 = vld [vmem:[%s9418_s13 + $0x148] sm:$0xff]  }
0x1d7c   : > { %v4542_v6 = vmul.f32 %v8958_v5, %v8958_v5 }
0x1d7e   : > { %v4547_v55 = vsel %vm874_vm0, %v4542_v6, 0.0  ;;  %v7138_v6 = vld [vmem:[%s9418_s13 + $0x108] sm:$0xff]  }
0x1d7f   : > { %4548 = vadd.xlane.f32.xlu1 %v4547_v55  ;;  %v7139_v55 = vld [vmem:[%s9418_s13 + $0x188] sm:$0xff]  }
0x1e05   : > { %v4544_v63 = vpop.xlane.xlu1 %4543 }
0x1e06   : > { %v4550_v15 = vmul.f32 0.0078125, %v4544_v63  ;;  %v6157_v63 = vld [vmem:[%s9417_s12 + $0x1] ss:$2 sm:$0xf] }
0x1e07   : > { %v4546_v54 = vpop.xlane.xlu0 %4545 }
0x1e08   : > { %v4553_v9 = vadd.f32 1e-06, %v4550_v15  ;;  %v4551_v41 = vmul.f32 0.0078125, %v4546_v54  ;;  %v9146_v15 = vrot.slane %v6157_v63, %v7995_v43  ;;  %v9149_v54 = vrot.slane %v6157_v63, %v9471_v50 }
0x1e0a   : > { %7334 = vrsqrt.f32 %v4553_v9  ;;  %v4554_v60 = vadd.f32 1e-06, %v4551_v41  ;;  %v9152_v9 = vrot.slane %v6157_v63, %v7998_v45  ;;  %v9473_v41 = vld [vmem:[#allocation14_spill] sm:$0xff] }
0x1e0c   : > { %7336 = vrsqrt.f32 %v4554_v60  ;;  %v4549_v37 = vpop.xlane.xlu1 %4548  ;;  %v9474_v60 = vsub.s32 3, %v9473_v41 }
0x1e0d   : > { %v4552_v58 = vmul.f32 0.0078125, %v4549_v37 }
0x1e0e   : > { %v9156_v37 = vrot.slane %v6157_v63, %v9474_v60 }
0x1e0f   : > { %v4555_v22 = vadd.f32 1e-06, %v4552_v58 }
0x1e11   : > { %7338 = vrsqrt.f32 %v4555_v22 }
0x1e14   : > { %v7335_v44 = vpop.eup %7334 }
0x1e15   : > { %v4559_v13 = vmul.f32 %v7335_v44, %v8948_v23 }
0x1e16   : > { %v7337_v46 = vpop.eup %7336 }
0x1e17   : > { %v4560_v28 = vmul.f32 %v7337_v46, %v8951_v1  ;;  %v4566_v39 = vmul.f32 %v6123_v34, %v4559_v13 }
0x1e19   : > { %v4567_v17 = vmul.f32 %v6123_v34, %v4560_v28  ;;  %v4573_v36 = vadd.f32 %v6124_v61, %v4566_v39 }
0x1e1b   : > { %v7339_v7 = vpop.eup %7338  ;;  %v4574_v57 = vadd.f32 %v6124_v61, %v4567_v17 }
0x1e1c   : > { %v4561_v35 = vmul.f32 %v7339_v7, %v8958_v5  ;;  %v7137_v5 = vld [vmem:[%s9418_s13 + $0x1c8] sm:$0xff]  }
0x1e1d   : > { %v4576_v48 = vpack.c.bf16 %v4574_v57, %v4573_v36 }
0x1e1e   : > { %v4568_v47 = vmul.f32 %v6123_v34, %v4561_v35 }
0x1e1f   : > { %4827 = vmatmul.mubr.bf16.vlgmr.msra.gmra.mrb[68].mxu0 %v4576_v48  ;;  %4878 = vmatmul.mubr.bf16.vlgmr.msra.gmra.mrb[92].mxu1 %v4576_v48 }
0x1e20   : > { %4836 = vmatprep.mubr.bf16.mxu0 %v9470_v24  ;;  %4887 = vmatprep.mubr.bf16.mxu1 %v9470_v24  ;;  %v4575_v23 = vadd.f32 %v6124_v61, %v4568_v47  ;;  %v7135_v24 = vld [vmem:[%s9418_s13 + $0x180] sm:$0xff]  }
0x1e21   : > { %6500 = vmatpush3.bf16.msra.mxu0 %v7134_v4  ;;  %6528 = vmatpush3.bf16.msra.mxu1 %v7135_v24 }
0x1e22   : > { %v4577_v1 = vpack.c.bf16 %v4575_v23, %v4575_v23  ;;  %6501 = vmatprep.subr.bf16.mxu0 %v7136_v14  ;;  %6529 = vmatprep.subr.bf16.mxu1 %v7137_v5 }
0x1e25   : > { %6502 = vmatpush3.bf16.msra.mxu0 %v7138_v6  ;;  %6530 = vmatpush3.bf16.msra.mxu1 %v7139_v55 }
0x1e26   : > { %6503 = vmatprep.subr.bf16.mxu0 %v7140_v2  ;;  %6531 = vmatprep.subr.bf16.mxu1 %v7141_v49 }
0x1e27   : > { %4837 = vmatmul.mubr.bf16.gmra.mrb[72].mxu0 %v4577_v1  ;;  %4888 = vmatmul.mubr.bf16.gmra.mrb[96].mxu1 %v4577_v1 }
0x1e29   : > { %6504 = vmatpush3.bf16.msra.mxu0 %v7142_v12  ;;  %6532 = vmatpush3.bf16.msra.mxu1 %v7143_v51 }
0x1e2a   : > { %6505 = vmatprep.subr.bf16.mxu0 %v7144_v56  ;;  %6533 = vmatprep.subr.bf16.mxu1 %v7145_v27 }
0x1e2d   : > { %6506 = vmatpush3.bf16.msra.mxu0 %v7146_v0  ;;  %6534 = vmatpush3.bf16.msra.mxu1 %v7147_v10 }
0x1e2e   : > { %6507 = vmatprep.subr.bf16.mxu0 %v7148_v29  ;;  %6535 = vmatprep.subr.bf16.mxu1 %v7149_v26 }
0x1e31   : > { %6508 = vmatpush3.bf16.msra.mxu0 %v7150_v19  ;;  %6536 = vmatpush3.bf16.msra.mxu1 %v7151_v62 }
0x1e32   : > { %6509 = vmatprep.subr.bf16.mxu0 %v7152_v3  ;;  %6537 = vmatprep.subr.bf16.mxu1 %v7153_v16 }
0x1e35   : > { %6510 = vmatpush3.bf16.msra.mxu0 %v7154_v42  ;;  %6538 = vmatpush3.bf16.msra.mxu1 %v7155_v25 }
0x1e36   : > { %6511 = vmatprep.subr.bf16.mxu0 %v7156_v21  ;;  %6539 = vmatprep.subr.bf16.mxu1 %v7157_v18 }
0x1e39   : > { %6512 = vmatpush3.bf16.msra.mxu0 %v7158_v59  ;;  %6540 = vmatpush3.bf16.msra.mxu1 %v7159_v52 }
0x1e3a   : > { %6513 = vmatprep.subr.bf16.mxu0 %v7160_v38  ;;  %6541 = vmatprep.subr.bf16.mxu1 %v7161_v32 }
0x1e3d   : > { %6514 = vmatpush3.bf16.msra.mxu0 %v7162_v8  ;;  %6542 = vmatpush3.bf16.msra.mxu1 %v7163_v30 }
0x1ef2   : > { %v4828_v58 = vpop.f32.mrb[68].mxu0  ;;  %v4879_v22 = vpop.f32.mrb[92].mxu1 }
0x1ef3   : > { %v4829_v44 = vadd.f32 %v4828_v58, %v9146_v15  ;;  %v4880_v34 = vadd.f32 %v4879_v22, %v9149_v54  ;;  %v4830_v13 = vpop.f32.mrb[69].mxu0  ;;  %v4881_v46 = vpop.f32.mrb[93].mxu1 }
0x1ef4   : > { %v4831_v43 = vadd.f32 %v4830_v13, %v9152_v9  ;;  %v9162_v50 = vadd.f32 %v4881_v46, %v9156_v37  ;;  %v4832_v28 = vpop.f32.mrb[70].mxu0  ;;  %v4883_v45 = vpop.f32.mrb[94].mxu1 }
0x1ef5   : > { %v4908_v39 = vmul.f32 0.70710677, %v4829_v44  ;;  %v4910_v61 = vmul.f32 0.70710677, %v4880_v34  ;;  %v4834_v48 = vpop.f32.mrb[71].mxu0  ;;  %v4885_v11 = vpop.f32.mrb[95].mxu1  ;;  %v4833_v51 = vadd.f32 %v4832_v28, %v9146_v15  ;;  %v4884_v19 = vadd.f32 %v4883_v45, %v9149_v54 }
0x1ef6   : > { %v4909_v17 = vmul.f32 0.70710677, %v4831_v43  ;;  %v4911_v35 = vmul.f32 0.70710677, %v9162_v50  ;;  %v9180_v3 = vmul.f32 0.5, %v4829_v44  ;;  %v9183_v42 = vadd.f32 %v4834_v48, %v9152_v9 }
0x1ef7   : > { %v4944_v7 = vand.u32 2147483647, %v4908_v39  ;;  %v4946_v36 = vand.u32 2147483647, %v4910_v61  ;;  %v9177_v26 = vmul.f32 0.70710677, %v4833_v51  ;;  %v9200_v44 = vadd.f32 %v4885_v11, %v9156_v37 }
0x1ef8   : > { %v4945_v57 = vand.u32 2147483647, %v4909_v17  ;;  %v9169_v6 = vand.u32 2147483647, %v4911_v35  ;;  %vm4920_vm1 = vcmp.ge.f32.partialorder %v4908_v39, 0.0  ;;  %v9186_v52 = vmul.f32 0.5, %v4880_v34 }
0x1ef9   : > { %v4956_v47 = vmul.f32 0.3275911, %v4944_v7  ;;  %v4958_v23 = vmul.f32 0.3275911, %v4946_v36  ;;  %v5112_v1 = vsub.f32 0.0, %v4944_v7  ;;  %v5114_v49 = vsub.f32 0.0, %v4946_v36 }
0x1efa   : > { %v4957_v31 = vmul.f32 0.3275911, %v4945_v57  ;;  %v9165_v14 = vpop.f32.mrb[72].mxu0  ;;  %v9167_v5 = vpop.f32.mrb[96].mxu1  ;;  %v4959_v10 = vmul.f32 0.3275911, %v9169_v6 }
0x1efb   : > { %v4968_v4 = vadd.f32 1.0, %v4956_v47  ;;  %v4970_v24 = vadd.f32 1.0, %v4958_v23  ;;  %v9171_v55 = vpop.f32.mrb[73].mxu0  ;;  %v9173_v2 = vpop.f32.mrb[97].mxu1  ;;  %v5124_v0 = vmul.f32 %v5112_v1, %v4944_v7  ;;  %v5126_v25 = vmul.f32 %v5114_v49, %v4946_v36 }
0x1efc   : > { %v4969_v12 = vadd.f32 1.0, %v4957_v31  ;;  %v4842_v56 = vpop.f32.mrb[74].mxu0  ;;  %v4893_v27 = vpop.f32.mrb[98].mxu1  ;;  %v4971_v16 = vadd.f32 1.0, %v4959_v10  ;;  %v5113_v21 = vsub.f32 0.0, %v4945_v57  ;;  %v9188_v38 = vmul.f32 0.5, %v4831_v43 }
0x1efd   : > { %7340 = vrcp.f32 %v4968_v4  ;;  %v4843_v29 = vpop.f32.mrb[75].mxu0  ;;  %v4894_v62 = vpop.f32.mrb[99].mxu1  ;;  %v4948_v18 = vand.u32 2147483647, %v9177_v26  ;;  %v5136_v59 = vmul.f32 1.442695, %v5124_v0 }
0x1efe   : > { %7342 = vrcp.f32 %v4970_v24  ;;  %v9190_v32 = vmul.f32 0.70710677, %v4884_v19  ;;  %v9193_v8 = vsel %vm4920_vm1, 1.0, %v9469_v20  ;;  %vm4922_vm2 = vcmp.ge.f32.partialorder %v4910_v61, 0.0 }
0x1eff   : > { %7344 = vrcp.f32 %v4969_v12  ;;  %v4960_v30 = vmul.f32 0.3275911, %v4948_v18  ;;  %vm4921_vm3 = vcmp.ge.f32.partialorder %v4909_v17, 0.0  ;;  %vm4923_vm4 = vcmp.ge.f32.partialorder %v4911_v35, 0.0 }
0x1f00   : > { %7346 = vrcp.f32 %v4971_v16  ;;  %v4950_v63 = vand.u32 2147483647, %v9190_v32  ;;  %v9197_v41 = vmul.f32 0.70710677, %v9183_v42  ;;  %v5140_v60 = vmul.f32 1.442695, %v5126_v25 }
0x1f01   : > { %v5125_v58 = vmul.f32 %v5113_v21, %v4945_v57  ;;  %v4972_v22 = vadd.f32 1.0, %v4960_v30  ;;  %7348 = vpow2.f32 %v5136_v59  ;;  %v9203_v34 = vsel %vm4922_vm2, 1.0, %v9469_v20 }
0x1f02   : > { %v4962_v13 = vmul.f32 0.3275911, %v4950_v63  ;;  %v9206_v46 = vand.u32 2147483647, %v9197_v41  ;;  %v9211_v28 = vsel %vm4921_vm3, 1.0, %v9469_v20  ;;  %v9214_v45 = vsel %vm4923_vm4, 1.0, %v9469_v20 }
0x1f03   : > { %v5115_v39 = vsub.f32 0.0, %v9169_v6  ;;  %7350 = vrcp.f32 %v4972_v22  ;;  %v5116_v7 = vsub.f32 0.0, %v4948_v18  ;;  %v5138_v48 = vmul.f32 1.442695, %v5125_v58 }
0x1f04   : > { %v4974_v36 = vadd.f32 1.0, %v4962_v13  ;;  %v4961_v57 = vmul.f32 0.3275911, %v9206_v46  ;;  %7352 = vpow2.f32 %v5140_v60  ;;  %v9223_v47 = vmul.f32 0.70710677, %v9200_v44 }
0x1f05   : > { %v9225_v1 = vmul.f32 0.5, %v4833_v51  ;;  %v5127_v24 = vmul.f32 %v5115_v39, %v9169_v6  ;;  %vm4924_vm5 = vcmp.ge.f32.partialorder %v9177_v26, 0.0  ;;  %v5128_v27 = vmul.f32 %v5116_v7, %v4948_v18 }
0x1f06   : > { %7354 = vrcp.f32 %v4974_v36  ;;  %v4973_v31 = vadd.f32 1.0, %v4961_v57  ;;  %v9232_v49 = vand.u32 2147483647, %v9223_v47  ;;  %v9236_v0 = vmul.f32 0.5, %v4884_v19 }
0x1f07   : > { %v9208_v43 = vpop.eup %7340  ;;  %v5118_v29 = vsub.f32 0.0, %v4950_v63  ;;  %v5142_v59 = vmul.f32 1.442695, %v5127_v24  ;;  %v9245_v19 = vadd.f32 %v9165_v14, %v9146_v15  ;;  %v9252_v13 = vsel %vm4924_vm5, 1.0, %v9469_v20 }
0x1f08   : > { %v9217_v61 = vpop.eup %7342  ;;  %v5004_v17 = vmul.f32 1.0614054, %v9208_v43  ;;  %7356 = vrcp.f32 %v4973_v31  ;;  %v4963_v6 = vmul.f32 0.3275911, %v9232_v49  ;;  %v5144_v7 = vmul.f32 1.442695, %v5128_v27 }
0x1f09   : > { %v5006_v35 = vmul.f32 1.0614054, %v9217_v61  ;;  %v9227_v11 = vpop.eup %7344  ;;  %7358 = vpow2.f32 %v5138_v48  ;;  %v5130_v36 = vmul.f32 %v5118_v29, %v4950_v63  ;;  %v9260_v31 = vmul.f32 0.5, %v9183_v42 }
0x1f0a   : > { %v5016_v23 = vadd.f32 -1.4531521, %v5004_v17  ;;  %v5005_v56 = vmul.f32 1.0614054, %v9227_v11  ;;  %v9238_v51 = vpop.eup %7346  ;;  %v4975_v30 = vadd.f32 1.0, %v4963_v6  ;;  %v5117_v26 = vsub.f32 0.0, %v9206_v46 }
0x1f0b   : > { %v5018_v4 = vadd.f32 -1.4531521, %v5006_v35  ;;  %v5007_v25 = vmul.f32 1.0614054, %v9238_v51  ;;  %v7349_v18 = vpop.eup %7348  ;;  %v5148_v6 = vmul.f32 1.442695, %v5130_v36 }
0x1f0c   : > { %v5028_v12 = vmul.f32 %v9208_v43, %v5016_v23  ;;  %v5017_v16 = vadd.f32 -1.4531521, %v5005_v56  ;;  %7360 = vrcp.f32 %v4975_v30  ;;  %v5119_v42 = vsub.f32 0.0, %v9232_v49 }
0x1f0d   : > { %v5030_v10 = vmul.f32 %v9217_v61, %v5018_v4  ;;  %v5019_v22 = vadd.f32 -1.4531521, %v5007_v25  ;;  %v9254_v39 = vpop.eup %7350  ;;  %v9264_v4 = vmul.f32 0.70710677, %v9245_v19  ;;  %7362 = vpow2.f32 %v5144_v7 }
0x1f0e   : > { %v5040_v62 = vadd.f32 1.4214138, %v5028_v12  ;;  %v5029_v58 = vmul.f32 %v9227_v11, %v5017_v16  ;;  %v5008_v35 = vmul.f32 1.0614054, %v9254_v39  ;;  %v7353_v48 = vpop.eup %7352  ;;  %7364 = vpow2.f32 %v5142_v59 }
0x1f0f   : > { %v5042_v21 = vadd.f32 1.4214138, %v5030_v10  ;;  %v5031_v57 = vmul.f32 %v9238_v51, %v5019_v22  ;;  %v5129_v22 = vmul.f32 %v5117_v26, %v9206_v46  ;;  %7366 = vpow2.f32 %v5148_v6 }
0x1f10   : > { %v5052_v60 = vmul.f32 %v9208_v43, %v5040_v62  ;;  %v5041_v14 = vadd.f32 1.4214138, %v5029_v58  ;;  %v9266_v24 = vpop.eup %7354  ;;  %v5020_v27 = vadd.f32 -1.4531521, %v5008_v35  ;;  %vm4926_vm6 = vcmp.ge.f32.partialorder %v9190_v32, 0.0 }
0x1f11   : > { %v5054_v17 = vmul.f32 %v9217_v61, %v5042_v21  ;;  %v5043_v56 = vadd.f32 1.4214138, %v5031_v57  ;;  %v5010_v29 = vmul.f32 1.0614054, %v9266_v24  ;;  %vm4925_vm7 = vcmp.ge.f32.partialorder %v9197_v41, 0.0 }
0x1f12   : > { %v5064_v15 = vadd.f32 -0.28449672, %v5052_v60  ;;  %v5053_v12 = vmul.f32 %v9227_v11, %v5041_v14  ;;  %v5032_v21 = vmul.f32 %v9254_v39, %v5020_v27  ;;  %v9275_v30 = vpop.eup %7356  ;;  %vm4927_vm8 = vcmp.ge.f32.partialorder %v9223_v47, 0.0 }
0x1f13   : > { %v5066_v23 = vadd.f32 -0.28449672, %v5054_v17  ;;  %v5055_v25 = vmul.f32 %v9238_v51, %v5043_v56  ;;  %v5022_v58 = vadd.f32 -1.4531521, %v5010_v29  ;;  %v9279_v17 = vand.u32 2147483647, %v9264_v4 }
0x1f14   : > { %v5076_v63 = vmul.f32 %v9208_v43, %v5064_v15  ;;  %v5065_v16 = vadd.f32 -0.28449672, %v5053_v12  ;;  %v7359_v15 = vpop.eup %7358  ;;  %v5044_v35 = vadd.f32 1.4214138, %v5032_v21  ;;  %v5131_v12 = vmul.f32 %v5119_v42, %v9232_v49 }
0x1f15   : > { %v5078_v10 = vmul.f32 %v9217_v61, %v5066_v23  ;;  %v5067_v57 = vadd.f32 -0.28449672, %v5055_v25  ;;  %v5034_v23 = vmul.f32 %v9266_v24, %v5022_v58  ;;  %v4964_v25 = vmul.f32 0.3275911, %v9279_v17 }
0x1f16   : > { %v5088_v62 = vadd.f32 0.2548296, %v5076_v63  ;;  %v5077_v14 = vmul.f32 %v9227_v11, %v5065_v16  ;;  %v5009_v63 = vmul.f32 1.0614054, %v9275_v30  ;;  %v5056_v27 = vmul.f32 %v9254_v39, %v5044_v35 }
0x1f17   : > { %v5090_v60 = vadd.f32 0.2548296, %v5078_v10  ;;  %v5079_v26 = vmul.f32 %v9238_v51, %v5067_v57  ;;  %v9289_v10 = vpop.eup %7360  ;;  %v5150_v42 = vmul.f32 1.442695, %v5131_v12  ;;  %v4976_v35 = vadd.f32 1.0, %v4964_v25 }
0x1f18   : > { %v5100_v36 = vmul.f32 %v9208_v43, %v5088_v62  ;;  %v5046_v43 = vadd.f32 1.4214138, %v5034_v23  ;;  %v5021_v29 = vadd.f32 -1.4531521, %v5009_v63  ;;  %v5146_v62 = vmul.f32 1.442695, %v5129_v22 }
0x1f19   : > { %v5102_v46 = vmul.f32 %v9217_v61, %v5090_v60  ;;  %v5089_v7 = vadd.f32 0.2548296, %v5077_v14  ;;  %v5068_v16 = vadd.f32 -0.28449672, %v5056_v27  ;;  %v5011_v61 = vmul.f32 1.0614054, %v9289_v10 }
0x1f1a   : > { %v5160_v56 = vmul.f32 %v7349_v18, %v5100_v36  ;;  %v5058_v49 = vmul.f32 %v9266_v24, %v5046_v43  ;;  %v5033_v18 = vmul.f32 %v9275_v30, %v5021_v29  ;;  %v5091_v58 = vadd.f32 0.2548296, %v5079_v26  ;;  %v7363_v26 = vpop.eup %7362 }
0x1f1b   : > { %v5162_v60 = vmul.f32 %v7353_v48, %v5102_v46  ;;  %v5080_v59 = vmul.f32 %v9254_v39, %v5068_v16  ;;  %v5023_v22 = vadd.f32 -1.4531521, %v5011_v61  ;;  %v5101_v14 = vmul.f32 %v9227_v11, %v5089_v7  ;;  %v7365_v25 = vpop.eup %7364 }
0x1f1c   : > { %v5172_v21 = vsub.f32 1.0, %v5160_v56  ;;  %v5070_v36 = vadd.f32 -0.28449672, %v5058_v49  ;;  %v5045_v57 = vadd.f32 1.4214138, %v5033_v18  ;;  %7368 = vpow2.f32 %v5146_v62  ;;  %v7367_v18 = vpop.eup %7366 }
0x1f1d   : > { %v5092_v6 = vadd.f32 0.2548296, %v5080_v59  ;;  %v5035_v12 = vmul.f32 %v9289_v10, %v5023_v22  ;;  %v5174_v48 = vsub.f32 1.0, %v5162_v60  ;;  %v5103_v56 = vmul.f32 %v9238_v51, %v5091_v58 }
0x1f1e   : > { %v5082_v23 = vmul.f32 %v9266_v24, %v5070_v36  ;;  %v5057_v63 = vmul.f32 %v9275_v30, %v5045_v57  ;;  %7370 = vpow2.f32 %v5150_v42  ;;  %v5184_v11 = vmul.f32 %v5172_v21, %v9193_v8 }
0x1f1f   : > { %v5104_v46 = vmul.f32 %v9254_v39, %v5092_v6  ;;  %v5047_v29 = vadd.f32 1.4214138, %v5035_v12  ;;  %v5161_v62 = vmul.f32 %v7359_v15, %v5101_v14  ;;  %7372 = vrcp.f32 %v4976_v35 }
0x1f20   : > { %v5094_v27 = vadd.f32 0.2548296, %v5082_v23  ;;  %v5069_v43 = vadd.f32 -0.28449672, %v5057_v63  ;;  %v9306_v16 = vadd.f32 %v9167_v5, %v9149_v54  ;;  %v4938_v51 = vsel %vm4926_vm6, 1.0, %v9469_v20 }
0x1f21   : > { %v5164_v7 = vmul.f32 %v7363_v26, %v5104_v46  ;;  %v5059_v8 = vmul.f32 %v9289_v10, %v5047_v29  ;;  %v5186_v15 = vmul.f32 %v5174_v48, %v9203_v34  ;;  %v5163_v61 = vmul.f32 %v7365_v25, %v5103_v56 }
0x1f22   : > { %v5106_v39 = vmul.f32 %v9266_v24, %v5094_v27  ;;  %v5081_v49 = vmul.f32 %v9275_v30, %v5069_v43  ;;  %v5196_v54 = vadd.f32 1.0, %v5184_v11  ;;  %v5173_v58 = vsub.f32 1.0, %v5161_v62 }
0x1f23   : > { %v5176_v42 = vsub.f32 1.0, %v5164_v7  ;;  %v5071_v60 = vadd.f32 -0.28449672, %v5059_v8  ;;  %v9318_v24 = vmul.f32 0.70710677, %v9306_v16  ;;  %v9322_v59 = vadd.f32 %v9171_v55, %v9152_v9 }
0x1f24   : > { %v5166_v5 = vmul.f32 %v7367_v18, %v5106_v39  ;;  %v5093_v21 = vadd.f32 0.2548296, %v5081_v49  ;;  %v4937_v34 = vsel %vm4925_vm7, 1.0, %v9469_v20  ;;  %v5198_v14 = vadd.f32 1.0, %v5186_v15 }
0x1f25   : > { %v5188_v32 = vmul.f32 %v5176_v42, %v9252_v13  ;;  %v5083_v41 = vmul.f32 %v9289_v10, %v5071_v60  ;;  %v5175_v6 = vsub.f32 1.0, %v5163_v61  ;;  %v9328_v13 = vand.u32 2147483647, %v9318_v24 }
0x1f26   : > { %v5178_v36 = vsub.f32 1.0, %v5166_v5  ;;  %v5105_v57 = vmul.f32 %v9275_v30, %v5093_v21  ;;  %v7369_v22 = vpop.eup %7368  ;;  %v5208_v23 = vmul.f32 %v5196_v54, %v9180_v3  ;;  %v5185_v48 = vmul.f32 %v5173_v58, %v9211_v28 }
0x1f27   : > { %v5200_v35 = vadd.f32 1.0, %v5188_v32  ;;  %v5095_v9 = vadd.f32 0.2548296, %v5083_v41  ;;  %v4966_v30 = vmul.f32 0.3275911, %v9328_v13  ;;  %v5210_v43 = vmul.f32 %v5198_v14, %v9186_v52 }
0x1f28   : > { %v5190_v63 = vmul.f32 %v5178_v36, %v4938_v51  ;;  %v5165_v12 = vmul.f32 %v7369_v22, %v5105_v57  ;;  %v7371_v55 = vpop.eup %7370  ;;  %v9335_v46 = vmul.f32 0.70710677, %v9322_v59  ;;  %v5187_v29 = vmul.f32 %v5175_v6, %v9214_v45 }
0x1f29   : > { %v5212_v56 = vmul.f32 %v5200_v35, %v9225_v1  ;;  %v5107_v27 = vmul.f32 %v9289_v10, %v5095_v9  ;;  %v9339_v3 = vpop.eup %7372  ;;  %v4978_v62 = vadd.f32 1.0, %v4966_v30  ;;  %v5197_v39 = vadd.f32 1.0, %v5185_v48 }
0x1f2a   : > { %v5202_v26 = vadd.f32 1.0, %v5190_v63  ;;  %v5177_v11 = vsub.f32 1.0, %v5165_v12  ;;  %v5012_v51 = vmul.f32 1.0614054, %v9339_v3  ;;  %v4953_v49 = vand.u32 2147483647, %v9335_v46 }
0x1f2b   : > { %v5220_v28 = vpack.c.bf16 %v5212_v56, %v5208_v23  ;;  %v5167_v25 = vmul.f32 %v7371_v55, %v5107_v27  ;;  %7374 = vrcp.f32 %v4978_v62  ;;  %v9348_v10 = vadd.f32 %v9173_v2, %v9156_v37 }
0x1f2c   : > { %v5214_v1 = vmul.f32 %v5202_v26, %v9236_v0  ;;  %v5189_v7 = vmul.f32 %v5177_v11, %v4937_v34  ;;  %v5024_v45 = vadd.f32 -1.4531521, %v5012_v51  ;;  %v5199_v15 = vadd.f32 1.0, %v5187_v29 }
0x1f2d   : > { %v5179_v18 = vsub.f32 1.0, %v5167_v25  ;;  %v4939_v0 = vsel %vm4927_vm8, 1.0, %v9469_v20  ;;  %v5120_v61 = vsub.f32 0.0, %v9279_v17  ;;  %v4965_v42 = vmul.f32 0.3275911, %v4953_v49 }
0x1f2e   : > { %v5222_v8 = vpack.c.bf16 %v5214_v1, %v5210_v43  ;;  %v5201_v52 = vadd.f32 1.0, %v5189_v7  ;;  %v5036_v21 = vmul.f32 %v9339_v3, %v5024_v45  ;;  %v9357_v37 = vmul.f32 0.70710677, %v9348_v10 }
0x1f2f   : > { %v5191_v5 = vmul.f32 %v5179_v18, %v4939_v0  ;;  %v5209_v2 = vmul.f32 %v5197_v39, %v9188_v38  ;;  %v4899_v60 = vmul.f32 0.5, %v9162_v50  ;;  %v4977_v58 = vadd.f32 1.0, %v4965_v42 }
0x1f30   : > { %v5213_v54 = vmul.f32 %v5201_v52, %v9260_v31  ;;  %v4903_v32 = vmul.f32 0.5, %v9200_v44  ;;  %v5048_v36 = vadd.f32 1.4214138, %v5036_v21  ;;  %v4955_v34 = vand.u32 2147483647, %v9357_v37 }
0x1f31   : > { %v5203_v47 = vadd.f32 1.0, %v5191_v5  ;;  %v5132_v57 = vmul.f32 %v5120_v61, %v9279_v17  ;;  %7376 = vrcp.f32 %v4977_v58  ;;  %v5211_v41 = vmul.f32 %v5199_v15, %v4899_v60 }
0x1f32   : > { %v5221_v31 = vpack.c.bf16 %v5213_v54, %v5209_v2  ;;  %v5060_v14 = vmul.f32 %v9339_v3, %v5048_v36  ;;  %v4967_v6 = vmul.f32 0.3275911, %v4955_v34  ;;  %v5122_v38 = vsub.f32 0.0, %v9328_v13 }
0x1f33   : > { %v5215_v22 = vmul.f32 %v5203_v47, %v4903_v32  ;;  %v5152_v63 = vmul.f32 1.442695, %v5132_v57  ;;  %v5121_v9 = vsub.f32 0.0, %v4953_v49  ;;  %v5123_v29 = vsub.f32 0.0, %v4955_v34 }
0x1f34   : > { %5522 = vmatprep.mubr.bf16.mxu0 %v5221_v31  ;;  %v4979_v50 = vadd.f32 1.0, %v4967_v6  ;;  %v5072_v23 = vadd.f32 -0.28449672, %v5060_v14  ;;  %v5134_v17 = vmul.f32 %v5122_v38, %v9328_v13  ;;  %vm4928_vm9 = vcmp.ge.f32.partialorder %v9264_v4, 0.0 }
0x1f35   : > { %v5223_v35 = vpack.c.bf16 %v5215_v22, %v5211_v41  ;;  %5523 = vmatmul.mubr.bf16.vlgmr.msra.gmra.mrb[76].mxu0 %v5220_v28  ;;  %v7375_v44 = vpop.eup %7374  ;;  %v5133_v11 = vmul.f32 %v5121_v9, %v4953_v49  ;;  %v5135_v39 = vmul.f32 %v5123_v29, %v4955_v34  ;;  %v4940_v31 = vsel %vm4928_vm9, 1.0, %v9469_v20 }
0x1f36   : > { %v5014_v12 = vmul.f32 1.0614054, %v7375_v44  ;;  %7378 = vrcp.f32 %v4979_v50  ;;  %v5084_v48 = vmul.f32 %v9339_v3, %v5072_v23  ;;  %v5156_v26 = vmul.f32 1.442695, %v5134_v17 }
0x1f37   : > { %5570 = vmatprep.mubr.bf16.mxu1 %v5223_v35  ;;  %7380 = vpow2.f32 %v5152_v63  ;;  %v5154_v7 = vmul.f32 1.442695, %v5133_v11  ;;  %v5158_v42 = vmul.f32 1.442695, %v5135_v39  ;;  %vm4930_vm10 = vcmp.ge.f32.partialorder %v9318_v24, 0.0 }
0x1f38   : > { %5571 = vmatmul.mubr.bf16.vlgmr.msra.gmra.mrb[100].mxu1 %v5222_v8  ;;  %v5026_v55 = vadd.f32 -1.4531521, %v5014_v12  ;;  %v5096_v28 = vadd.f32 0.2548296, %v5084_v48  ;;  %7382 = vpow2.f32 %v5156_v26  ;;  %vm4929_vm11 = vcmp.ge.f32.partialorder %v9335_v46, 0.0 }
0x1f39   : > { %7384 = vpow2.f32 %v5154_v7  ;;  %v4942_v4 = vsel %vm4930_vm10, 1.0, %v9469_v20  ;;  %v4941_v23 = vsel %vm4929_vm11, 1.0, %v9469_v20  ;;  %v4904_v48 = vmul.f32 0.5, %v9245_v19 }
0x1f3a   : > { %v5038_v56 = vmul.f32 %v7375_v44, %v5026_v55  ;;  %v5108_v8 = vmul.f32 %v9339_v3, %v5096_v28  ;;  %7386 = vpow2.f32 %v5158_v42  ;;  %vm4931_vm12 = vcmp.ge.f32.partialorder %v9357_v37, 0.0 }
0x1f3b   : > { %v7377_v30 = vpop.eup %7376  ;;  %v4943_v11 = vsel %vm4931_vm12, 1.0, %v9469_v20  ;;  %v4906_v28 = vmul.f32 0.5, %v9306_v16  ;;  %v6254_v20 = vld [vmem:[%s9419_s14 + $0x1] ss:$0 sm:$0xff] }
0x1f3c   : > { %v5050_v27 = vadd.f32 1.4214138, %v5038_v56  ;;  %v5013_v43 = vmul.f32 1.0614054, %v7377_v30  ;;  %v4905_v56 = vmul.f32 0.5, %v9322_v59 }
0x1f3e   : > { %v5062_v62 = vmul.f32 %v7375_v44, %v5050_v27  ;;  %v5025_v1 = vadd.f32 -1.4531521, %v5013_v43 }
0x1f40   : > { %v7379_v25 = vpop.eup %7378  ;;  %v5074_v13 = vadd.f32 -0.28449672, %v5062_v62  ;;  %v5037_v51 = vmul.f32 %v7377_v30, %v5025_v1  ;;  %v4907_v1 = vmul.f32 0.5, %v9348_v10 }
0x1f41   : > { %v5015_v52 = vmul.f32 1.0614054, %v7379_v25  ;;  %v7381_v49 = vpop.eup %7380 }
0x1f42   : > { %v5086_v18 = vmul.f32 %v7375_v44, %v5074_v13  ;;  %v5049_v45 = vadd.f32 1.4214138, %v5037_v51  ;;  %v5168_v54 = vmul.f32 %v7381_v49, %v5108_v8  ;;  %v7383_v32 = vpop.eup %7382 }
0x1f43   : > { %v5027_v15 = vadd.f32 -1.4531521, %v5015_v52  ;;  %v7385_v22 = vpop.eup %7384 }
0x1f44   : > { %v5098_v0 = vadd.f32 0.2548296, %v5086_v18  ;;  %v5061_v61 = vmul.f32 %v7377_v30, %v5049_v45  ;;  %v5180_v3 = vsub.f32 1.0, %v5168_v54  ;;  %v7387_v17 = vpop.eup %7386 }
0x1f45   : > { %v5039_v5 = vmul.f32 %v7379_v25, %v5027_v15 }
0x1f46   : > { %v5110_v21 = vmul.f32 %v7375_v44, %v5098_v0  ;;  %v5073_v2 = vadd.f32 -0.28449672, %v5061_v61  ;;  %v5192_v14 = vmul.f32 %v5180_v3, %v4940_v31 }
0x1f47   : > { %v5051_v60 = vadd.f32 1.4214138, %v5039_v5 }
0x1f48   : > { %v5085_v58 = vmul.f32 %v7377_v30, %v5073_v2  ;;  %v5170_v36 = vmul.f32 %v7383_v32, %v5110_v21  ;;  %v5204_v12 = vadd.f32 1.0, %v5192_v14 }
0x1f49   : > { %v5063_v47 = vmul.f32 %v7379_v25, %v5051_v60 }
0x1f4a   : > { %v5097_v34 = vadd.f32 0.2548296, %v5085_v58  ;;  %v5182_v38 = vsub.f32 1.0, %v5170_v36  ;;  %v5216_v26 = vmul.f32 %v5204_v12, %v4904_v48 }
0x1f4b   : > { %v5075_v57 = vadd.f32 -0.28449672, %v5063_v47 }
0x1f4c   : > { %v5109_v41 = vmul.f32 %v7377_v30, %v5097_v34  ;;  %v5194_v9 = vmul.f32 %v5182_v38, %v4942_v4  ;;  %v5224_v19 = vpack.c.bf16 %v5216_v26, %v5216_v26  ;;  %v7167_v26 = vld [vmem:[#allocation9 + $0x18] sm:$0xff]  }
0x1f4d   : > { %v5087_v6 = vmul.f32 %v7379_v25, %v5075_v57 }
0x1f4e   : > { %v5169_v50 = vmul.f32 %v7385_v22, %v5109_v41  ;;  %v5206_v43 = vadd.f32 1.0, %v5194_v9 }
0x1f4f   : > { %v5099_v35 = vadd.f32 0.2548296, %v5087_v6 }
0x1f50   : > { %v5181_v44 = vsub.f32 1.0, %v5169_v50  ;;  %v5218_v37 = vmul.f32 %v5206_v43, %v4906_v28  ;;  %v7170_v43 = vld [vmem:[#allocation9 + $0x30] sm:$0xff]  }
0x1f51   : > { %v5111_v63 = vmul.f32 %v7379_v25, %v5099_v35 }
0x1f52   : > { %v5193_v55 = vmul.f32 %v5181_v44, %v4941_v23  ;;  %v5226_v13 = vpack.c.bf16 %v5218_v37, %v5218_v37 }
0x1f53   : > { %v5171_v24 = vmul.f32 %v7387_v17, %v5111_v63 }
0x1f54   : > { %v5205_v46 = vadd.f32 1.0, %v5193_v55 }
0x1f55   : > { %v5183_v30 = vsub.f32 1.0, %v5171_v24 }
0x1f56   : > { %v5217_v27 = vmul.f32 %v5205_v46, %v4905_v56  ;;  %v7164_v56 = vld [vmem:[#allocation9] sm:$0xff]   ;;  %v7165_v46 = vld [vmem:[#allocation9 + $0x8] sm:$0xff]  }
0x1f57   : > { %v5195_v29 = vmul.f32 %v5183_v30, %v4943_v11  ;;  %v7166_v30 = vld [vmem:[#allocation9 + $0x10] sm:$0xff]   ;;  %v7168_v11 = vld [vmem:[#allocation9 + $0x20] sm:$0xff]  }
0x1f58   : > { %v5225_v62 = vpack.c.bf16 %v5217_v27, %v5217_v27  ;;  %v7169_v27 = vld [vmem:[#allocation9 + $0x28] sm:$0xff]  }
0x1f59   : > { %v5207_v7 = vadd.f32 1.0, %v5195_v29  ;;  %v7171_v29 = vld [vmem:[#allocation9 + $0x38] sm:$0xff]  }
0x1f5a   : > { %5530 = vmatprep.mubr.bf16.mxu0 %v5225_v62 }
0x1f5b   : > { %v5219_v25 = vmul.f32 %v5207_v7, %v4907_v1  ;;  %5531 = vmatmul.mubr.bf16.gmra.mrb[80].mxu0 %v5224_v19 }
0x1f5d   : > { %v5227_v59 = vpack.c.bf16 %v5219_v25, %v5219_v25 }
0x1f5f   : > { %5578 = vmatprep.mubr.bf16.mxu1 %v5227_v59 }
0x1f60   : > { %5579 = vmatmul.mubr.bf16.gmra.mrb[104].mxu1 %v5226_v13 }
0x2008   : > { %v6515_v51 = vpop.f32.mrb[76].mxu0 }
0x2009   : > { %v6516_v39 = vpop.f32.mrb[77].mxu0 }
0x200a   : > { %v6517_v16 = vadd.f32 %v6516_v39, %v6515_v51  ;;  %v6518_v8 = vpop.f32.mrb[78].mxu0  ;;  %v6287_v39 = vld [vmem:[%s9420_s15] ss:$0 sm:$0xff] }
0x200b   : > { %v6543_v52 = vpop.f32.mrb[100].mxu1  ;;  %v6519_v10 = vpop.f32.mrb[79].mxu0 }
0x200c   : > { %v5525_v18 = vadd.f32 %v6517_v16, %v6254_v20  ;;  %v6544_v45 = vpop.f32.mrb[101].mxu1  ;;  %v6520_v15 = vadd.f32 %v6519_v10, %v6518_v8 }
0x200d   : > { %v6545_v49 = vadd.f32 %v6544_v45, %v6543_v52  ;;  %v6546_v0 = vpop.f32.mrb[102].mxu1  ;;  %v6288_v52 = vld [vmem:[%s9421_s16] ss:$0 sm:$0xff] }
0x200e   : > { %v5528_v61 = vadd.f32 %v6520_v15, %v6254_v20  ;;  %v6547_v42 = vpop.f32.mrb[103].mxu1 }
0x200f   : > { %v5573_v54 = vadd.f32 %v6545_v49, %v5525_v18  ;;  %v6548_v5 = vadd.f32 %v6547_v42, %v6546_v0 }
0x2011   : > { %v5576_v21 = vadd.f32 %v6548_v5, %v5528_v61 }
0x2013   : > { %v5587_v2 = vadd.f32 %v5576_v21, %v8916_v53  ;;  %v5586_v53 = vadd.f32 %v5573_v54, %v8913_v40  ;;  %v7568_v40 = vmov 0.0  }
0x2014   : > { %6796 = vmatprep.subr.bf16.mxu0 %v7568_v40  ;;  %6812 = vmatprep.mubr.msk.bf16.mxu0 %vm7569_vm13, %v7568_v40 }
0x2015   : > { %5593 = vadd.xlane.f32.xlu1 %v5587_v2  ;;  %6797 = vmatpush3.bf16.msra.mxu0 %v7164_v56 }
0x2016   : > { %6798 = vmatprep.subr.bf16.mxu0 %v7568_v40 }
0x2019   : > { %6799 = vmatpush3.bf16.msra.mxu0 %v7165_v46 }
0x201a   : > { %6800 = vmatprep.subr.bf16.mxu0 %v7568_v40 }
0x201d   : > { %6801 = vmatpush3.bf16.msra.mxu0 %v7166_v30 }
0x201e   : > { %6802 = vmatprep.subr.bf16.mxu0 %v7568_v40 }
0x2021   : > { %6803 = vmatpush3.bf16.msra.mxu0 %v7167_v26 }
0x2022   : > { %6804 = vmatprep.subr.bf16.mxu0 %v7568_v40 }
0x2025   : > { %6805 = vmatpush3.bf16.msra.mxu0 %v7168_v11 }
0x2026   : > { %6806 = vmatprep.subr.bf16.mxu0 %v7568_v40 }
0x2029   : > { %6807 = vmatpush3.bf16.msra.mxu0 %v7169_v27 }
0x202a   : > { %6808 = vmatprep.subr.bf16.mxu0 %v7568_v40 }
0x202d   : > { %6809 = vmatpush3.bf16.msra.mxu0 %v7170_v43 }
0x202e   : > { %v6521_v60 = vpop.f32.mrb[80].mxu0  ;;  %6810 = vmatprep.subr.bf16.mxu0 %v7568_v40 }
0x202f   : > { %v6522_v58 = vpop.f32.mrb[81].mxu0 }
0x2030   : > { %v6523_v32 = vadd.f32 %v6522_v58, %v6521_v60  ;;  %v6524_v3 = vpop.f32.mrb[82].mxu0 }
0x2031   : > { %v6525_v47 = vpop.f32.mrb[83].mxu0  ;;  %6811 = vmatpush3.bf16.msra.mxu0 %v7171_v29 }
0x2032   : > { %v5533_v34 = vadd.f32 %v6523_v32, %v6254_v20 }
0x2033   : > { %v6549_v36 = vpop.f32.mrb[104].mxu1 }
0x2034   : > { %v6550_v57 = vpop.f32.mrb[105].mxu1 }
0x2035   : > { %v6551_v31 = vadd.f32 %v6550_v57, %v6549_v36  ;;  %v6552_v41 = vpop.f32.mrb[106].mxu1 }
0x2036   : > { %v6553_v22 = vpop.f32.mrb[107].mxu1 }
0x2037   : > { %v5581_v14 = vadd.f32 %v6551_v31, %v5533_v34 }
0x2039   : > { %v5588_v6 = vadd.f32 %v5581_v14, %v8918_v33  ;;  %v5683_v14 = vld [vmem:[%s9475_s26] sm:$0x1] }
0x203b   : > { %v5595_v38 = vsel %vm874_vm0, %v5588_v6, 0.0 }
0x203c   : > { %5596 = vadd.xlane.f32.xlu0 %v5595_v38 }
0x2040   : > { %5591 = vadd.xlane.f32.xlu0 %v5586_v53 }
0x20a2   : > { %v5594_v50 = vpop.xlane.xlu1 %5593 }
0x20a3   : > { %v5599_v35 = vmul.f32 0.0078125, %v5594_v50 }
0x20a5   : > { %v5602_v44 = vsub.f32 %v5587_v2, %v5599_v35 }
0x20a7   : > { %v5605_v4 = vmul.f32 %v5602_v44, %v5602_v44 }
0x20a9   : > { %5609 = vadd.xlane.f32.xlu1 %v5605_v4 }
0x20c9   : > { %v5597_v23 = vpop.xlane.xlu0 %5596 }
0x20ca   : > { %v5600_v63 = vmul.f32 0.0078125, %v5597_v23 }
0x20cc   : > { %v5603_v12 = vsub.f32 %v5588_v6, %v5600_v63 }
0x20cd   : > { %v5592_v17 = vpop.xlane.xlu0 %5591 }
0x20ce   : > { %v5598_v9 = vmul.f32 0.0078125, %v5592_v17  ;;  %v5606_v55 = vmul.f32 %v5603_v12, %v5603_v12 }
0x20d0   : > { %v5601_v48 = vsub.f32 %v5586_v53, %v5598_v9  ;;  %v5611_v33 = vsel %vm874_vm0, %v5606_v55, 0.0  ;;  %vm5647_vm0 = vcmask 1045504  }
0x20d1   : > { %5612 = vadd.xlane.f32.xlu0 %v5611_v33 }
0x20d2   : > { %v5604_v24 = vmul.f32 %v5601_v48, %v5601_v48 }
0x20d4   : > { %5607 = vadd.xlane.f32.xlu1 %v5604_v24 }
0x2136   : > { %v5610_v28 = vpop.xlane.xlu1 %5609 }
0x2137   : > { %v5615_v62 = vmul.f32 0.0078125, %v5610_v28 }
0x2139   : > { %v5618_v1 = vadd.f32 1e-05, %v5615_v62 }
0x213b   : > { %7388 = vrsqrt.f32 %v5618_v1 }
0x2145   : > { %v7389_v51 = vpop.eup %7388 }
0x2146   : > { %v5624_v20 = vmul.f32 %v7389_v51, %v5602_v44 }
0x2148   : > { %v5633_v16 = vmul.f32 %v6287_v39, %v5624_v20 }
0x214a   : > { %v5642_v45 = vadd.f32 %v6288_v52, %v5633_v16 }
0x214c   : > { %v5649_v42 = vrot.slane %v5642_v45, 2 }
0x215e   : > { %v5613_v7 = vpop.xlane.xlu0 %5612 }
0x215f   : > { %v5616_v19 = vmul.f32 0.0078125, %v5613_v7 }
0x2161   : > { %v5619_v37 = vadd.f32 1e-05, %v5616_v19  ;;  %v5608_v25 = vpop.xlane.xlu1 %5607 }
0x2162   : > { %v5614_v59 = vmul.f32 0.0078125, %v5608_v25 }
0x2163   : > { %7390 = vrsqrt.f32 %v5619_v37 }
0x2164   : > { %v5617_v13 = vadd.f32 1e-05, %v5614_v59 }
0x2166   : > { %7392 = vrsqrt.f32 %v5617_v13 }
0x216d   : > { %v7391_v8 = vpop.eup %7390 }
0x216e   : > { %v5625_v10 = vmul.f32 %v7391_v8, %v5603_v12 }
0x2170   : > { %v7393_v18 = vpop.eup %7392  ;;  %v5634_v15 = vmul.f32 %v6287_v39, %v5625_v10 }
0x2171   : > { %v5623_v49 = vmul.f32 %v7393_v18, %v5601_v48 }
0x2172   : > { %v5643_v0 = vadd.f32 %v6288_v52, %v5634_v15 }
0x2173   : > { %v5632_v61 = vmul.f32 %v6287_v39, %v5623_v49 }
0x2174   : > { %v5651_v54 = vrot.slane %v5643_v0, 2 }
0x2175   : > { %v5641_v5 = vadd.f32 %v6288_v52, %v5632_v61 }
0x2176   : > { %v5652_v21 = vsel %vm5647_vm0, %v5649_v42, %v5651_v54 }
0x2177   : > { %v5648_v2 = vrot.slane %v5641_v5, 2  ;;  %v5656_v58 = vsel %vm5655_vm14, %v5652_v21, 0.0 }
0x2179   : > { %v5650_v60 = vsel %vm5647_vm0, %v5648_v2, %v5649_v42 }
0x217a   : > { %v5657_v32 = vadd.f32 %v5656_v58, %v5650_v60 }
0x217c   : > { %v5658_v3 = vrot.slane %v5657_v32, 4 }
0x217e   : > { %v5659_v47 = vadd.f32 %v5658_v3, %v5657_v32 }
0x2180   : > { %v5660_v36 = vrot.slane %v5659_v47, 2 }
0x2182   : > { %v5661_v34 = vadd.f32 %v5660_v36, %v5659_v47 }
0x2184   : > { %v5662_v57 = vrot.slane %v5661_v34, 1 }
0x2186   : > { %v5663_v31 = vadd.f32 %v5662_v57, %v5661_v34 }
0x2188   : > { %v5665_v41 = vmul.f32 0.06666667, %v5663_v31 }
0x218a   : > { %v5666_v22 = vpack.c.bf16 %v5665_v41, %v5665_v41 }
0x218c   : > { %6813 = vmatmul.mubr.bf16.vlgmr.msra.gmra.mrb[84].mxu0 %v5666_v22 }
0x225f   : > { %v5766_v6 = vpop.f32.mrb[84].mxu0 }
0x2260   : > { %v5767_v38 = vadd.f32 %v5766_v6, %v5683_v14  ;;  %v6814_v53 = vpop.f32.mrb[85].mxu0 }
0x2261   : > { %v5769_v50 = vpop.f32.mrb[86].mxu0 }
0x2262   : > { %5772 = vst [vmem:[%s667_s1] sm:$0x1] %v5767_v38  ;;  %v6815_v35 = vpop.f32.mrb[87].mxu0 }
0x2263 PF: > { %s9477_s23 = sld [smem:[#allocation13_spill]] }
0x2269   : > { %s32_s0 = sadd.s32 1, %s9477_s23  }
0x226a   : > { %p29_p6 = scmp.ge.s32.totalorder %s32_s0, 4  }
0x226c   :  { %31 = sbr.rel (!%p29_p6) target bundleno = 12 (0xc), region = 153 }
0x2273   :  { %5790 = vsyncpa [#allocation3], 1 }
0x2274   :  { %5792 = vsyncpa [#allocation3 + $0x1], 1 }
0x2275   :  { %5793 = vsyncpa [#allocation5], 1 }
0x2276   :  { %5794 = vsyncpa [#allocation8], 1 }

</bundles_post_ra>
